<compile_context>
chip_gen: v6e
topology: v6e:2x2x1
jax: 0.10.0
libtpu: 0.0.40
codegen_flags: <defaults>
</compile_context>

<pallas_src>
import functools

import jax
import jax.numpy as jnp
from jax.experimental import pallas as pl
from jax.experimental.pallas import tpu as pltpu

H_N = 10        # hidden width
INPUT_N = 2     # input features
N_LAYERS = 10   # 10 linear layers total (first 9 followed by Swish, last plain)
PAD = 16        # padded feature width (>= max(H_N, INPUT_N), sublane friendly)
LANE = 128


def _swish(h):
    # x * sigmoid(x) == x * (0.5 * tanh(0.5 x) + 0.5): single EUP op per vreg.
    return h * (0.5 * jnp.tanh(0.5 * h) + 0.5)


def pinn_v_kernel(x_ref, w_ref, b_ref, o_ref):
    """Forward pass for one lane-dense batch tile.

    x_ref: (INPUT_N, TB)          un-padded inputs, batch on lanes, f32
    w_ref: (N_LAYERS, PAD, PAD)   zero-padded weights, PyTorch (out,in), bf16
    b_ref: (N_LAYERS, PAD, 1)     zero-padded biases, f32
    o_ref: (1, TB)                lane-dense output block, f32
    """
    x = x_ref[...]                              # (2, TB) f32

    # Layer 0 (in=2): two broadcast outer-product MACs on the (otherwise idle)
    # VPU; avoids feature-padding the input and a degenerate K=2 MXU dot.
    w0 = w_ref[0].astype(jnp.float32)           # (PAD, PAD)
    h = (b_ref[0]
         + w0[:, 0:1] * x[0:1, :]
         + w0[:, 1:2] * x[1:2, :])              # (PAD, TB) f32
    h = _swish(h)

    # Hidden + output layers: bf16-fed MXU dots with f32 accumulation; bias add
    # and Swish stay in f32. Padded rows/cols of W and b are zero and
    # swish(0)=0, so padding never leaks into the real rows.
    for l in range(1, N_LAYERS):
        h = jnp.dot(w_ref[l], h.astype(jnp.bfloat16),
                    preferred_element_type=jnp.float32) + b_ref[l]
        if l < N_LAYERS - 1:
            h = _swish(h)

    # Real output is row 0 of the final (PAD, TB) activation.
    o_ref[...] = h[0:1, :].astype(o_ref.dtype)


def _pack_params(params):
    """Stack per-layer (W_pt (out,in), b (out,)) into padded (L,16,16)/(L,16,1)."""
    w_pack = jnp.zeros((N_LAYERS, PAD, PAD), jnp.float32)
    b_pack = jnp.zeros((N_LAYERS, PAD, 1), jnp.float32)
    for l, (w, b) in enumerate(params):
        out_d, in_d = w.shape
        w_pack = w_pack.at[l, :out_d, :in_d].set(w)
        b_pack = b_pack.at[l, :out_d, 0].set(b)
    return w_pack.astype(jnp.bfloat16), b_pack


@functools.partial(jax.jit, static_argnames=("target_tile_b",))
def pinn_v_forward(x, params, *, target_tile_b=8192):
    """x: (N, INPUT_N) f32; params: list of (W_pt (out,in), b (out,)). Returns (N, 1)."""
    N = x.shape[0]

    # Trace-time tile selection: fat tiles (target 8192 lanes) amortize the
    # per-grid-step overhead, but keep >=2 tiles whenever N allows so the
    # "parallel" axis spans both v7x TensorCores (no-op on v5e/v6e).
    n_chunks = pl.cdiv(N, LANE)
    max_chunks = max(target_tile_b // LANE, 1)
    chunks_per_tile = max(min(max_chunks, pl.cdiv(n_chunks, 2)), 1)
    tile_b = chunks_per_tile * LANE
    n_tiles = pl.cdiv(N, tile_b)
    N_pad = n_tiles * tile_b

    # Batch on lanes; no feature padding (block sublane dim == full array dim).
    x_t = jnp.pad(x.astype(jnp.float32), ((0, N_pad - N), (0, 0))).T  # (2, N_pad)

    w_pack, b_pack = _pack_params(params)

    out_t = pl.pallas_call(
        pinn_v_kernel,
        out_shape=jax.ShapeDtypeStruct((1, N_pad), jnp.float32),
        grid=(n_tiles,),
        in_specs=[
            pl.BlockSpec((INPUT_N, tile_b), lambda i: (0, i)),
            pl.BlockSpec((N_LAYERS, PAD, PAD), lambda i: (0, 0, 0)),
            pl.BlockSpec((N_LAYERS, PAD, 1), lambda i: (0, 0, 0)),
        ],
        out_specs=pl.BlockSpec((1, tile_b), lambda i: (0, i)),
        compiler_params=pltpu.CompilerParams(
            dimension_semantics=("parallel",)),
    )(x_t, w_pack, b_pack)

    # Lane-dense (1, N_pad) -> (N, 1) for callers (free layout plumbing).
    return out_t[:, :N].T


def init_params(key):
    """Deterministic synthetic parameters matching PINN_v layer shapes (PyTorch layout)."""
    dims = [INPUT_N] + [H_N] * 9 + [1]   # 2, 10, 10, ..., 10, 1
    params = []
    for l in range(len(dims) - 1):
        key, kw, kb = jax.random.split(key, 3)
        fan_in = dims[l]
        bound = 1.0 / jnp.sqrt(fan_in)
        w = jax.random.uniform(kw, (dims[l + 1], dims[l]), jnp.float32,
                               minval=-bound, maxval=bound)   # (out, in)
        b = jax.random.uniform(kb, (dims[l + 1],), jnp.float32,
                               minval=-bound, maxval=bound)
        params.append((w, b))
    return params


def reference_forward_f32(x, params):
    """Pure f32 PyTorch-equivalent forward."""
    h = x
    n = len(params)
    for l, (w, b) in enumerate(params):
        h = h @ w.T + b
        if l < n - 1:
            h = h * jax.nn.sigmoid(h)
    return h


def reference_forward_bf16(x, params):
    """Reference that mimics the kernel's numerics (bf16-fed dots, f32 accum)."""
    n = len(params)
    w0, b0 = params[0]
    w0 = w0.astype(jnp.bfloat16).astype(jnp.float32)
    h = x.astype(jnp.float32) @ w0.T + b0
    h = h * jax.nn.sigmoid(h)
    for l in range(1, n):
        w, b = params[l]
        h = jnp.dot(h.astype(jnp.bfloat16), w.T.astype(jnp.bfloat16),
                    preferred_element_type=jnp.float32) + b
        if l < n - 1:
            h = h * jax.nn.sigmoid(h)
    return h


if __name__ == "__main__":
    key = jax.random.PRNGKey(0)
    kx, kp = jax.random.split(key)

    N = 4096  # -> 2 grid steps of tile_b=2048 (keeps both v7x TCs busy)
    x = jax.random.uniform(kx, (N, INPUT_N), jnp.float32, minval=-1.0, maxval=1.0)
    params = init_params(kp)

    out = pinn_v_forward(x, params)
    out = jax.block_until_ready(out)
    assert out.shape == (N, 1)

    # Tight check vs a reference with matching bf16-fed MXU numerics.
    ref_bf16 = reference_forward_bf16(x, params)
    assert jnp.allclose(out, ref_bf16, atol=1e-2, rtol=1e-2), "mismatch vs bf16 reference"

    # Loose check vs the exact f32 module semantics (bf16 rounding tolerance).
    ref_f32 = reference_forward_f32(x, params)
    assert jnp.allclose(out, ref_f32, atol=1e-1, rtol=1e-1), "mismatch vs f32 reference"

    print("KERNEL_OK")
</pallas_src>

<mosaic_0001>
module attributes {stable_mosaic.version = 11 : i64} {
  func.func @pinn_v_kernel(%arg0: i32, %arg1: memref<2x2048xf32, #tpu.memory_space<vmem>>, %arg2: memref<10x16x16xbf16, #tpu.memory_space<vmem>>, %arg3: memref<10x16x1xf32, #tpu.memory_space<vmem>>, %arg4: memref<1x2048xf32, #tpu.memory_space<vmem>>) attributes {dimension_semantics = [#tpu.dimension_semantics<parallel>], iteration_bounds = array<i64: 2>, scalar_prefetch = 0 : i64, scratch_operands = 0 : i64, tpu.core_type = #tpu.core_type<tc>, window_params = [{transform_indices = @transform_0, window_bounds = array<i64: 2, 2048>}, {pipeline_mode = #tpu.pipeline_mode<synchronous>, transform_indices = @transform_1, window_bounds = array<i64: 10, 16, 16>}, {pipeline_mode = #tpu.pipeline_mode<synchronous>, transform_indices = @transform_2, window_bounds = array<i64: 10, 16, 1>}, {transform_indices = @transform_3, window_bounds = array<i64: 1, 2048>}]} {
    %c0 = arith.constant 0 : index
    %c0_0 = arith.constant 0 : index
    %0 = vector.load %arg1[%c0, %c0_0] : memref<2x2048xf32, #tpu.memory_space<vmem>>, vector<2x2048xf32>
    %c0_1 = arith.constant 0 : index
    %c0_2 = arith.constant 0 : index
    %c0_3 = arith.constant 0 : index
    %1 = vector.load %arg2[%c0_1, %c0_2, %c0_3] : memref<10x16x16xbf16, #tpu.memory_space<vmem>>, vector<1x16x16xbf16>
    %2 = vector.shape_cast %1 : vector<1x16x16xbf16> to vector<16x16xbf16>
    %3 = arith.extf %2 : vector<16x16xbf16> to vector<16x16xf32>
    %c0_4 = arith.constant 0 : index
    %c0_5 = arith.constant 0 : index
    %c0_6 = arith.constant 0 : index
    %4 = vector.load %arg3[%c0_4, %c0_5, %c0_6] : memref<10x16x1xf32, #tpu.memory_space<vmem>>, vector<1x16x1xf32>
    %5 = vector.shape_cast %4 : vector<1x16x1xf32> to vector<16x1xf32>
    %6 = vector.extract_strided_slice %3 {offsets = [0, 0], sizes = [16, 1], strides = [1, 1]} : vector<16x16xf32> to vector<16x1xf32>
    %7 = vector.extract_strided_slice %0 {offsets = [0, 0], sizes = [1, 2048], strides = [1, 1]} : vector<2x2048xf32> to vector<1x2048xf32>
    %8 = vector.broadcast %6 : vector<16x1xf32> to vector<16x2048xf32>
    %9 = vector.broadcast %7 : vector<1x2048xf32> to vector<16x2048xf32>
    %10 = arith.mulf %8, %9 : vector<16x2048xf32>
    %11 = vector.broadcast %5 : vector<16x1xf32> to vector<16x2048xf32>
    %12 = arith.addf %11, %10 : vector<16x2048xf32>
    %13 = vector.extract_strided_slice %3 {offsets = [0, 1], sizes = [16, 1], strides = [1, 1]} : vector<16x16xf32> to vector<16x1xf32>
    %14 = vector.extract_strided_slice %0 {offsets = [1, 0], sizes = [1, 2048], strides = [1, 1]} : vector<2x2048xf32> to vector<1x2048xf32>
    %15 = vector.broadcast %13 : vector<16x1xf32> to vector<16x2048xf32>
    %16 = vector.broadcast %14 : vector<1x2048xf32> to vector<16x2048xf32>
    %17 = arith.mulf %15, %16 : vector<16x2048xf32>
    %18 = arith.addf %12, %17 : vector<16x2048xf32>
    %cst = arith.constant 5.000000e-01 : f32
    %19 = vector.broadcast %cst : f32 to vector<16x2048xf32>
    %20 = arith.mulf %19, %18 : vector<16x2048xf32>
    %21 = math.tanh %20 : vector<16x2048xf32>
    %cst_7 = arith.constant 5.000000e-01 : f32
    %22 = vector.broadcast %cst_7 : f32 to vector<16x2048xf32>
    %23 = arith.mulf %22, %21 : vector<16x2048xf32>
    %cst_8 = arith.constant 5.000000e-01 : f32
    %24 = vector.broadcast %cst_8 : f32 to vector<16x2048xf32>
    %25 = arith.addf %23, %24 : vector<16x2048xf32>
    %26 = arith.mulf %18, %25 : vector<16x2048xf32>
    %c1 = arith.constant 1 : index
    %c0_9 = arith.constant 0 : index
    %c0_10 = arith.constant 0 : index
    %27 = vector.load %arg2[%c1, %c0_9, %c0_10] : memref<10x16x16xbf16, #tpu.memory_space<vmem>>, vector<1x16x16xbf16>
    %28 = vector.shape_cast %27 : vector<1x16x16xbf16> to vector<16x16xbf16>
    %29 = arith.truncf %26 : vector<16x2048xf32> to vector<16x2048xbf16>
    %cst_11 = arith.constant dense<0.000000e+00> : vector<16x2048xf32>
    %30 = tpu.matmul %28, %29, %cst_11 {dimension_numbers = #tpu.dot_dimension_numbers<[1], [0], [0], [1], [0, 0, 1, 1], [], []>} : vector<16x16xbf16>, vector<16x2048xbf16>, vector<16x2048xf32> -> vector<16x2048xf32>
    %c1_12 = arith.constant 1 : index
    %c0_13 = arith.constant 0 : index
    %c0_14 = arith.constant 0 : index
    %31 = vector.load %arg3[%c1_12, %c0_13, %c0_14] : memref<10x16x1xf32, #tpu.memory_space<vmem>>, vector<1x16x1xf32>
    %32 = vector.shape_cast %31 : vector<1x16x1xf32> to vector<16x1xf32>
    %33 = vector.broadcast %32 : vector<16x1xf32> to vector<16x2048xf32>
    %34 = arith.addf %30, %33 : vector<16x2048xf32>
    %cst_15 = arith.constant 5.000000e-01 : f32
    %35 = vector.broadcast %cst_15 : f32 to vector<16x2048xf32>
    %36 = arith.mulf %35, %34 : vector<16x2048xf32>
    %37 = math.tanh %36 : vector<16x2048xf32>
    %cst_16 = arith.constant 5.000000e-01 : f32
    %38 = vector.broadcast %cst_16 : f32 to vector<16x2048xf32>
    %39 = arith.mulf %38, %37 : vector<16x2048xf32>
    %cst_17 = arith.constant 5.000000e-01 : f32
    %40 = vector.broadcast %cst_17 : f32 to vector<16x2048xf32>
    %41 = arith.addf %39, %40 : vector<16x2048xf32>
    %42 = arith.mulf %34, %41 : vector<16x2048xf32>
    %c2 = arith.constant 2 : index
    %c0_18 = arith.constant 0 : index
    %c0_19 = arith.constant 0 : index
    %43 = vector.load %arg2[%c2, %c0_18, %c0_19] : memref<10x16x16xbf16, #tpu.memory_space<vmem>>, vector<1x16x16xbf16>
    %44 = vector.shape_cast %43 : vector<1x16x16xbf16> to vector<16x16xbf16>
    %45 = arith.truncf %42 : vector<16x2048xf32> to vector<16x2048xbf16>
    %cst_20 = arith.constant dense<0.000000e+00> : vector<16x2048xf32>
    %46 = tpu.matmul %44, %45, %cst_20 {dimension_numbers = #tpu.dot_dimension_numbers<[1], [0], [0], [1], [0, 0, 1, 1], [], []>} : vector<16x16xbf16>, vector<16x2048xbf16>, vector<16x2048xf32> -> vector<16x2048xf32>
    %c2_21 = arith.constant 2 : index
    %c0_22 = arith.constant 0 : index
    %c0_23 = arith.constant 0 : index
    %47 = vector.load %arg3[%c2_21, %c0_22, %c0_23] : memref<10x16x1xf32, #tpu.memory_space<vmem>>, vector<1x16x1xf32>
    %48 = vector.shape_cast %47 : vector<1x16x1xf32> to vector<16x1xf32>
    %49 = vector.broadcast %48 : vector<16x1xf32> to vector<16x2048xf32>
    %50 = arith.addf %46, %49 : vector<16x2048xf32>
    %cst_24 = arith.constant 5.000000e-01 : f32
    %51 = vector.broadcast %cst_24 : f32 to vector<16x2048xf32>
    %52 = arith.mulf %51, %50 : vector<16x2048xf32>
    %53 = math.tanh %52 : vector<16x2048xf32>
    %cst_25 = arith.constant 5.000000e-01 : f32
    %54 = vector.broadcast %cst_25 : f32 to vector<16x2048xf32>
    %55 = arith.mulf %54, %53 : vector<16x2048xf32>
    %cst_26 = arith.constant 5.000000e-01 : f32
    %56 = vector.broadcast %cst_26 : f32 to vector<16x2048xf32>
    %57 = arith.addf %55, %56 : vector<16x2048xf32>
    %58 = arith.mulf %50, %57 : vector<16x2048xf32>
    %c3 = arith.constant 3 : index
    %c0_27 = arith.constant 0 : index
    %c0_28 = arith.constant 0 : index
    %59 = vector.load %arg2[%c3, %c0_27, %c0_28] : memref<10x16x16xbf16, #tpu.memory_space<vmem>>, vector<1x16x16xbf16>
    %60 = vector.shape_cast %59 : vector<1x16x16xbf16> to vector<16x16xbf16>
    %61 = arith.truncf %58 : vector<16x2048xf32> to vector<16x2048xbf16>
    %cst_29 = arith.constant dense<0.000000e+00> : vector<16x2048xf32>
    %62 = tpu.matmul %60, %61, %cst_29 {dimension_numbers = #tpu.dot_dimension_numbers<[1], [0], [0], [1], [0, 0, 1, 1], [], []>} : vector<16x16xbf16>, vector<16x2048xbf16>, vector<16x2048xf32> -> vector<16x2048xf32>
    %c3_30 = arith.constant 3 : index
    %c0_31 = arith.constant 0 : index
    %c0_32 = arith.constant 0 : index
    %63 = vector.load %arg3[%c3_30, %c0_31, %c0_32] : memref<10x16x1xf32, #tpu.memory_space<vmem>>, vector<1x16x1xf32>
    %64 = vector.shape_cast %63 : vector<1x16x1xf32> to vector<16x1xf32>
    %65 = vector.broadcast %64 : vector<16x1xf32> to vector<16x2048xf32>
    %66 = arith.addf %62, %65 : vector<16x2048xf32>
    %cst_33 = arith.constant 5.000000e-01 : f32
    %67 = vector.broadcast %cst_33 : f32 to vector<16x2048xf32>
    %68 = arith.mulf %67, %66 : vector<16x2048xf32>
    %69 = math.tanh %68 : vector<16x2048xf32>
    %cst_34 = arith.constant 5.000000e-01 : f32
    %70 = vector.broadcast %cst_34 : f32 to vector<16x2048xf32>
    %71 = arith.mulf %70, %69 : vector<16x2048xf32>
    %cst_35 = arith.constant 5.000000e-01 : f32
    %72 = vector.broadcast %cst_35 : f32 to vector<16x2048xf32>
    %73 = arith.addf %71, %72 : vector<16x2048xf32>
    %74 = arith.mulf %66, %73 : vector<16x2048xf32>
    %c4 = arith.constant 4 : index
    %c0_36 = arith.constant 0 : index
    %c0_37 = arith.constant 0 : index
    %75 = vector.load %arg2[%c4, %c0_36, %c0_37] : memref<10x16x16xbf16, #tpu.memory_space<vmem>>, vector<1x16x16xbf16>
    %76 = vector.shape_cast %75 : vector<1x16x16xbf16> to vector<16x16xbf16>
    %77 = arith.truncf %74 : vector<16x2048xf32> to vector<16x2048xbf16>
    %cst_38 = arith.constant dense<0.000000e+00> : vector<16x2048xf32>
    %78 = tpu.matmul %76, %77, %cst_38 {dimension_numbers = #tpu.dot_dimension_numbers<[1], [0], [0], [1], [0, 0, 1, 1], [], []>} : vector<16x16xbf16>, vector<16x2048xbf16>, vector<16x2048xf32> -> vector<16x2048xf32>
    %c4_39 = arith.constant 4 : index
    %c0_40 = arith.constant 0 : index
    %c0_41 = arith.constant 0 : index
    %79 = vector.load %arg3[%c4_39, %c0_40, %c0_41] : memref<10x16x1xf32, #tpu.memory_space<vmem>>, vector<1x16x1xf32>
    %80 = vector.shape_cast %79 : vector<1x16x1xf32> to vector<16x1xf32>
    %81 = vector.broadcast %80 : vector<16x1xf32> to vector<16x2048xf32>
    %82 = arith.addf %78, %81 : vector<16x2048xf32>
    %cst_42 = arith.constant 5.000000e-01 : f32
    %83 = vector.broadcast %cst_42 : f32 to vector<16x2048xf32>
    %84 = arith.mulf %83, %82 : vector<16x2048xf32>
    %85 = math.tanh %84 : vector<16x2048xf32>
    %cst_43 = arith.constant 5.000000e-01 : f32
    %86 = vector.broadcast %cst_43 : f32 to vector<16x2048xf32>
    %87 = arith.mulf %86, %85 : vector<16x2048xf32>
    %cst_44 = arith.constant 5.000000e-01 : f32
    %88 = vector.broadcast %cst_44 : f32 to vector<16x2048xf32>
    %89 = arith.addf %87, %88 : vector<16x2048xf32>
    %90 = arith.mulf %82, %89 : vector<16x2048xf32>
    %c5 = arith.constant 5 : index
    %c0_45 = arith.constant 0 : index
    %c0_46 = arith.constant 0 : index
    %91 = vector.load %arg2[%c5, %c0_45, %c0_46] : memref<10x16x16xbf16, #tpu.memory_space<vmem>>, vector<1x16x16xbf16>
    %92 = vector.shape_cast %91 : vector<1x16x16xbf16> to vector<16x16xbf16>
    %93 = arith.truncf %90 : vector<16x2048xf32> to vector<16x2048xbf16>
    %cst_47 = arith.constant dense<0.000000e+00> : vector<16x2048xf32>
    %94 = tpu.matmul %92, %93, %cst_47 {dimension_numbers = #tpu.dot_dimension_numbers<[1], [0], [0], [1], [0, 0, 1, 1], [], []>} : vector<16x16xbf16>, vector<16x2048xbf16>, vector<16x2048xf32> -> vector<16x2048xf32>
    %c5_48 = arith.constant 5 : index
    %c0_49 = arith.constant 0 : index
    %c0_50 = arith.constant 0 : index
    %95 = vector.load %arg3[%c5_48, %c0_49, %c0_50] : memref<10x16x1xf32, #tpu.memory_space<vmem>>, vector<1x16x1xf32>
    %96 = vector.shape_cast %95 : vector<1x16x1xf32> to vector<16x1xf32>
    %97 = vector.broadcast %96 : vector<16x1xf32> to vector<16x2048xf32>
    %98 = arith.addf %94, %97 : vector<16x2048xf32>
    %cst_51 = arith.constant 5.000000e-01 : f32
    %99 = vector.broadcast %cst_51 : f32 to vector<16x2048xf32>
    %100 = arith.mulf %99, %98 : vector<16x2048xf32>
    %101 = math.tanh %100 : vector<16x2048xf32>
    %cst_52 = arith.constant 5.000000e-01 : f32
    %102 = vector.broadcast %cst_52 : f32 to vector<16x2048xf32>
    %103 = arith.mulf %102, %101 : vector<16x2048xf32>
    %cst_53 = arith.constant 5.000000e-01 : f32
    %104 = vector.broadcast %cst_53 : f32 to vector<16x2048xf32>
    %105 = arith.addf %103, %104 : vector<16x2048xf32>
    %106 = arith.mulf %98, %105 : vector<16x2048xf32>
    %c6 = arith.constant 6 : index
    %c0_54 = arith.constant 0 : index
    %c0_55 = arith.constant 0 : index
    %107 = vector.load %arg2[%c6, %c0_54, %c0_55] : memref<10x16x16xbf16, #tpu.memory_space<vmem>>, vector<1x16x16xbf16>
    %108 = vector.shape_cast %107 : vector<1x16x16xbf16> to vector<16x16xbf16>
    %109 = arith.truncf %106 : vector<16x2048xf32> to vector<16x2048xbf16>
    %cst_56 = arith.constant dense<0.000000e+00> : vector<16x2048xf32>
    %110 = tpu.matmul %108, %109, %cst_56 {dimension_numbers = #tpu.dot_dimension_numbers<[1], [0], [0], [1], [0, 0, 1, 1], [], []>} : vector<16x16xbf16>, vector<16x2048xbf16>, vector<16x2048xf32> -> vector<16x2048xf32>
    %c6_57 = arith.constant 6 : index
    %c0_58 = arith.constant 0 : index
    %c0_59 = arith.constant 0 : index
    %111 = vector.load %arg3[%c6_57, %c0_58, %c0_59] : memref<10x16x1xf32, #tpu.memory_space<vmem>>, vector<1x16x1xf32>
    %112 = vector.shape_cast %111 : vector<1x16x1xf32> to vector<16x1xf32>
    %113 = vector.broadcast %112 : vector<16x1xf32> to vector<16x2048xf32>
    %114 = arith.addf %110, %113 : vector<16x2048xf32>
    %cst_60 = arith.constant 5.000000e-01 : f32
    %115 = vector.broadcast %cst_60 : f32 to vector<16x2048xf32>
    %116 = arith.mulf %115, %114 : vector<16x2048xf32>
    %117 = math.tanh %116 : vector<16x2048xf32>
    %cst_61 = arith.constant 5.000000e-01 : f32
    %118 = vector.broadcast %cst_61 : f32 to vector<16x2048xf32>
    %119 = arith.mulf %118, %117 : vector<16x2048xf32>
    %cst_62 = arith.constant 5.000000e-01 : f32
    %120 = vector.broadcast %cst_62 : f32 to vector<16x2048xf32>
    %121 = arith.addf %119, %120 : vector<16x2048xf32>
    %122 = arith.mulf %114, %121 : vector<16x2048xf32>
    %c7 = arith.constant 7 : index
    %c0_63 = arith.constant 0 : index
    %c0_64 = arith.constant 0 : index
    %123 = vector.load %arg2[%c7, %c0_63, %c0_64] : memref<10x16x16xbf16, #tpu.memory_space<vmem>>, vector<1x16x16xbf16>
    %124 = vector.shape_cast %123 : vector<1x16x16xbf16> to vector<16x16xbf16>
    %125 = arith.truncf %122 : vector<16x2048xf32> to vector<16x2048xbf16>
    %cst_65 = arith.constant dense<0.000000e+00> : vector<16x2048xf32>
    %126 = tpu.matmul %124, %125, %cst_65 {dimension_numbers = #tpu.dot_dimension_numbers<[1], [0], [0], [1], [0, 0, 1, 1], [], []>} : vector<16x16xbf16>, vector<16x2048xbf16>, vector<16x2048xf32> -> vector<16x2048xf32>
    %c7_66 = arith.constant 7 : index
    %c0_67 = arith.constant 0 : index
    %c0_68 = arith.constant 0 : index
    %127 = vector.load %arg3[%c7_66, %c0_67, %c0_68] : memref<10x16x1xf32, #tpu.memory_space<vmem>>, vector<1x16x1xf32>
    %128 = vector.shape_cast %127 : vector<1x16x1xf32> to vector<16x1xf32>
    %129 = vector.broadcast %128 : vector<16x1xf32> to vector<16x2048xf32>
    %130 = arith.addf %126, %129 : vector<16x2048xf32>
    %cst_69 = arith.constant 5.000000e-01 : f32
    %131 = vector.broadcast %cst_69 : f32 to vector<16x2048xf32>
    %132 = arith.mulf %131, %130 : vector<16x2048xf32>
    %133 = math.tanh %132 : vector<16x2048xf32>
    %cst_70 = arith.constant 5.000000e-01 : f32
    %134 = vector.broadcast %cst_70 : f32 to vector<16x2048xf32>
    %135 = arith.mulf %134, %133 : vector<16x2048xf32>
    %cst_71 = arith.constant 5.000000e-01 : f32
    %136 = vector.broadcast %cst_71 : f32 to vector<16x2048xf32>
    %137 = arith.addf %135, %136 : vector<16x2048xf32>
    %138 = arith.mulf %130, %137 : vector<16x2048xf32>
    %c8 = arith.constant 8 : index
    %c0_72 = arith.constant 0 : index
    %c0_73 = arith.constant 0 : index
    %139 = vector.load %arg2[%c8, %c0_72, %c0_73] : memref<10x16x16xbf16, #tpu.memory_space<vmem>>, vector<1x16x16xbf16>
    %140 = vector.shape_cast %139 : vector<1x16x16xbf16> to vector<16x16xbf16>
    %141 = arith.truncf %138 : vector<16x2048xf32> to vector<16x2048xbf16>
    %cst_74 = arith.constant dense<0.000000e+00> : vector<16x2048xf32>
    %142 = tpu.matmul %140, %141, %cst_74 {dimension_numbers = #tpu.dot_dimension_numbers<[1], [0], [0], [1], [0, 0, 1, 1], [], []>} : vector<16x16xbf16>, vector<16x2048xbf16>, vector<16x2048xf32> -> vector<16x2048xf32>
    %c8_75 = arith.constant 8 : index
    %c0_76 = arith.constant 0 : index
    %c0_77 = arith.constant 0 : index
    %143 = vector.load %arg3[%c8_75, %c0_76, %c0_77] : memref<10x16x1xf32, #tpu.memory_space<vmem>>, vector<1x16x1xf32>
    %144 = vector.shape_cast %143 : vector<1x16x1xf32> to vector<16x1xf32>
    %145 = vector.broadcast %144 : vector<16x1xf32> to vector<16x2048xf32>
    %146 = arith.addf %142, %145 : vector<16x2048xf32>
    %cst_78 = arith.constant 5.000000e-01 : f32
    %147 = vector.broadcast %cst_78 : f32 to vector<16x2048xf32>
    %148 = arith.mulf %147, %146 : vector<16x2048xf32>
    %149 = math.tanh %148 : vector<16x2048xf32>
    %cst_79 = arith.constant 5.000000e-01 : f32
    %150 = vector.broadcast %cst_79 : f32 to vector<16x2048xf32>
    %151 = arith.mulf %150, %149 : vector<16x2048xf32>
    %cst_80 = arith.constant 5.000000e-01 : f32
    %152 = vector.broadcast %cst_80 : f32 to vector<16x2048xf32>
    %153 = arith.addf %151, %152 : vector<16x2048xf32>
    %154 = arith.mulf %146, %153 : vector<16x2048xf32>
    %c9 = arith.constant 9 : index
    %c0_81 = arith.constant 0 : index
    %c0_82 = arith.constant 0 : index
    %155 = vector.load %arg2[%c9, %c0_81, %c0_82] : memref<10x16x16xbf16, #tpu.memory_space<vmem>>, vector<1x16x16xbf16>
    %156 = vector.shape_cast %155 : vector<1x16x16xbf16> to vector<16x16xbf16>
    %157 = arith.truncf %154 : vector<16x2048xf32> to vector<16x2048xbf16>
    %cst_83 = arith.constant dense<0.000000e+00> : vector<16x2048xf32>
    %158 = tpu.matmul %156, %157, %cst_83 {dimension_numbers = #tpu.dot_dimension_numbers<[1], [0], [0], [1], [0, 0, 1, 1], [], []>} : vector<16x16xbf16>, vector<16x2048xbf16>, vector<16x2048xf32> -> vector<16x2048xf32>
    %c9_84 = arith.constant 9 : index
    %c0_85 = arith.constant 0 : index
    %c0_86 = arith.constant 0 : index
    %159 = vector.load %arg3[%c9_84, %c0_85, %c0_86] : memref<10x16x1xf32, #tpu.memory_space<vmem>>, vector<1x16x1xf32>
    %160 = vector.shape_cast %159 : vector<1x16x1xf32> to vector<16x1xf32>
    %161 = vector.broadcast %160 : vector<16x1xf32> to vector<16x2048xf32>
    %162 = arith.addf %158, %161 : vector<16x2048xf32>
    %163 = vector.extract_strided_slice %162 {offsets = [0, 0], sizes = [1, 2048], strides = [1, 1]} : vector<16x2048xf32> to vector<1x2048xf32>
    %c0_87 = arith.constant 0 : index
    %c0_88 = arith.constant 0 : index
    %164 = vector.load %arg4[%c0_87, %c0_88] : memref<1x2048xf32, #tpu.memory_space<vmem>>, vector<1x2048xf32>
    tpu.vector_store %arg4[%c0_87, %c0_88], %163 {strides = array<i32>} : memref<1x2048xf32, #tpu.memory_space<vmem>>, vector<1x2048xf32>,
    return
  }
  func.func @transform_0(%arg0: i32) -> (i32, i32) {
    %c0_i32 = arith.constant 0 : i32
    %c0_i32_0 = arith.constant 0 : i32
    return %c0_i32, %arg0 : i32, i32
  }
  func.func @transform_1(%arg0: i32) -> (i32, i32, i32) {
    %c0_i32 = arith.constant 0 : i32
    %c0_i32_0 = arith.constant 0 : i32
    %c0_i32_1 = arith.constant 0 : i32
    %c0_i32_2 = arith.constant 0 : i32
    return %c0_i32, %c0_i32_0, %c0_i32_1 : i32, i32, i32
  }
  func.func @transform_2(%arg0: i32) -> (i32, i32, i32) {
    %c0_i32 = arith.constant 0 : i32
    %c0_i32_0 = arith.constant 0 : i32
    %c0_i32_1 = arith.constant 0 : i32
    %c0_i32_2 = arith.constant 0 : i32
    return %c0_i32, %c0_i32_0, %c0_i32_1 : i32, i32, i32
  }
  func.func @transform_3(%arg0: i32) -> (i32, i32) {
    %c0_i32 = arith.constant 0 : i32
    %c0_i32_0 = arith.constant 0 : i32
    return %c0_i32, %arg0 : i32, i32
  }
}

</mosaic_0001>

<bundles_post_ra>
// kernel: pinn_v_forward.1
= control target key start
LH: loop header
LB: loop body
LE: loop exit
PB: predicated region body
PF: predicated region fallthrough
CT: control target
= control target key end

     0   :  { %8 = vsyncpa [#allocation3], 0  ;;  %s8538_s0 = inlined_call_operand.vmem [shape: f32[2,4096], index: 0, kind: input, shape index: {}]   ;;  %s8539_s1 = inlined_call_operand.vmem [shape: bf16[10,16,16], index: 1, kind: input, shape index: {}]   ;;  %s8540_s2 = inlined_call_operand.vmem [shape: f32[10,16,1], index: 2, kind: input, shape index: {}]   ;;  %s8541_s3 = inlined_call_operand.hbm [shape: f32[1,4096], index: 3, kind: output, shape index: {}]  }
   0x1   :  { %10 = vsyncpa [#allocation3 + $0x1], 0  ;;  %s6564_s12 = smov 0   ;;  %s6566_s13 = smov 0  }
   0x2   :  { %s6568_s14 = smov 0   ;;  %s6570_s15 = smov 0  }
   0x3 LB: > { %s6585_s16 = sadd.s32 4294967295, %s6538_s15   ;;  %s5703_s17 = sadd.s32 4294967294, %s6538_s15   ;;  %s6538_s15 = sphi %s6570_s15, %s8547_s15   ;;  %s6534_s14 = sphi %s6568_s14, %s8546_s14   ;;  %s6530_s13 = sphi %s6566_s13, %s8545_s13   ;;  %s6526_s12 = sphi %s6564_s12, %s8544_s12  }
   0x4   : > { %s6589_s18 = sadd.s32 1, %s6538_s15   ;;  %s91_s19 = sadd.s32 1, %s6534_s14 }
   0x5   : > { %s88_s20 = ssub.s32 %s6538_s15, %s6589_s18  ;;  %p101_p0 = scmp.ne.s32.totalorder %s6534_s14, %s6530_s13 }
   0x6   : > { %p89_p1 = scmp.eq.s32.totalorder %s88_s20, 0  ;;  %p102_p2 = scmp.eq.s32.totalorder %s6585_s16, 1 }
   0x7   : > { %p107_p3 = scmp.ne.s32.totalorder %s6530_s13, %s6526_s12  ;;  %p108_p4 = scmp.eq.s32.totalorder %s5703_s17, 1 }
   0x8   : > { %s6600_s21 = scalar_select %p89_p1, %s6534_s14, %s91_s19  }
   0x9   : > { %p6602_p5 = por %p102_p2, %p101_p0  ;;  %p6606_p6 = por %p108_p4, %p107_p3 }
   0xa   : > { %p5706_p7 = scmp.ge.s32.totalorder %s6538_s15, 1  ;;  %p141_p8 = scmp.lt.s32.totalorder %s6538_s15, 3 }
   0xc   : > { %p142_p9 = pnand %p5706_p7, %p141_p8 }
   0xd   : > { %s5708_s30 = sshll.u32 (!%p142_p9), %s6585_s16, 4  ;;  %s162_s6 = sand.u32 (!%p142_p9), 1, %s6530_s13  }
   0xe   : > { %145 = sbr.rel (%p142_p9) target bundleno = 2312 (0x908), region = 32  ;;  %p166_p10 = scmp.lt.s32.totalorder (!%p142_p9), %s5708_s30, 31 }
   0xf   : > { %s5707_s7 = sshll.u32 (!%p142_p9), %s162_s6, 4  ;;  %s5832_s9 = sshll.u32 (!%p142_p9), %s6585_s16, 8 }
  0x10   : > { %s5630_s20 = scalar_lea.sflag (!%p142_p9), [#allocation3], %s162_s6  ;;  %s6543_s16 = smov (!%p142_p9), [#allocation2]  }
  0x11   : > { %s6482_s25 = sshll.u32 (!%p142_p9), %s6543_s16, 4  ;;  %s6483_s25 = int_to_ptr.vmem [resolvable:$false] %s6482_s25 }
  0x12   : > { %s6484_s26 = scalar_lea.vmem (!%p142_p9), %s6483_s25, 512 }
  0x13   : > { %v182_v0 = vld [vmem:[%s8540_s2 + $0x8] sm:$0xff]  ;;  %v5834_v1 = vld [vmem:[%s8539_s1] sm:$0xff]   ;;  %v6540_v2 = vmov 0   ;;  %v6541_v7 = vmov 1   ;;  %v5712_v8 = vld [vmem:[%s8540_s2 + $0x10] sm:$0xff]  ;;  %s8549_s30 = smov (!%p166_p10, %s5708_s30), 31  ;;  %v197_v19 = vlaneseq }
  0x14   : > { %5885 = vset.pattern.permute.xlu1 %v6540_v2  ;;  %5879 = vset.pattern.permute.xlu0 %v6540_v2  ;;  %v5835_v3 = vunpack.c.l.bf16 %v5834_v1  ;;  %v5836_v4 = vunpack.c.h.bf16 %v5834_v1  ;;  %v181_v6 = vld [vmem:[%s8540_s2] sm:$0xff]  ;;  %v5738_v10 = vld [vmem:[%s8540_s2 + $0x30] sm:$0xff]  ;;  %v5713_v17 = vld [vmem:[%s8540_s2 + $0x18] sm:$0xff]  ;;  %s5709_s8 = sshll.u32 %s8549_s30, 1  ;;  %vm828_vm0 = vcmask 130048  }
  0x15   : > { %380 = vperm.xlu1 %5885, %v182_v0   ;;  %864 = vmatprep.mubr.bf16.mxu0 %v6540_v2  ;;  %v5725_v9 = vld [vmem:[%s8540_s2 + $0x20] sm:$0xff]  ;;  %v5764_v12 = vld [vmem:[%s8540_s2 + $0x50] sm:$0xff]  ;;  %v5726_v18 = vld [vmem:[%s8540_s2 + $0x28] sm:$0xff]  ;;  %v6663_v21 = vshrl.u32 %v197_v19, 7  ;;  %s6668_s19 = scalar_lea.vmem %s8538_s0, %s5709_s8  ;;  %s8492_s8 = scalar_lea.vmem [#allocation2], %s5707_s7 }
  0x16   : > { %v5880_v5 = vpack.i.bf16 %v5836_v4, %v5835_v3  ;;  %907 = vmatprep.mubr.bf16.mxu1 %v6540_v2  ;;  %v5751_v11 = vld [vmem:[%s8540_s2 + $0x40] sm:$0xff]  ;;  %v5790_v14 = vld [vmem:[%s8540_s2 + $0x70] sm:$0xff]  ;;  %v5739_v20 = vld [vmem:[%s8540_s2 + $0x38] sm:$0xff]  ;;  %s5644_s10 = sshll.u32 %s8492_s8, 4  ;;  %s5645_s10 = int_to_ptr.vmem [resolvable:$true] %s5644_s10 }
  0x17   : > { %v5777_v13 = vld [vmem:[%s8540_s2 + $0x60] sm:$0xff]  ;;  %v5816_v16 = vld [vmem:[%s8540_s2 + $0x90] sm:$0xff]  ;;  %v5752_v22 = vld [vmem:[%s8540_s2 + $0x48] sm:$0xff]  ;;  %v6674_v23 = vsub.s32 2, %v6663_v21  ;;  %v6677_v24 = vsub.s32 3, %v6663_v21  ;;  %v6681_v26 = vsub.s32 0, %v6663_v21  ;;  %p6485_p0 = scmp.lt.s32.totalorder %s5645_s10, %s6483_s25 }
  0x18   : > { %5881 = vperm.xlu0 %5879, %v5880_v5   ;;  %v5803_v15 = vld [vmem:[%s8540_s2 + $0x80] sm:$0xff]  ;;  %v6684_v27 = vsub.s32 1, %v6663_v21  ;;  %v6687_v28 = vsub.s32 6, %v6663_v21  ;;  %v6690_v29 = vsub.s32 7, %v6663_v21  ;;  %v6693_v30 = vsub.s32 4, %v6663_v21  ;;  %v5765_v32 = vld [vmem:[%s8540_s2 + $0x58] sm:$0xff] }
  0x19   : > { %5886 = vset.pattern.permute.xlu1 %v6541_v7  ;;  %v173_v25 = vld [vmem:[%s6668_s19] sm:$0xff]  ;;  %v6696_v31 = vsub.s32 5, %v6663_v21  ;;  %v174_v35 = vld [vmem:[%s6668_s19 + $0x8] sm:$0xff]  ;;  %v175_v40 = vld [vmem:[%s6668_s19 + $0x10] sm:$0xff]  ;;  %s6478_s24 = scalar_lea.vmem %s5645_s10, 256 }
  0x1a   : > { %5888 = vperm.xlu1 %5886, %v5880_v5   ;;  %v204_v33 = vrot.slane %v173_v25, %v6674_v23  ;;  %v430_v34 = vrot.slane %v173_v25, %v6677_v24  ;;  %v212_v36 = vrot.slane %v173_v25, %v6687_v28  ;;  %v438_v37 = vrot.slane %v173_v25, %v6690_v29  ;;  %v5778_v45 = vld [vmem:[%s8540_s2 + $0x68] sm:$0xff]  ;;  %v5791_v62 = vld [vmem:[%s8540_s2 + $0x78] sm:$0xff]  ;;  %p6479_p11 = scmp.ne.s32.totalorder %s5645_s10, %s6478_s24  ;;  %p6486_p1 = scmp.lt.s32.totalorder %s6484_s26, %s6478_s24 }
  0x1b   : > { %v200_v38 = vrot.slane %v173_v25, %v6681_v26  ;;  %v426_v39 = vrot.slane %v173_v25, %v6684_v27  ;;  %v208_v41 = vrot.slane %v173_v25, %v6693_v30  ;;  %v434_v42 = vrot.slane %v173_v25, %v6696_v31  ;;  %v176_v4 = vld [vmem:[%s6668_s19 + $0x18] sm:$0xff]  ;;  %s5642_s19 = scalar_lea.hbm %s8541_s3, %s5832_s9 }
  0x1c   : > { %375 = vperm.xlu0 %5879, %v181_v6   ;;  %v220_v43 = vrot.slane %v174_v35, %v6674_v23  ;;  %v446_v44 = vrot.slane %v174_v35, %v6677_v24  ;;  %v6717_v46 = vrot.slane %v204_v33, %v6681_v26  ;;  %v6720_v47 = vrot.slane %v430_v34, %v6684_v27  ;;  %p6480_p12 = pnand %p6479_p11, %p6602_p5  ;;  %p6487_p2 = por %p6486_p1, %p6485_p0 }
  0x1d   : > { %v228_v48 = vrot.slane %v174_v35, %v6687_v28  ;;  %v216_v49 = vrot.slane %v174_v35, %v6681_v26  ;;  %v454_v50 = vrot.slane %v174_v35, %v6690_v29  ;;  %v442_v51 = vrot.slane %v174_v35, %v6684_v27 }
  0x1e   : > { %5892 = vset.pattern.permute.xlu1 %v6540_v2  ;;  %v224_v52 = vrot.slane %v174_v35, %v6693_v30  ;;  %v236_v53 = vrot.slane %v175_v40, %v6674_v23  ;;  %v6729_v54 = vrot.slane %v212_v36, %v6681_v26  ;;  %v6732_v55 = vrot.slane %v438_v37, %v6684_v27  ;;  %p6481_p13 = pneg %p6480_p12 }
  0x1f   : > { %820 = vperm.xlu1 %5892, %v5713_v17   ;;  %v6735_v56 = vrot.slane %v200_v38, %v6681_v26  ;;  %v6738_v57 = vrot.slane %v426_v39, %v6684_v27  ;;  %v6741_v58 = vrot.slane %v208_v41, %v6681_v26  ;;  %v6744_v59 = vrot.slane %v434_v42, %v6684_v27  ;;  %v5804_v17 = vld [vmem:[%s8540_s2 + $0x88] sm:$0xff] }
  0x20   : > { %815 = vperm.xlu0 %5879, %v5712_v8   ;;  %v6747_v60 = vrot.slane %v220_v43, %v6681_v26  ;;  %v6750_v61 = vrot.slane %v446_v44, %v6684_v27  ;;  %v6756_v63 = vrot.slane %v228_v48, %v6681_v26  ;;  %v6759_v0 = vrot.slane %v216_v49, %v6681_v26  ;;  %p6488_p3 = pnand %p6487_p2, %p6481_p13 }
  0x21   : > { %v450_v1 = vrot.slane %v174_v35, %v6696_v31  ;;  %v244_v3 = vrot.slane %v175_v40, %v6687_v28  ;;  %v6765_v5 = vrot.slane %v454_v50, %v6684_v27  ;;  %v6768_v6 = vrot.slane %v442_v51, %v6684_v27 }
  0x22   : > { %v6771_v7 = vrot.slane %v224_v52, %v6681_v26  ;;  %v6774_v8 = vrot.slane %v236_v53, %v6681_v26  ;;  %v248_v25 = vrot.slane %v176_v4, %v6681_v26  ;;  %v482_v33 = vrot.slane %v176_v4, %v6696_v31 }
  0x23   : > { %1365 = vperm.xlu1 %5892, %v5726_v18   ;;  %v6790_v19 = vrot.slane %v450_v1, %v6684_v27 }
  0x24   : > { %1360 = vperm.xlu0 %5879, %v5725_v9   ;;  %v462_v9 = vrot.slane %v175_v40, %v6677_v24  ;;  %v6833_v42 = vrot.slane %v248_v25, %v6681_v26  ;;  %v6845_v49 = vrot.slane %v482_v33, %v6684_v27 }
  0x26   : > { %v6802_v34 = vrot.slane %v462_v9, %v6684_v27 }
  0x27   : > { %1909 = vperm.xlu1 %5892, %v5739_v20   ;;  %v6793_v20 = vrot.slane %v244_v3, %v6681_v26 }
  0x28   : > { %1904 = vperm.xlu0 %5879, %v5738_v10   ;;  %v470_v10 = vrot.slane %v175_v40, %v6690_v29 }
  0x2a   : > { %v6805_v35 = vrot.slane %v470_v10, %v6684_v27 }
  0x2b   : > { %2453 = vperm.xlu1 %5892, %v5752_v22   ;;  %v478_v22 = vrot.slane %v176_v4, %v6677_v24 }
  0x2c   : > { %2448 = vperm.xlu0 %5879, %v5751_v11   ;;  %v232_v11 = vrot.slane %v175_v40, %v6681_v26 }
  0x2d   : > { %v6830_v41 = vrot.slane %v478_v22, %v6684_v27 }
  0x2e   : > { %v6808_v36 = vrot.slane %v232_v11, %v6681_v26 }
  0x2f   : > { %2997 = vperm.xlu1 %5892, %v5765_v32   ;;  %v256_v32 = vrot.slane %v176_v4, %v6693_v30 }
  0x30   : > { %2992 = vperm.xlu0 %5879, %v5764_v12   ;;  %v458_v12 = vrot.slane %v175_v40, %v6684_v27 }
  0x31   : > { %v6842_v48 = vrot.slane %v256_v32, %v6681_v26 }
  0x32   : > { %v6811_v24 = vrot.slane %v458_v12, %v6684_v27 }
  0x33   : > { %3541 = vperm.xlu1 %5892, %v5778_v45  }
  0x34   : > { %3536 = vperm.xlu0 %5879, %v5777_v13   ;;  %v240_v13 = vrot.slane %v175_v40, %v6693_v30 }
  0x36   : > { %v6814_v37 = vrot.slane %v240_v13, %v6681_v26 }
  0x37   : > { %4085 = vperm.xlu1 %5892, %v5791_v62  }
  0x38   : > { %4080 = vperm.xlu0 %5879, %v5790_v14   ;;  %v466_v14 = vrot.slane %v175_v40, %v6696_v31 }
  0x3a   : > { %v6817_v30 = vrot.slane %v466_v14, %v6684_v27 }
  0x3b   : > { %4629 = vperm.xlu1 %5892, %v5804_v17  }
  0x3c   : > { %4624 = vperm.xlu0 %5879, %v5803_v15   ;;  %v252_v15 = vrot.slane %v176_v4, %v6674_v23  ;;  %v486_v23 = vrot.slane %v176_v4, %v6690_v29 }
  0x3e   : > { %v6820_v31 = vrot.slane %v252_v15, %v6681_v26  ;;  %v6836_v44 = vrot.slane %v486_v23, %v6684_v27 }
  0x40   : > { %5168 = vperm.xlu0 %5879, %v5816_v16   ;;  %v260_v16 = vrot.slane %v176_v4, %v6687_v28  ;;  %v474_v28 = vrot.slane %v176_v4, %v6684_v27 }
  0x42   : > { %v6823_v38 = vrot.slane %v260_v16, %v6681_v26  ;;  %v6839_v45 = vrot.slane %v474_v28, %v6684_v27 }
  0x90   : > { %v6787_v18 = vpop.permute.xlu1 %380 }
  0x93   : > { %v5882_v29 = vpop.permute.xlu0 %5881 }
  0x94   : > { %v6825_v39 = vunpack.i.h.bf16 %v5882_v29  ;;  %v6827_v40 = vunpack.i.l.bf16 %v5882_v29 }
  0x95   : > { %v5889_v43 = vpop.permute.xlu1 %5888 }
  0x96   : > { %v6847_v50 = vunpack.i.h.bf16 %v5889_v43  ;;  %v6849_v51 = vunpack.i.l.bf16 %v5889_v43  ;;  %v342_v52 = vmul.f32 %v6827_v40, %v6717_v46  ;;  %v358_v53 = vmul.f32 %v6825_v39, %v6717_v46 }
  0x97   : > { %v6855_v62 = vpop.permute.xlu0 %375  ;;  %v344_v1 = vmul.f32 %v6827_v40, %v6729_v54  ;;  %v360_v26 = vmul.f32 %v6825_v39, %v6729_v54  ;;  %v341_v27 = vmul.f32 %v6827_v40, %v6735_v56  ;;  %v357_v3 = vmul.f32 %v6825_v39, %v6735_v56 }
  0x98   : > { %v384_v4 = vadd.f32 %v6855_v62, %v342_v52  ;;  %v400_v9 = vadd.f32 %v6787_v18, %v358_v53  ;;  %v568_v46 = vmul.f32 %v6849_v51, %v6720_v47  ;;  %v584_v10 = vmul.f32 %v6847_v50, %v6720_v47 }
  0x99   : > { %v386_v11 = vadd.f32 %v6855_v62, %v344_v1  ;;  %v402_v54 = vadd.f32 %v6787_v18, %v360_v26  ;;  %v570_v12 = vmul.f32 %v6849_v51, %v6732_v55  ;;  %v586_v56 = vmul.f32 %v6847_v50, %v6732_v55 }
  0x9a   : > { %v6877_v13 = vadd.f32 %v568_v46, %v384_v4  ;;  %v6879_v14 = vadd.f32 %v584_v10, %v400_v9  ;;  %v383_v15 = vadd.f32 %v6855_v62, %v341_v27  ;;  %v399_v16 = vadd.f32 %v6787_v18, %v357_v3 }
  0x9b   : > { %v6883_v17 = vadd.f32 %v570_v12, %v386_v11  ;;  %v6885_v47 = vadd.f32 %v586_v56, %v402_v54  ;;  %v567_v22 = vmul.f32 %v6849_v51, %v6738_v57  ;;  %v583_v25 = vmul.f32 %v6847_v50, %v6738_v57 }
  0x9c   : > { %v632_v55 = vmul.f32 0.5, %v6877_v13  ;;  %v648_v23 = vmul.f32 0.5, %v6879_v14  ;;  %v343_v28 = vmul.f32 %v6827_v40, %v6741_v58  ;;  %v359_v32 = vmul.f32 %v6825_v39, %v6741_v58 }
  0x9d   : > { %v634_v33 = vmul.f32 0.5, %v6883_v17  ;;  %v650_v29 = vmul.f32 0.5, %v6885_v47  ;;  %v6899_v43 = vadd.f32 %v567_v22, %v383_v15  ;;  %v6901_v52 = vadd.f32 %v583_v25, %v399_v16 }
  0x9e   : > { %5902 = vtanh.f32 %v632_v55  ;;  %v385_v57 = vadd.f32 %v6855_v62, %v343_v28  ;;  %v401_v53 = vadd.f32 %v6787_v18, %v359_v32  ;;  %v569_v1 = vmul.f32 %v6849_v51, %v6744_v59 }
  0x9f   : > { %5904 = vtanh.f32 %v648_v23  ;;  %v631_v26 = vmul.f32 0.5, %v6899_v43  ;;  %v647_v58 = vmul.f32 0.5, %v6901_v52  ;;  %v585_v27 = vmul.f32 %v6847_v50, %v6744_v59 }
  0xa0   : > { %5906 = vtanh.f32 %v634_v33  ;;  %v6911_v3 = vadd.f32 %v569_v1, %v385_v57  ;;  %v346_v4 = vmul.f32 %v6827_v40, %v6747_v60  ;;  %v362_v9 = vmul.f32 %v6825_v39, %v6747_v60 }
  0xa1   : > { %5908 = vtanh.f32 %v650_v29  ;;  %v6917_v46 = vadd.f32 %v585_v27, %v401_v53  ;;  %v572_v10 = vmul.f32 %v6849_v51, %v6750_v61  ;;  %v588_v11 = vmul.f32 %v6847_v50, %v6750_v61 }
  0xa2   : > { %5910 = vtanh.f32 %v631_v26  ;;  %v633_v59 = vmul.f32 0.5, %v6911_v3  ;;  %v388_v54 = vadd.f32 %v6855_v62, %v346_v4  ;;  %v404_v12 = vadd.f32 %v6787_v18, %v362_v9 }
  0xa3   : > { %5912 = vtanh.f32 %v647_v58  ;;  %v649_v56 = vmul.f32 0.5, %v6917_v46  ;;  %v348_v60 = vmul.f32 %v6827_v40, %v6756_v63  ;;  %v364_v15 = vmul.f32 %v6825_v39, %v6756_v63 }
  0xa4   : > { %5914 = vtanh.f32 %v633_v59  ;;  %v6931_v16 = vadd.f32 %v572_v10, %v388_v54  ;;  %v6933_v61 = vadd.f32 %v588_v11, %v404_v12  ;;  %v574_v22 = vmul.f32 %v6849_v51, %v6765_v5 }
  0xa5   : > { %5916 = vtanh.f32 %v649_v56  ;;  %v390_v25 = vadd.f32 %v6855_v62, %v348_v60  ;;  %v406_v55 = vadd.f32 %v6787_v18, %v364_v15  ;;  %v590_v23 = vmul.f32 %v6847_v50, %v6765_v5 }
  0xa6   : > { %v636_v28 = vmul.f32 0.5, %v6931_v16  ;;  %v652_v63 = vmul.f32 0.5, %v6933_v61  ;;  %v345_v32 = vmul.f32 %v6827_v40, %v6759_v0  ;;  %v361_v33 = vmul.f32 %v6825_v39, %v6759_v0 }
  0xa7   : > { %v6947_v29 = vadd.f32 %v574_v22, %v390_v25  ;;  %v6949_v57 = vadd.f32 %v590_v23, %v406_v55  ;;  %v571_v53 = vmul.f32 %v6849_v51, %v6768_v6  ;;  %v587_v5 = vmul.f32 %v6847_v50, %v6768_v6 }
  0xa8   : > { %5918 = vtanh.f32 %v636_v28  ;;  %v387_v1 = vadd.f32 %v6855_v62, %v345_v32  ;;  %v403_v26 = vadd.f32 %v6787_v18, %v361_v33  ;;  %v347_v58 = vmul.f32 %v6827_v40, %v6771_v7 }
  0xa9   : > { %5920 = vtanh.f32 %v652_v63  ;;  %v638_v0 = vmul.f32 0.5, %v6947_v29  ;;  %v654_v27 = vmul.f32 0.5, %v6949_v57  ;;  %v363_v4 = vmul.f32 %v6825_v39, %v6771_v7 }
  0xaa   : > { %v6963_v9 = vadd.f32 %v571_v53, %v387_v1  ;;  %v6965_v10 = vadd.f32 %v587_v5, %v403_v26  ;;  %v389_v6 = vadd.f32 %v6855_v62, %v347_v58  ;;  %v573_v11 = vmul.f32 %v6849_v51, %v6790_v19 }
  0xab   : > { %v5903_v59 = vpop.eup %5902  ;;  %5922 = vtanh.f32 %v638_v0  ;;  %v405_v54 = vadd.f32 %v6787_v18, %v363_v4  ;;  %v589_v12 = vmul.f32 %v6847_v50, %v6790_v19  ;;  %v350_v56 = vmul.f32 %v6827_v40, %v6774_v8 }
  0xac   : > { %v5905_v7 = vpop.eup %5904  ;;  %v696_v60 = vmul.f32 0.5, %v5903_v59  ;;  %5924 = vtanh.f32 %v654_v27  ;;  %v635_v15 = vmul.f32 0.5, %v6963_v9  ;;  %v651_v22 = vmul.f32 0.5, %v6965_v10 }
  0xad   : > { %v5907_v25 = vpop.eup %5906  ;;  %v712_v55 = vmul.f32 0.5, %v5905_v7  ;;  %v6977_v23 = vadd.f32 %v573_v11, %v389_v6  ;;  %v6979_v28 = vadd.f32 %v589_v12, %v405_v54  ;;  %v366_v63 = vmul.f32 %v6825_v39, %v6774_v8 }
  0xae   : > { %v5909_v19 = vpop.eup %5908  ;;  %v728_v32 = vadd.f32 0.5, %v696_v60  ;;  %v698_v33 = vmul.f32 0.5, %v5907_v25  ;;  %5926 = vtanh.f32 %v635_v15  ;;  %v392_v53 = vadd.f32 %v6855_v62, %v350_v56 }
  0xaf   : > { %v5911_v5 = vpop.eup %5910  ;;  %v744_v1 = vadd.f32 0.5, %v712_v55  ;;  %v714_v26 = vmul.f32 0.5, %v5909_v19  ;;  %5928 = vtanh.f32 %v651_v22  ;;  %v637_v58 = vmul.f32 0.5, %v6977_v23 }
  0xb0   : > { %v5913_v0 = vpop.eup %5912  ;;  %v760_v27 = vmul.f32 %v728_v32, %v6877_v13  ;;  %v730_v4 = vadd.f32 0.5, %v698_v33  ;;  %v695_v6 = vmul.f32 0.5, %v5911_v5  ;;  %v653_v11 = vmul.f32 0.5, %v6979_v28 }
  0xb1   : > { %v5915_v8 = vpop.eup %5914  ;;  %v776_v59 = vmul.f32 %v744_v1, %v6879_v14  ;;  %v746_v54 = vadd.f32 0.5, %v714_v26  ;;  %v711_v12 = vmul.f32 0.5, %v5913_v0  ;;  %5930 = vtanh.f32 %v637_v58 }
  0xb2   : > { %v5917_v56 = vpop.eup %5916  ;;  %v762_v7 = vmul.f32 %v730_v4, %v6883_v17  ;;  %v727_v60 = vadd.f32 0.5, %v695_v6  ;;  %v697_v15 = vmul.f32 0.5, %v5915_v8  ;;  %5932 = vtanh.f32 %v653_v11 }
  0xb3   : > { %v795_v22 = vpack.c.bf16 %v776_v59, %v760_v27  ;;  %v778_v13 = vmul.f32 %v746_v54, %v6885_v47  ;;  %v743_v25 = vadd.f32 0.5, %v711_v12  ;;  %v713_v55 = vmul.f32 0.5, %v5917_v56 }
  0xb4   : > { %v759_v19 = vmul.f32 %v727_v60, %v6899_v43  ;;  %v729_v32 = vadd.f32 0.5, %v697_v15  ;;  %v408_v14 = vadd.f32 %v6787_v18, %v366_v63  ;;  %v576_v33 = vmul.f32 %v6849_v51, %v6802_v34 }
  0xb5   : > { %v5919_v5 = vpop.eup %5918  ;;  %846 = vmatprep.subr.bf16.mxu0 %v795_v22  ;;  %v797_v1 = vpack.c.bf16 %v778_v13, %v762_v7  ;;  %v775_v17 = vmul.f32 %v743_v25, %v6901_v52  ;;  %v745_v26 = vadd.f32 0.5, %v713_v55  ;;  %v592_v58 = vmul.f32 %v6847_v50, %v6802_v34  ;;  %v7008_v34 = vld [vmem:[%s8539_s1 + $0x8] sm:$0xff]  }
  0xb6   : > { %v5921_v47 = vpop.eup %5920  ;;  %v761_v0 = vmul.f32 %v729_v32, %v6911_v3  ;;  %v700_v27 = vmul.f32 0.5, %v5919_v5  ;;  %v6998_v43 = vadd.f32 %v576_v33, %v392_v53  ;;  %v352_v63 = vmul.f32 %v6827_v40, %v6793_v20 }
  0xb7   : > { %889 = vmatprep.subr.bf16.mxu1 %v797_v1  ;;  %v794_v4 = vpack.c.bf16 %v775_v17, %v759_v19  ;;  %v777_v6 = vmul.f32 %v745_v26, %v6917_v46  ;;  %v716_v11 = vmul.f32 0.5, %v5921_v47  ;;  %v7003_v8 = vadd.f32 %v592_v58, %v408_v14 }
  0xb8   : > { %v5923_v52 = vpop.eup %5922  ;;  %v732_v59 = vadd.f32 0.5, %v700_v27  ;;  %v640_v3 = vmul.f32 0.5, %v6998_v43  ;;  %v368_v53 = vmul.f32 %v6825_v39, %v6793_v20  ;;  %v394_v54 = vadd.f32 %v6855_v62, %v352_v63 }
  0xb9   : > { %v5925_v12 = vpop.eup %5924  ;;  %847 = vmatpush1.bf16.msra.mxu0 %v794_v4  ;;  %v796_v46 = vpack.c.bf16 %v777_v6, %v761_v0  ;;  %v748_v56 = vadd.f32 0.5, %v716_v11  ;;  %v702_v7 = vmul.f32 0.5, %v5923_v52  ;;  %v656_v60 = vmul.f32 0.5, %v7003_v8 }
  0xba   : > { %v764_v15 = vmul.f32 %v732_v59, %v6931_v16  ;;  %v718_v22 = vmul.f32 0.5, %v5925_v12  ;;  %5934 = vtanh.f32 %v640_v3  ;;  %v410_v13 = vadd.f32 %v6787_v18, %v368_v53 }
  0xbb   : > { %v5927_v25 = vpop.eup %5926  ;;  %890 = vmatpush1.bf16.msra.mxu1 %v796_v46  ;;  %v780_v55 = vmul.f32 %v748_v56, %v6933_v61  ;;  %v734_v20 = vadd.f32 0.5, %v702_v7  ;;  %5936 = vtanh.f32 %v656_v60  ;;  %v578_v19 = vmul.f32 %v6849_v51, %v6805_v35 }
  0xbc   : > { %v5929_v32 = vpop.eup %5928  ;;  %v750_v14 = vadd.f32 0.5, %v718_v22  ;;  %5715 = vmatmul.mubr.msk.bf16.vlgmr.msra.gmra.mxu0 %vm828_vm0, %v7008_v34  ;;  %v699_v33 = vmul.f32 0.5, %v5927_v25  ;;  %v594_v16 = vmul.f32 %v6847_v50, %v6805_v35  ;;  %v349_v5 = vmul.f32 %v6827_v40, %v6808_v36 }
  0xbd   : > { %v799_v1 = vpack.c.bf16 %v780_v55, %v764_v15  ;;  %v766_v61 = vmul.f32 %v734_v20, %v6947_v29  ;;  %v715_v17 = vmul.f32 0.5, %v5929_v32  ;;  %v7027_v26 = vadd.f32 %v578_v19, %v394_v54  ;;  %950 = vmatprep.mubr.bf16.mxu0 %v6540_v2 }
  0xbe   : > { %v5931_v58 = vpop.eup %5930  ;;  %v782_v47 = vmul.f32 %v750_v14, %v6949_v57  ;;  %5716 = vmatmul.mubr.msk.bf16.vlgmr.msra.gmra.mxu1 %vm828_vm0, %v7008_v34  ;;  %v731_v0 = vadd.f32 0.5, %v699_v33  ;;  %v7033_v27 = vadd.f32 %v594_v16, %v410_v13  ;;  %v365_v35 = vmul.f32 %v6825_v39, %v6808_v36 }
  0xbf   : > { %v5933_v63 = vpop.eup %5932  ;;  %932 = vmatprep.subr.bf16.mxu0 %v799_v1  ;;  %v747_v29 = vadd.f32 0.5, %v715_v17  ;;  %v701_v4 = vmul.f32 0.5, %v5931_v58  ;;  %v642_v6 = vmul.f32 0.5, %v7027_v26  ;;  %993 = vmatprep.mubr.bf16.mxu1 %v6540_v2  ;;  %v391_v11 = vadd.f32 %v6855_v62, %v349_v5 }
  0xc0   : > { %v801_v57 = vpack.c.bf16 %v782_v47, %v766_v61  ;;  %v763_v52 = vmul.f32 %v731_v0, %v6963_v9  ;;  %v717_v59 = vmul.f32 0.5, %v5933_v63  ;;  %v658_v3 = vmul.f32 0.5, %v7033_v27 }
  0xc1   : > { %v779_v53 = vmul.f32 %v747_v29, %v6965_v10  ;;  %v733_v54 = vadd.f32 0.5, %v701_v4  ;;  %5938 = vtanh.f32 %v642_v6  ;;  %v407_v36 = vadd.f32 %v6787_v18, %v365_v35 }
  0xc2   : > { %975 = vmatprep.subr.bf16.mxu1 %v801_v57  ;;  %v749_v12 = vadd.f32 0.5, %v717_v59  ;;  %5940 = vtanh.f32 %v658_v3  ;;  %v575_v46 = vmul.f32 %v6849_v51, %v6811_v24  ;;  %v591_v56 = vmul.f32 %v6847_v50, %v6811_v24 }
  0xc3   : > { %v798_v7 = vpack.c.bf16 %v779_v53, %v763_v52  ;;  %v765_v9 = vmul.f32 %v733_v54, %v6977_v23  ;;  %v351_v60 = vmul.f32 %v6827_v40, %v6814_v37  ;;  %v367_v10 = vmul.f32 %v6825_v39, %v6814_v37 }
  0xc4   : > { %v781_v15 = vmul.f32 %v749_v12, %v6979_v28  ;;  %v7054_v22 = vadd.f32 %v575_v46, %v391_v11  ;;  %v7056_v13 = vadd.f32 %v591_v56, %v407_v36  ;;  %v577_v25 = vmul.f32 %v6849_v51, %v6817_v30 }
  0xc5   : > { %933 = vmatpush1.bf16.msra.mxu0 %v798_v7  ;;  %v393_v24 = vadd.f32 %v6855_v62, %v351_v60  ;;  %v409_v23 = vadd.f32 %v6787_v18, %v367_v10  ;;  %v593_v55 = vmul.f32 %v6847_v50, %v6817_v30  ;;  %v354_v37 = vmul.f32 %v6827_v40, %v6820_v31 }
  0xc6   : > { %v800_v20 = vpack.c.bf16 %v781_v15, %v765_v9  ;;  %v639_v28 = vmul.f32 0.5, %v7054_v22  ;;  %v655_v19 = vmul.f32 0.5, %v7056_v13  ;;  %v370_v32 = vmul.f32 %v6825_v39, %v6820_v31 }
  0xc7   : > { %v5935_v14 = vpop.eup %5934  ;;  %v7070_v33 = vadd.f32 %v577_v25, %v393_v24  ;;  %v7072_v16 = vadd.f32 %v593_v55, %v409_v23  ;;  %v396_v5 = vadd.f32 %v6855_v62, %v354_v37  ;;  %v580_v30 = vmul.f32 %v6849_v51, %v6830_v41 }
  0xc8   : > { %v5937_v1 = vpop.eup %5936  ;;  %976 = vmatpush1.bf16.msra.mxu1 %v800_v20  ;;  %v704_v61 = vmul.f32 0.5, %v5935_v14  ;;  %5717 = vmatmul.mubr.msk.bf16.vlgmr.msra.gmra.mxu0 %vm828_vm0, %v7008_v34  ;;  %5942 = vtanh.f32 %v639_v28  ;;  %v412_v17 = vadd.f32 %v6787_v18, %v370_v32  ;;  %v596_v31 = vmul.f32 %v6847_v50, %v6830_v41 }
  0xc9   : > { %v720_v58 = vmul.f32 0.5, %v5937_v1  ;;  %5944 = vtanh.f32 %v655_v19  ;;  %v641_v47 = vmul.f32 0.5, %v7070_v33  ;;  %v657_v0 = vmul.f32 0.5, %v7072_v16  ;;  %1036 = vmatprep.mubr.bf16.mxu0 %v6540_v2 }
  0xca   : > { %v736_v35 = vadd.f32 0.5, %v704_v61  ;;  %v7085_v63 = vadd.f32 %v580_v30, %v396_v5  ;;  %v7087_v29 = vadd.f32 %v596_v31, %v412_v17  ;;  %v356_v4 = vmul.f32 %v6827_v40, %v6823_v38 }
  0xcb   : > { %v752_v6 = vadd.f32 0.5, %v720_v58  ;;  %5718 = vmatmul.mubr.msk.bf16.vlgmr.msra.gmra.mxu1 %vm828_vm0, %v7008_v34  ;;  %5946 = vtanh.f32 %v641_v47  ;;  %v372_v41 = vmul.f32 %v6825_v39, %v6823_v38  ;;  %v582_v11 = vmul.f32 %v6849_v51, %v6836_v44 }
  0xcc   : > { %v768_v57 = vmul.f32 %v736_v35, %v6998_v43  ;;  %5948 = vtanh.f32 %v657_v0  ;;  %v644_v52 = vmul.f32 0.5, %v7085_v63  ;;  %v660_v59 = vmul.f32 0.5, %v7087_v29  ;;  %1079 = vmatprep.mubr.bf16.mxu1 %v6540_v2 }
  0xcd   : > { %v784_v3 = vmul.f32 %v752_v6, %v7003_v8  ;;  %v398_v53 = vadd.f32 %v6855_v62, %v356_v4  ;;  %v414_v54 = vadd.f32 %v6787_v18, %v372_v41  ;;  %v598_v38 = vmul.f32 %v6847_v50, %v6836_v44 }
  0xce   : > { %v5939_v36 = vpop.eup %5938  ;;  %5950 = vtanh.f32 %v644_v52  ;;  %v353_v43 = vmul.f32 %v6827_v40, %v6833_v42  ;;  %v369_v12 = vmul.f32 %v6825_v39, %v6833_v42  ;;  %v579_v46 = vmul.f32 %v6849_v51, %v6839_v45 }
  0xcf   : > { %v5941_v56 = vpop.eup %5940  ;;  %v803_v8 = vpack.c.bf16 %v784_v3, %v768_v57  ;;  %v706_v7 = vmul.f32 0.5, %v5939_v36  ;;  %5952 = vtanh.f32 %v660_v59  ;;  %v7112_v9 = vadd.f32 %v582_v11, %v398_v53 }
  0xd0   : > { %v722_v60 = vmul.f32 0.5, %v5941_v56  ;;  %v7114_v10 = vadd.f32 %v598_v38, %v414_v54  ;;  %v395_v44 = vadd.f32 %v6855_v62, %v353_v43  ;;  %v411_v15 = vadd.f32 %v6787_v18, %v369_v12 }
  0xd1   : > { %1018 = vmatprep.subr.bf16.mxu0 %v803_v8  ;;  %v738_v25 = vadd.f32 0.5, %v706_v7  ;;  %v646_v42 = vmul.f32 0.5, %v7112_v9  ;;  %v595_v24 = vmul.f32 %v6847_v50, %v6839_v45  ;;  %v355_v23 = vmul.f32 %v6827_v40, %v6842_v48 }
  0xd2   : > { %v754_v55 = vadd.f32 0.5, %v722_v60  ;;  %v662_v37 = vmul.f32 0.5, %v7114_v10  ;;  %v7124_v20 = vadd.f32 %v579_v46, %v395_v44  ;;  %v371_v28 = vmul.f32 %v6825_v39, %v6842_v48 }
  0xd3   : > { %v770_v19 = vmul.f32 %v738_v25, %v7027_v26  ;;  %5954 = vtanh.f32 %v646_v42  ;;  %v7129_v32 = vadd.f32 %v595_v24, %v411_v15  ;;  %v397_v14 = vadd.f32 %v6855_v62, %v355_v23 }
  0xd4   : > { %v786_v45 = vmul.f32 %v754_v55, %v7033_v27  ;;  %5956 = vtanh.f32 %v662_v37  ;;  %v643_v40 = vmul.f32 0.5, %v7124_v20  ;;  %v413_v5 = vadd.f32 %v6787_v18, %v371_v28 }
  0xd5   : > { %v5943_v30 = vpop.eup %5942  ;;  %v659_v1 = vmul.f32 0.5, %v7129_v32  ;;  %v581_v39 = vmul.f32 %v6849_v51, %v6845_v49  ;;  %v597_v48 = vmul.f32 %v6847_v50, %v6845_v49 }
  0xd6   : > { %v5945_v26 = vpop.eup %5944  ;;  %v805_v61 = vpack.c.bf16 %v786_v45, %v770_v19  ;;  %v703_v17 = vmul.f32 0.5, %v5943_v30  ;;  %5958 = vtanh.f32 %v643_v40 }
  0xd7   : > { %v719_v62 = vmul.f32 0.5, %v5945_v26  ;;  %5960 = vtanh.f32 %v659_v1  ;;  %v7140_v27 = vadd.f32 %v581_v39, %v397_v14  ;;  %v7142_v31 = vadd.f32 %v597_v48, %v413_v5 }
  0xd8   : > { %v5947_v18 = vpop.eup %5946  ;;  %1061 = vmatprep.subr.bf16.mxu1 %v805_v61  ;;  %v735_v58 = vadd.f32 0.5, %v703_v17 }
  0xd9   : > { %v5949_v47 = vpop.eup %5948  ;;  %v751_v0 = vadd.f32 0.5, %v719_v62  ;;  %v705_v35 = vmul.f32 0.5, %v5947_v18  ;;  %v645_v51 = vmul.f32 0.5, %v7140_v27  ;;  %v661_v49 = vmul.f32 0.5, %v7142_v31  ;;  %v7182_v18 = vpop.permute.xlu1 %820 }
  0xda   : > { %v767_v50 = vmul.f32 %v735_v58, %v7054_v22  ;;  %v721_v4 = vmul.f32 0.5, %v5949_v47 }
  0xdb   : > { %v5951_v6 = vpop.eup %5950  ;;  %v783_v41 = vmul.f32 %v751_v0, %v7056_v13  ;;  %v737_v11 = vadd.f32 0.5, %v705_v35  ;;  %5962 = vtanh.f32 %v645_v51 }
  0xdc   : > { %v5953_v57 = vpop.eup %5952  ;;  %v753_v52 = vadd.f32 0.5, %v721_v4  ;;  %v708_v59 = vmul.f32 0.5, %v5951_v6  ;;  %5964 = vtanh.f32 %v661_v49 }
  0xdd   : > { %v802_v3 = vpack.c.bf16 %v783_v41, %v767_v50  ;;  %v769_v53 = vmul.f32 %v737_v11, %v7070_v33  ;;  %v724_v54 = vmul.f32 0.5, %v5953_v57 }
  0xde   : > { %v785_v38 = vmul.f32 %v753_v52, %v7072_v16  ;;  %v740_v36 = vadd.f32 0.5, %v708_v59 }
  0xdf   : > { %1019 = vmatpush1.bf16.msra.mxu0 %v802_v3  ;;  %v756_v43 = vadd.f32 0.5, %v724_v54 }
  0xe0   : > { %v5955_v22 = vpop.eup %5954  ;;  %v804_v12 = vpack.c.bf16 %v785_v38, %v769_v53  ;;  %v772_v46 = vmul.f32 %v740_v36, %v7085_v63 }
  0xe1   : > { %v5957_v13 = vpop.eup %5956  ;;  %v788_v56 = vmul.f32 %v756_v43, %v7087_v29  ;;  %v710_v8 = vmul.f32 0.5, %v5955_v22 }
  0xe2   : > { %1062 = vmatpush1.bf16.msra.mxu1 %v804_v12  ;;  %v726_v7 = vmul.f32 0.5, %v5957_v13  ;;  %5719 = vmatmul.mubr.msk.bf16.vlgmr.msra.gmra.mxu0 %vm828_vm0, %v7008_v34 }
  0xe3   : > { %v5959_v33 = vpop.eup %5958  ;;  %v807_v60 = vpack.c.bf16 %v788_v56, %v772_v46  ;;  %v742_v44 = vadd.f32 0.5, %v710_v8  ;;  %1122 = vmatprep.mubr.bf16.mxu0 %v6540_v2 }
  0xe4   : > { %v5961_v16 = vpop.eup %5960  ;;  %v758_v15 = vadd.f32 0.5, %v726_v7  ;;  %v707_v25 = vmul.f32 0.5, %v5959_v33 }
  0xe5   : > { %1104 = vmatprep.subr.bf16.mxu0 %v807_v60  ;;  %v774_v63 = vmul.f32 %v742_v44, %v7112_v9  ;;  %5720 = vmatmul.mubr.msk.bf16.vlgmr.msra.gmra.mxu1 %vm828_vm0, %v7008_v34  ;;  %v723_v29 = vmul.f32 0.5, %v5961_v16 }
  0xe6   : > { %v790_v42 = vmul.f32 %v758_v15, %v7114_v10  ;;  %v739_v24 = vadd.f32 0.5, %v707_v25  ;;  %1165 = vmatprep.mubr.bf16.mxu1 %v6540_v2 }
  0xe7   : > { %v755_v23 = vadd.f32 0.5, %v723_v29 }
  0xe8   : > { %v5963_v55 = vpop.eup %5962  ;;  %v809_v37 = vpack.c.bf16 %v790_v42, %v774_v63  ;;  %v771_v28 = vmul.f32 %v739_v24, %v7124_v20  ;;  %v7170_v20 = vpop.permute.xlu0 %815 }
  0xe9   : > { %v5965_v19 = vpop.eup %5964  ;;  %v787_v14 = vmul.f32 %v755_v23, %v7129_v32  ;;  %v709_v45 = vmul.f32 0.5, %v5963_v55 }
  0xea   : > { %1147 = vmatprep.subr.bf16.mxu1 %v809_v37  ;;  %v725_v9 = vmul.f32 0.5, %v5965_v19 }
  0xeb   : > { %v806_v40 = vpack.c.bf16 %v787_v14, %v771_v28  ;;  %v741_v5 = vadd.f32 0.5, %v709_v45 }
  0xec   : > { %v757_v30 = vadd.f32 0.5, %v725_v9 }
  0xed   : > { %1105 = vmatpush1.bf16.msra.mxu0 %v806_v40  ;;  %v773_v10 = vmul.f32 %v741_v5, %v7140_v27 }
  0xee   : > { %v789_v1 = vmul.f32 %v757_v30, %v7142_v31 }
  0xf0   : > { %v808_v39 = vpack.c.bf16 %v789_v1, %v773_v10  ;;  %5721 = vmatmul.mubr.msk.bf16.vlgmr.msra.gmra.mxu0 %vm828_vm0, %v7008_v34 }
  0xf1   : > { %1408 = vmatprep.mubr.bf16.mxu0 %v6540_v2 }
  0xf2   : > { %1148 = vmatpush1.bf16.msra.mxu1 %v808_v39 }
  0xf5   : > { %5722 = vmatmul.mubr.msk.bf16.vlgmr.msra.gmra.mxu1 %vm828_vm0, %v7008_v34 }
  0xf6   : > { %1451 = vmatprep.mubr.bf16.mxu1 %v6540_v2 }
 0x17c   : > { %v866_v32 = vpop.f32.mrf.mxu0 }
 0x17d   : > { %v7173_v48 = vadd.f32 %v866_v32, %v7170_v20 }
 0x17e   : > { %v909_v26 = vpop.f32.mrf.mxu1  ;;  %v868_v61 = vpop.f32.mrf.mxu0 }
 0x17f   : > { %v1176_v17 = vmul.f32 0.5, %v7173_v48  ;;  %v7177_v62 = vadd.f32 %v909_v26, %v7170_v20  ;;  %v7180_v27 = vadd.f32 %v868_v61, %v7170_v20 }
 0x180   : > { %v911_v31 = vpop.f32.mrf.mxu1  ;;  %v870_v34 = vpop.f32.mrf.mxu0 }
 0x181   : > { %v1178_v58 = vmul.f32 0.5, %v7177_v62  ;;  %v1177_v47 = vmul.f32 0.5, %v7180_v27  ;;  %v7187_v0 = vadd.f32 %v911_v31, %v7170_v20  ;;  %5966 = vtanh.f32 %v1176_v17 }
 0x182   : > { %v7190_v35 = vadd.f32 %v870_v34, %v7182_v18  ;;  %v913_v51 = vpop.f32.mrf.mxu1  ;;  %v872_v49 = vpop.f32.mrf.mxu0 }
 0x183   : > { %5968 = vtanh.f32 %v1178_v58  ;;  %v1179_v50 = vmul.f32 0.5, %v7187_v0  ;;  %v7194_v4 = vadd.f32 %v913_v51, %v7182_v18  ;;  %v7197_v6 = vadd.f32 %v872_v49, %v7182_v18 }
 0x184   : > { %5970 = vtanh.f32 %v1177_v47  ;;  %v1192_v41 = vmul.f32 0.5, %v7190_v35  ;;  %v915_v11 = vpop.f32.mrf.mxu1 }
 0x185   : > { %5972 = vtanh.f32 %v1179_v50  ;;  %v1194_v57 = vmul.f32 0.5, %v7194_v4  ;;  %v1193_v52 = vmul.f32 0.5, %v7197_v6  ;;  %v7203_v59 = vadd.f32 %v915_v11, %v7182_v18 }
 0x186   : > { %5974 = vtanh.f32 %v1192_v41 }
 0x187   : > { %5976 = vtanh.f32 %v1194_v57  ;;  %v1195_v3 = vmul.f32 0.5, %v7203_v59 }
 0x188   : > { %5978 = vtanh.f32 %v1193_v52  ;;  %v952_v53 = vpop.f32.mrf.mxu0 }
 0x189   : > { %5980 = vtanh.f32 %v1195_v3  ;;  %v7207_v54 = vadd.f32 %v952_v53, %v7170_v20 }
 0x18a   : > { %v954_v38 = vpop.f32.mrf.mxu0 }
 0x18b   : > { %v1180_v36 = vmul.f32 0.5, %v7207_v54  ;;  %v995_v43 = vpop.f32.mrf.mxu1  ;;  %v7211_v22 = vadd.f32 %v954_v38, %v7170_v20 }
 0x18c   : > { %v7214_v12 = vadd.f32 %v995_v43, %v7170_v20  ;;  %v956_v46 = vpop.f32.mrf.mxu0 }
 0x18d   : > { %5982 = vtanh.f32 %v1180_v36  ;;  %v1181_v13 = vmul.f32 0.5, %v7211_v22  ;;  %v997_v56 = vpop.f32.mrf.mxu1  ;;  %v7218_v8 = vadd.f32 %v956_v46, %v7182_v18 }
 0x18e   : > { %v1182_v7 = vmul.f32 0.5, %v7214_v12  ;;  %v7222_v33 = vadd.f32 %v997_v56, %v7170_v20  ;;  %v958_v60 = vpop.f32.mrf.mxu0  ;;  %v5967_v44 = vpop.eup %5966 }
 0x18f   : > { %5984 = vtanh.f32 %v1181_v13  ;;  %v1196_v16 = vmul.f32 0.5, %v7218_v8  ;;  %v999_v15 = vpop.f32.mrf.mxu1  ;;  %v7226_v25 = vadd.f32 %v958_v60, %v7182_v18  ;;  %v1240_v9 = vmul.f32 0.5, %v5967_v44 }
 0x190   : > { %v5969_v63 = vpop.eup %5968  ;;  %5986 = vtanh.f32 %v1182_v7  ;;  %v1183_v29 = vmul.f32 0.5, %v7222_v33  ;;  %v7230_v42 = vadd.f32 %v999_v15, %v7182_v18 }
 0x191   : > { %v5971_v24 = vpop.eup %5970  ;;  %5988 = vtanh.f32 %v1196_v16  ;;  %v1197_v23 = vmul.f32 0.5, %v7226_v25  ;;  %v1001_v55 = vpop.f32.mrf.mxu1  ;;  %v1242_v30 = vmul.f32 0.5, %v5969_v63  ;;  %v1272_v34 = vadd.f32 0.5, %v1240_v9 }
 0x192   : > { %v5973_v37 = vpop.eup %5972  ;;  %v1241_v28 = vmul.f32 0.5, %v5971_v24  ;;  %5990 = vtanh.f32 %v1183_v29  ;;  %v1198_v19 = vmul.f32 0.5, %v7230_v42  ;;  %v7235_v14 = vadd.f32 %v1001_v55, %v7182_v18 }
 0x193   : > { %v5975_v45 = vpop.eup %5974  ;;  %v1243_v40 = vmul.f32 0.5, %v5973_v37  ;;  %5992 = vtanh.f32 %v1197_v23  ;;  %v1274_v49 = vadd.f32 0.5, %v1242_v30  ;;  %v1304_v38 = vmul.f32 %v1272_v34, %v7173_v48  ;;  %v7249_v48 = vld [vmem:[%s8539_s1 + $0x10] sm:$0xff]  }
 0x194   : > { %v5977_v5 = vpop.eup %5976  ;;  %v1256_v10 = vmul.f32 0.5, %v5975_v45  ;;  %5994 = vtanh.f32 %v1198_v19  ;;  %v1199_v1 = vmul.f32 0.5, %v7235_v14  ;;  %v1273_v61 = vadd.f32 0.5, %v1241_v28 }
 0x195   : > { %v5979_v39 = vpop.eup %5978  ;;  %v1258_v32 = vmul.f32 0.5, %v5977_v5  ;;  %v1275_v58 = vadd.f32 0.5, %v1243_v40  ;;  %v1306_v13 = vmul.f32 %v1274_v49, %v7177_v62 }
 0x196   : > { %v5981_v26 = vpop.eup %5980  ;;  %v1288_v17 = vadd.f32 0.5, %v1256_v10  ;;  %v1257_v31 = vmul.f32 0.5, %v5979_v39  ;;  %5996 = vtanh.f32 %v1199_v1  ;;  %v1305_v52 = vmul.f32 %v1273_v61, %v7180_v27 }
 0x197   : > { %v1290_v47 = vadd.f32 0.5, %v1258_v32  ;;  %v1259_v51 = vmul.f32 0.5, %v5981_v26  ;;  %v1307_v36 = vmul.f32 %v1275_v58, %v7187_v0 }
 0x198   : > { %v1289_v50 = vadd.f32 0.5, %v1257_v31  ;;  %v1320_v41 = vmul.f32 %v1288_v17, %v7190_v35 }
 0x199   : > { %v1291_v11 = vadd.f32 0.5, %v1259_v51  ;;  %v1322_v3 = vmul.f32 %v1290_v47, %v7194_v4 }
 0x19a   : > { %v5983_v57 = vpop.eup %5982  ;;  %v1321_v53 = vmul.f32 %v1289_v50, %v7197_v6  ;;  %v1339_v60 = vpack.c.bf16 %v1320_v41, %v1304_v38 }
 0x19b   : > { %v1323_v43 = vmul.f32 %v1291_v11, %v7203_v59  ;;  %v1244_v56 = vmul.f32 0.5, %v5983_v57  ;;  %v1341_v15 = vpack.c.bf16 %v1322_v3, %v1306_v13 }
 0x19c   : > { %v5985_v46 = vpop.eup %5984  ;;  %v1340_v7 = vpack.c.bf16 %v1321_v53, %v1305_v52 }
 0x19d   : > { %v5987_v35 = vpop.eup %5986  ;;  %v1245_v44 = vmul.f32 0.5, %v5985_v46  ;;  %v1342_v16 = vpack.c.bf16 %v1323_v43, %v1307_v36  ;;  %v1276_v62 = vadd.f32 0.5, %v1244_v56 }
 0x19e   : > { %v5989_v27 = vpop.eup %5988  ;;  %1390 = vmatprep.subr.bf16.mxu0 %v1340_v7  ;;  %v1246_v59 = vmul.f32 0.5, %v5987_v35 }
 0x19f   : > { %v5991_v0 = vpop.eup %5990  ;;  %v1260_v4 = vmul.f32 0.5, %v5989_v27  ;;  %1433 = vmatprep.subr.bf16.mxu1 %v1342_v16  ;;  %1391 = vmatpush1.bf16.msra.mxu0 %v1339_v60  ;;  %v1277_v24 = vadd.f32 0.5, %v1245_v44  ;;  %v1308_v30 = vmul.f32 %v1276_v62, %v7207_v54 }
 0x1a0   : > { %v5993_v6 = vpop.eup %5992  ;;  %v1247_v63 = vmul.f32 0.5, %v5991_v0  ;;  %1434 = vmatpush1.bf16.msra.mxu1 %v1341_v15  ;;  %v1278_v10 = vadd.f32 0.5, %v1246_v59 }
 0x1a1   : > { %v5995_v29 = vpop.eup %5994  ;;  %v1292_v23 = vadd.f32 0.5, %v1260_v4  ;;  %v1261_v55 = vmul.f32 0.5, %v5993_v6  ;;  %v1309_v26 = vmul.f32 %v1277_v24, %v7211_v22 }
 0x1a2   : > { %v1279_v37 = vadd.f32 0.5, %v1247_v63  ;;  %v1262_v28 = vmul.f32 0.5, %v5995_v29  ;;  %v1038_v19 = vpop.f32.mrf.mxu0  ;;  %5728 = vmatmul.mubr.msk.bf16.vlgmr.msra.gmra.mxu0 %vm828_vm0, %v7249_v48  ;;  %v1310_v3 = vmul.f32 %v1278_v10, %v7214_v12 }
 0x1a3   : > { %v5997_v45 = vpop.eup %5996  ;;  %v1324_v9 = vmul.f32 %v1292_v23, %v7218_v8  ;;  %v1293_v40 = vadd.f32 0.5, %v1261_v55  ;;  %v7255_v5 = vadd.f32 %v1038_v19, %v7170_v20  ;;  %5729 = vmatmul.mubr.msk.bf16.vlgmr.msra.gmra.mxu1 %vm828_vm0, %v7249_v48  ;;  %1494 = vmatprep.mubr.bf16.mxu0 %v6540_v2 }
 0x1a4   : > { %v1294_v1 = vadd.f32 0.5, %v1262_v28  ;;  %v1263_v39 = vmul.f32 0.5, %v5997_v45  ;;  %v1040_v32 = vpop.f32.mrf.mxu0  ;;  %1537 = vmatprep.mubr.bf16.mxu1 %v6540_v2  ;;  %v1311_v34 = vmul.f32 %v1279_v37, %v7222_v33 }
 0x1a5   : > { %v1325_v8 = vmul.f32 %v1293_v40, %v7226_v25  ;;  %v1184_v61 = vmul.f32 0.5, %v7255_v5  ;;  %v1081_v17 = vpop.f32.mrf.mxu1  ;;  %v7266_v31 = vadd.f32 %v1040_v32, %v7170_v20  ;;  %v1343_v58 = vpack.c.bf16 %v1324_v9, %v1308_v30 }
 0x1a6   : > { %v1295_v54 = vadd.f32 0.5, %v1263_v39  ;;  %v7270_v47 = vadd.f32 %v1081_v17, %v7170_v20  ;;  %v1042_v51 = vpop.f32.mrf.mxu0  ;;  %v1326_v49 = vmul.f32 %v1294_v1, %v7230_v42 }
 0x1a7   : > { %v1185_v22 = vmul.f32 0.5, %v7266_v31  ;;  %v1083_v50 = vpop.f32.mrf.mxu1  ;;  %v7275_v25 = vadd.f32 %v1042_v51, %v7182_v18  ;;  %v1344_v41 = vpack.c.bf16 %v1325_v8, %v1309_v26  ;;  %5998 = vtanh.f32 %v1184_v61 }
 0x1a8   : > { %v1327_v11 = vmul.f32 %v1295_v54, %v7235_v14  ;;  %v1186_v33 = vmul.f32 0.5, %v7270_v47  ;;  %v7280_v57 = vadd.f32 %v1083_v50, %v7170_v20  ;;  %v1044_v52 = vpop.f32.mrf.mxu0  ;;  %v1345_v46 = vpack.c.bf16 %v1326_v49, %v1310_v3 }
 0x1a9   : > { %6000 = vtanh.f32 %v1185_v22  ;;  %v1200_v42 = vmul.f32 0.5, %v7275_v25  ;;  %v1085_v53 = vpop.f32.mrf.mxu1  ;;  %v7285_v38 = vadd.f32 %v1044_v52, %v7182_v18  ;;  %1476 = vmatprep.subr.bf16.mxu0 %v1344_v41 }
 0x1aa   : > { %6002 = vtanh.f32 %v1186_v33  ;;  %v1187_v14 = vmul.f32 0.5, %v7280_v57  ;;  %v7289_v36 = vadd.f32 %v1085_v53, %v7182_v18  ;;  %v1346_v43 = vpack.c.bf16 %v1327_v11, %v1311_v34  ;;  %1477 = vmatpush1.bf16.msra.mxu0 %v1343_v58 }
 0x1ab   : > { %6004 = vtanh.f32 %v1200_v42  ;;  %v1201_v12 = vmul.f32 0.5, %v7285_v38  ;;  %v1087_v13 = vpop.f32.mrf.mxu1 }
 0x1ac   : > { %6006 = vtanh.f32 %v1187_v14  ;;  %v1202_v56 = vmul.f32 0.5, %v7289_v36  ;;  %v7294_v7 = vadd.f32 %v1087_v13, %v7182_v18  ;;  %1519 = vmatprep.subr.bf16.mxu1 %v1346_v43 }
 0x1ad   : > { %6008 = vtanh.f32 %v1201_v12  ;;  %1520 = vmatpush1.bf16.msra.mxu1 %v1345_v46  ;;  %5730 = vmatmul.mubr.msk.bf16.vlgmr.msra.gmra.mxu0 %vm828_vm0, %v7249_v48 }
 0x1ae   : > { %6010 = vtanh.f32 %v1202_v56  ;;  %v1203_v35 = vmul.f32 0.5, %v7294_v7  ;;  %1580 = vmatprep.mubr.bf16.mxu0 %v6540_v2 }
 0x1b0   : > { %6012 = vtanh.f32 %v1203_v35  ;;  %v1124_v60 = vpop.f32.mrf.mxu0  ;;  %5731 = vmatmul.mubr.msk.bf16.vlgmr.msra.gmra.mxu1 %vm828_vm0, %v7249_v48 }
 0x1b1   : > { %v7303_v44 = vadd.f32 %v1124_v60, %v7170_v20  ;;  %1623 = vmatprep.mubr.bf16.mxu1 %v6540_v2 }
 0x1b2   : > { %v1126_v16 = vpop.f32.mrf.mxu0 }
 0x1b3   : > { %v1188_v27 = vmul.f32 0.5, %v7303_v44  ;;  %v7308_v15 = vadd.f32 %v1126_v16, %v7170_v20 }
 0x1b4   : > { %v1128_v0 = vpop.f32.mrf.mxu0  ;;  %v5999_v4 = vpop.eup %5998 }
 0x1b5   : > { %v1167_v6 = vpop.f32.mrf.mxu1  ;;  %v1189_v62 = vmul.f32 0.5, %v7308_v15  ;;  %v7312_v59 = vadd.f32 %v1128_v0, %v7182_v18  ;;  %6014 = vtanh.f32 %v1188_v27  ;;  %v1248_v45 = vmul.f32 0.5, %v5999_v4 }
 0x1b6   : > { %v6001_v63 = vpop.eup %6000  ;;  %v7315_v29 = vadd.f32 %v1167_v6, %v7170_v20  ;;  %v1130_v24 = vpop.f32.mrf.mxu0 }
 0x1b7   : > { %v6003_v23 = vpop.eup %6002  ;;  %v1249_v55 = vmul.f32 0.5, %v6001_v63  ;;  %v1169_v37 = vpop.f32.mrf.mxu1  ;;  %v1204_v28 = vmul.f32 0.5, %v7312_v59  ;;  %6016 = vtanh.f32 %v1189_v62  ;;  %v7323_v39 = vadd.f32 %v1130_v24, %v7182_v18 }
 0x1b8   : > { %v6005_v19 = vpop.eup %6004  ;;  %v1190_v9 = vmul.f32 0.5, %v7315_v29  ;;  %v7320_v40 = vadd.f32 %v1169_v37, %v7170_v20  ;;  %v1250_v26 = vmul.f32 0.5, %v6003_v23  ;;  %v1280_v49 = vadd.f32 0.5, %v1248_v45 }
 0x1b9   : > { %v6007_v30 = vpop.eup %6006  ;;  %v1264_v10 = vmul.f32 0.5, %v6005_v19  ;;  %6018 = vtanh.f32 %v1204_v28  ;;  %v1171_v1 = vpop.f32.mrf.mxu1  ;;  %v1281_v8 = vadd.f32 0.5, %v1249_v55  ;;  %v1205_v52 = vmul.f32 0.5, %v7323_v39 }
 0x1ba   : > { %v6009_v32 = vpop.eup %6008  ;;  %v1251_v61 = vmul.f32 0.5, %v6007_v30  ;;  %v1191_v17 = vmul.f32 0.5, %v7320_v40  ;;  %6020 = vtanh.f32 %v1190_v9  ;;  %v7327_v20 = vadd.f32 %v1171_v1, %v7182_v18 }
 0x1bb   : > { %v6011_v34 = vpop.eup %6010  ;;  %v1296_v58 = vadd.f32 0.5, %v1264_v10  ;;  %v1265_v54 = vmul.f32 0.5, %v6009_v32  ;;  %v1173_v51 = vpop.f32.mrf.mxu1  ;;  %v1282_v43 = vadd.f32 0.5, %v1250_v26  ;;  %v1313_v46 = vmul.f32 %v1281_v8, %v7266_v31 }
 0x1bc   : > { %v1266_v22 = vmul.f32 0.5, %v6011_v34  ;;  %6022 = vtanh.f32 %v1191_v17  ;;  %v1283_v41 = vadd.f32 0.5, %v1251_v61  ;;  %v1206_v33 = vmul.f32 0.5, %v7327_v20 }
 0x1bd   : > { %v6013_v50 = vpop.eup %6012  ;;  %v1297_v11 = vadd.f32 0.5, %v1265_v54  ;;  %v1328_v3 = vmul.f32 %v1296_v58, %v7275_v25  ;;  %v1174_v14 = vadd.f32 %v1173_v51, %v7182_v18  ;;  %v1312_v13 = vmul.f32 %v1280_v49, %v7255_v5 }
 0x1be   : > { %v1298_v42 = vadd.f32 0.5, %v1266_v22  ;;  %v1267_v53 = vmul.f32 0.5, %v6013_v50  ;;  %6024 = vtanh.f32 %v1206_v33  ;;  %v1315_v25 = vmul.f32 %v1283_v41, %v7280_v57 }
 0x1bf   : > { %v1329_v12 = vmul.f32 %v1297_v11, %v7285_v38  ;;  %6026 = vtanh.f32 %v1205_v52  ;;  %v1207_v35 = vmul.f32 0.5, %v1174_v14  ;;  %v1347_v27 = vpack.c.bf16 %v1328_v3, %v1312_v13 }
 0x1c0   : > { %v1299_v56 = vadd.f32 0.5, %v1267_v53  ;;  %v1330_v60 = vmul.f32 %v1298_v42, %v7289_v36  ;;  %v1314_v18 = vmul.f32 %v1282_v43, %v7270_v47 }
 0x1c1   : > { %v1348_v16 = vpack.c.bf16 %v1329_v12, %v1313_v46  ;;  %6028 = vtanh.f32 %v1207_v35 }
 0x1c2   : > { %v1331_v0 = vmul.f32 %v1299_v56, %v7294_v7  ;;  %v6015_v31 = vpop.eup %6014  ;;  %v1349_v5 = vpack.c.bf16 %v1330_v60, %v1314_v18 }
 0x1c3   : > { %1562 = vmatprep.subr.bf16.mxu0 %v1348_v16  ;;  %v1252_v47 = vmul.f32 0.5, %v6015_v31 }
 0x1c4   : > { %v1350_v38 = vpack.c.bf16 %v1331_v0, %v1315_v25  ;;  %1563 = vmatpush1.bf16.msra.mxu0 %v1347_v27  ;;  %v6017_v4 = vpop.eup %6016 }
 0x1c5   : > { %v1253_v62 = vmul.f32 0.5, %v6017_v4  ;;  %v1284_v30 = vadd.f32 0.5, %v1252_v47 }
 0x1c6   : > { %v6019_v6 = vpop.eup %6018  ;;  %1605 = vmatprep.subr.bf16.mxu1 %v1350_v38 }
 0x1c7   : > { %1606 = vmatpush1.bf16.msra.mxu1 %v1349_v5  ;;  %5732 = vmatmul.mubr.msk.bf16.vlgmr.msra.gmra.mxu0 %vm828_vm0, %v7249_v48  ;;  %v6021_v36 = vpop.eup %6020  ;;  %v1268_v7 = vmul.f32 0.5, %v6019_v6  ;;  %v1285_v19 = vadd.f32 0.5, %v1253_v62  ;;  %v1316_v54 = vmul.f32 %v1284_v30, %v7303_v44  ;;  %v7359_v44 = vpop.permute.xlu0 %1360 }
 0x1c8   : > { %1666 = vmatprep.mubr.bf16.mxu0 %v6540_v2  ;;  %v1254_v55 = vmul.f32 0.5, %v6021_v36 }
 0x1c9   : > { %v6023_v57 = vpop.eup %6022  ;;  %v1300_v37 = vadd.f32 0.5, %v1268_v7  ;;  %v1317_v17 = vmul.f32 %v1285_v19, %v7308_v15 }
 0x1ca   : > { %5733 = vmatmul.mubr.msk.bf16.vlgmr.msra.gmra.mxu1 %vm828_vm0, %v7249_v48  ;;  %v1255_v24 = vmul.f32 0.5, %v6023_v57  ;;  %v1286_v8 = vadd.f32 0.5, %v1254_v55 }
 0x1cb   : > { %1709 = vmatprep.mubr.bf16.mxu1 %v6540_v2  ;;  %v6025_v63 = vpop.eup %6024  ;;  %v1332_v61 = vmul.f32 %v1300_v37, %v7312_v59 }
 0x1cc   : > { %v6027_v23 = vpop.eup %6026  ;;  %v1270_v28 = vmul.f32 0.5, %v6025_v63  ;;  %v1287_v1 = vadd.f32 0.5, %v1255_v24  ;;  %v1318_v41 = vmul.f32 %v1286_v8, %v7315_v29 }
 0x1cd   : > { %v1269_v45 = vmul.f32 0.5, %v6027_v23  ;;  %v1351_v11 = vpack.c.bf16 %v1332_v61, %v1316_v54 }
 0x1ce   : > { %v6029_v9 = vpop.eup %6028  ;;  %v1302_v10 = vadd.f32 0.5, %v1270_v28  ;;  %v1319_v49 = vmul.f32 %v1287_v1, %v7320_v40 }
 0x1cf   : > { %v1301_v32 = vadd.f32 0.5, %v1269_v45  ;;  %v1271_v26 = vmul.f32 0.5, %v6029_v9 }
 0x1d0   : > { %v1334_v51 = vmul.f32 %v1302_v10, %v7327_v20 }
 0x1d1   : > { %v1333_v34 = vmul.f32 %v1301_v32, %v7323_v39  ;;  %v1303_v58 = vadd.f32 0.5, %v1271_v26 }
 0x1d2   : > { %v1353_v52 = vpack.c.bf16 %v1334_v51, %v1318_v41 }
 0x1d3   : > { %v1335_v22 = vmul.f32 %v1303_v58, %v1174_v14  ;;  %v1352_v50 = vpack.c.bf16 %v1333_v34, %v1317_v17 }
 0x1d5   : > { %1648 = vmatprep.subr.bf16.mxu0 %v1352_v50  ;;  %v1354_v33 = vpack.c.bf16 %v1335_v22, %v1319_v49 }
 0x1d6   : > { %1649 = vmatpush1.bf16.msra.mxu0 %v1351_v11 }
 0x1d7   : > { %1691 = vmatprep.subr.bf16.mxu1 %v1354_v33 }
 0x1d8   : > { %1692 = vmatpush1.bf16.msra.mxu1 %v1353_v52 }
 0x1d9   : > { %5734 = vmatmul.mubr.msk.bf16.vlgmr.msra.gmra.mxu0 %vm828_vm0, %v7249_v48 }
 0x1da   : > { %1952 = vmatprep.mubr.bf16.mxu0 %v6540_v2 }
 0x1db   : > { %5735 = vmatmul.mubr.msk.bf16.vlgmr.msra.gmra.mxu1 %vm828_vm0, %v7249_v48  ;;  %v7371_v48 = vpop.permute.xlu1 %1365 }
 0x1dc   : > { %1995 = vmatprep.mubr.bf16.mxu1 %v6540_v2 }
 0x262   : > { %v1410_v15 = vpop.f32.mrf.mxu0 }
 0x263   : > { %v7362_v59 = vadd.f32 %v1410_v15, %v7359_v44  ;;  %v1453_v29 = vpop.f32.mrf.mxu1 }
 0x264   : > { %v7365_v40 = vadd.f32 %v1453_v29, %v7359_v44  ;;  %v1412_v39 = vpop.f32.mrf.mxu0 }
 0x265   : > { %v1720_v20 = vmul.f32 0.5, %v7362_v59  ;;  %v7369_v3 = vadd.f32 %v1412_v39, %v7359_v44  ;;  %v1455_v42 = vpop.f32.mrf.mxu1 }
 0x266   : > { %v1722_v53 = vmul.f32 0.5, %v7365_v40  ;;  %v7375_v14 = vadd.f32 %v1455_v42, %v7359_v44  ;;  %v1414_v43 = vpop.f32.mrf.mxu0 }
 0x267   : > { %6030 = vtanh.f32 %v1720_v20  ;;  %v1721_v46 = vmul.f32 0.5, %v7369_v3  ;;  %v7379_v12 = vadd.f32 %v1414_v43, %v7371_v48  ;;  %v1457_v13 = vpop.f32.mrf.mxu1 }
 0x268   : > { %6032 = vtanh.f32 %v1722_v53  ;;  %v1723_v56 = vmul.f32 0.5, %v7375_v14  ;;  %v7383_v35 = vadd.f32 %v1457_v13, %v7371_v48  ;;  %v1416_v60 = vpop.f32.mrf.mxu0 }
 0x269   : > { %6034 = vtanh.f32 %v1721_v46  ;;  %v1736_v16 = vmul.f32 0.5, %v7379_v12  ;;  %v7387_v25 = vadd.f32 %v1416_v60, %v7371_v48  ;;  %v1459_v27 = vpop.f32.mrf.mxu1 }
 0x26a   : > { %6036 = vtanh.f32 %v1723_v56  ;;  %v1738_v0 = vmul.f32 0.5, %v7383_v35  ;;  %v7391_v18 = vadd.f32 %v1459_v27, %v7371_v48 }
 0x26b   : > { %6038 = vtanh.f32 %v1736_v16  ;;  %v1737_v31 = vmul.f32 0.5, %v7387_v25 }
 0x26c   : > { %6040 = vtanh.f32 %v1738_v0  ;;  %v1739_v38 = vmul.f32 0.5, %v7391_v18 }
 0x26d   : > { %6042 = vtanh.f32 %v1737_v31  ;;  %v1496_v4 = vpop.f32.mrf.mxu0 }
 0x26e   : > { %6044 = vtanh.f32 %v1739_v38  ;;  %v7396_v5 = vadd.f32 %v1496_v4, %v7359_v44 }
 0x26f   : > { %v1498_v6 = vpop.f32.mrf.mxu0 }
 0x270   : > { %v1724_v36 = vmul.f32 0.5, %v7396_v5  ;;  %v1539_v57 = vpop.f32.mrf.mxu1  ;;  %v7400_v7 = vadd.f32 %v1498_v6, %v7359_v44 }
 0x271   : > { %v7403_v62 = vadd.f32 %v1539_v57, %v7359_v44  ;;  %v1500_v47 = vpop.f32.mrf.mxu0 }
 0x272   : > { %6046 = vtanh.f32 %v1724_v36  ;;  %v1725_v63 = vmul.f32 0.5, %v7400_v7  ;;  %v1541_v24 = vpop.f32.mrf.mxu1  ;;  %v7407_v23 = vadd.f32 %v1500_v47, %v7371_v48 }
 0x273   : > { %v1726_v55 = vmul.f32 0.5, %v7403_v62  ;;  %v7411_v37 = vadd.f32 %v1541_v24, %v7359_v44  ;;  %v1502_v28 = vpop.f32.mrf.mxu0 }
 0x274   : > { %v6031_v19 = vpop.eup %6030  ;;  %6048 = vtanh.f32 %v1725_v63  ;;  %v1740_v45 = vmul.f32 0.5, %v7407_v23  ;;  %v1543_v9 = vpop.f32.mrf.mxu1  ;;  %v7415_v30 = vadd.f32 %v1502_v28, %v7371_v48 }
 0x275   : > { %v6033_v10 = vpop.eup %6032  ;;  %6050 = vtanh.f32 %v1726_v55  ;;  %v1727_v1 = vmul.f32 0.5, %v7411_v37  ;;  %v7419_v32 = vadd.f32 %v1543_v9, %v7371_v48  ;;  %v1784_v34 = vmul.f32 0.5, %v6031_v19 }
 0x276   : > { %v6035_v26 = vpop.eup %6034  ;;  %6052 = vtanh.f32 %v1740_v45  ;;  %v1741_v8 = vmul.f32 0.5, %v7415_v30  ;;  %v1545_v61 = vpop.f32.mrf.mxu1  ;;  %v1786_v41 = vmul.f32 0.5, %v6033_v10 }
 0x277   : > { %v6037_v17 = vpop.eup %6036  ;;  %v1785_v58 = vmul.f32 0.5, %v6035_v26  ;;  %6054 = vtanh.f32 %v1727_v1  ;;  %v1742_v54 = vmul.f32 0.5, %v7419_v32  ;;  %v7424_v22 = vadd.f32 %v1545_v61, %v7371_v48 }
 0x278   : > { %v6039_v51 = vpop.eup %6038  ;;  %v1787_v49 = vmul.f32 0.5, %v6037_v17  ;;  %6056 = vtanh.f32 %v1741_v8  ;;  %v1816_v39 = vadd.f32 0.5, %v1784_v34  ;;  %v1818_v56 = vadd.f32 0.5, %v1786_v41 }
 0x279   : > { %v6041_v50 = vpop.eup %6040  ;;  %v1800_v11 = vmul.f32 0.5, %v6039_v51  ;;  %6058 = vtanh.f32 %v1742_v54  ;;  %v1743_v15 = vmul.f32 0.5, %v7424_v22  ;;  %v1817_v20 = vadd.f32 0.5, %v1785_v58 }
 0x27a   : > { %v6043_v33 = vpop.eup %6042  ;;  %v1802_v52 = vmul.f32 0.5, %v6041_v50  ;;  %v1819_v43 = vadd.f32 0.5, %v1787_v49  ;;  %v1848_v6 = vmul.f32 %v1816_v39, %v7362_v59  ;;  %v1850_v63 = vmul.f32 %v1818_v56, %v7365_v40  ;;  %v7438_v59 = vld [vmem:[%s8539_s1 + $0x18] sm:$0xff]  }
 0x27b   : > { %v6045_v29 = vpop.eup %6044  ;;  %v1832_v42 = vadd.f32 0.5, %v1800_v11  ;;  %v1801_v53 = vmul.f32 0.5, %v6043_v33  ;;  %6060 = vtanh.f32 %v1743_v15  ;;  %v1849_v31 = vmul.f32 %v1817_v20, %v7369_v3 }
 0x27c   : > { %v1834_v46 = vadd.f32 0.5, %v1802_v52  ;;  %v1803_v13 = vmul.f32 0.5, %v6045_v29  ;;  %v1851_v36 = vmul.f32 %v1819_v43, %v7375_v14 }
 0x27d   : > { %v1833_v60 = vadd.f32 0.5, %v1801_v53  ;;  %v1864_v16 = vmul.f32 %v1832_v42, %v7379_v12 }
 0x27e   : > { %v1835_v27 = vadd.f32 0.5, %v1803_v13  ;;  %v1866_v38 = vmul.f32 %v1834_v46, %v7383_v35 }
 0x27f   : > { %v6047_v0 = vpop.eup %6046  ;;  %v1865_v4 = vmul.f32 %v1833_v60, %v7387_v25  ;;  %v1883_v28 = vpack.c.bf16 %v1864_v16, %v1848_v6 }
 0x280   : > { %v1867_v57 = vmul.f32 %v1835_v27, %v7391_v18  ;;  %v1788_v24 = vmul.f32 0.5, %v6047_v0  ;;  %v1885_v9 = vpack.c.bf16 %v1866_v38, %v1850_v63 }
 0x281   : > { %v6049_v47 = vpop.eup %6048  ;;  %v1884_v55 = vpack.c.bf16 %v1865_v4, %v1849_v31 }
 0x282   : > { %v6051_v12 = vpop.eup %6050  ;;  %v1789_v19 = vmul.f32 0.5, %v6049_v47  ;;  %v1886_v45 = vpack.c.bf16 %v1867_v57, %v1851_v36  ;;  %v1820_v40 = vadd.f32 0.5, %v1788_v24 }
 0x283   : > { %v6053_v3 = vpop.eup %6052  ;;  %1934 = vmatprep.subr.bf16.mxu0 %v1884_v55  ;;  %v1790_v61 = vmul.f32 0.5, %v6051_v12 }
 0x284   : > { %v6055_v14 = vpop.eup %6054  ;;  %v1804_v35 = vmul.f32 0.5, %v6053_v3  ;;  %1977 = vmatprep.subr.bf16.mxu1 %v1886_v45  ;;  %1935 = vmatpush1.bf16.msra.mxu0 %v1883_v28  ;;  %v1821_v18 = vadd.f32 0.5, %v1789_v19  ;;  %v1852_v50 = vmul.f32 %v1820_v40, %v7396_v5 }
 0x285   : > { %v6057_v25 = vpop.eup %6056  ;;  %1978 = vmatpush1.bf16.msra.mxu1 %v1885_v9  ;;  %v1791_v1 = vmul.f32 0.5, %v6055_v14  ;;  %v1822_v20 = vadd.f32 0.5, %v1790_v61 }
 0x286   : > { %v6059_v10 = vpop.eup %6058  ;;  %v1836_v26 = vadd.f32 0.5, %v1804_v35  ;;  %v1805_v8 = vmul.f32 0.5, %v6057_v25  ;;  %v1853_v41 = vmul.f32 %v1821_v18, %v7400_v7 }
 0x287   : > { %v1806_v17 = vmul.f32 0.5, %v6059_v10  ;;  %v1582_v34 = vpop.f32.mrf.mxu0  ;;  %5741 = vmatmul.mubr.msk.bf16.vlgmr.msra.gmra.mxu0 %vm828_vm0, %v7438_v59  ;;  %v1823_v52 = vadd.f32 0.5, %v1791_v1 }
 0x288   : > { %v1868_v58 = vmul.f32 %v1836_v26, %v7407_v23  ;;  %v1837_v54 = vadd.f32 0.5, %v1805_v8  ;;  %v7444_v51 = vadd.f32 %v1582_v34, %v7359_v44  ;;  %5742 = vmatmul.mubr.msk.bf16.vlgmr.msra.gmra.mxu1 %vm828_vm0, %v7438_v59  ;;  %2038 = vmatprep.mubr.bf16.mxu0 %v6540_v2  ;;  %v6061_v49 = vpop.eup %6060 }
 0x289   : > { %v1838_v11 = vadd.f32 0.5, %v1806_v17  ;;  %v1584_v33 = vpop.f32.mrf.mxu0  ;;  %2081 = vmatprep.mubr.bf16.mxu1 %v6540_v2  ;;  %v1807_v15 = vmul.f32 0.5, %v6061_v49  ;;  %v1855_v31 = vmul.f32 %v1823_v52, %v7411_v37 }
 0x28a   : > { %v1869_v23 = vmul.f32 %v1837_v54, %v7415_v30  ;;  %v1728_v29 = vmul.f32 0.5, %v7444_v51  ;;  %v1625_v39 = vpop.f32.mrf.mxu1  ;;  %v1887_v42 = vpack.c.bf16 %v1868_v58, %v1852_v50  ;;  %v7458_v5 = vadd.f32 %v1584_v33, %v7359_v44 }
 0x28b   : > { %v7455_v53 = vadd.f32 %v1625_v39, %v7359_v44  ;;  %v1586_v7 = vpop.f32.mrf.mxu0  ;;  %v1839_v43 = vadd.f32 0.5, %v1807_v15  ;;  %v1870_v56 = vmul.f32 %v1838_v11, %v7419_v32  ;;  %v1854_v32 = vmul.f32 %v1822_v20, %v7403_v62 }
 0x28c   : > { %6062 = vtanh.f32 %v1728_v29  ;;  %v1627_v46 = vpop.f32.mrf.mxu1  ;;  %v7461_v13 = vadd.f32 %v1586_v7, %v7371_v48  ;;  %v1888_v30 = vpack.c.bf16 %v1869_v23, %v1853_v41  ;;  %v1729_v16 = vmul.f32 0.5, %v7458_v5 }
 0x28d   : > { %v1730_v60 = vmul.f32 0.5, %v7455_v53  ;;  %v7467_v27 = vadd.f32 %v1627_v46, %v7359_v44  ;;  %v1588_v0 = vpop.f32.mrf.mxu0  ;;  %v1871_v38 = vmul.f32 %v1839_v43, %v7424_v22  ;;  %v1889_v24 = vpack.c.bf16 %v1870_v56, %v1854_v32 }
 0x28e   : > { %v1744_v4 = vmul.f32 0.5, %v7461_v13  ;;  %v1629_v6 = vpop.f32.mrf.mxu1  ;;  %v7473_v36 = vadd.f32 %v1588_v0, %v7371_v48  ;;  %2020 = vmatprep.subr.bf16.mxu0 %v1888_v30 }
 0x28f   : > { %6064 = vtanh.f32 %v1730_v60  ;;  %v1731_v57 = vmul.f32 0.5, %v7467_v27  ;;  %v7478_v47 = vadd.f32 %v1629_v6, %v7371_v48  ;;  %2021 = vmatpush1.bf16.msra.mxu0 %v1887_v42  ;;  %v1890_v63 = vpack.c.bf16 %v1871_v38, %v1855_v31 }
 0x290   : > { %6066 = vtanh.f32 %v1729_v16  ;;  %v1745_v37 = vmul.f32 0.5, %v7473_v36  ;;  %v1631_v22 = vpop.f32.mrf.mxu1 }
 0x291   : > { %6068 = vtanh.f32 %v1731_v57  ;;  %v1746_v55 = vmul.f32 0.5, %v7478_v47  ;;  %v7483_v12 = vadd.f32 %v1631_v22, %v7371_v48  ;;  %2063 = vmatprep.subr.bf16.mxu1 %v1890_v63 }
 0x292   : > { %6070 = vtanh.f32 %v1744_v4  ;;  %5743 = vmatmul.mubr.msk.bf16.vlgmr.msra.gmra.mxu0 %vm828_vm0, %v7438_v59  ;;  %2064 = vmatpush1.bf16.msra.mxu1 %v1889_v24 }
 0x293   : > { %6072 = vtanh.f32 %v1746_v55  ;;  %v1747_v62 = vmul.f32 0.5, %v7483_v12  ;;  %2124 = vmatprep.mubr.bf16.mxu0 %v6540_v2 }
 0x294   : > { %6074 = vtanh.f32 %v1745_v37 }
 0x295   : > { %6076 = vtanh.f32 %v1747_v62  ;;  %5744 = vmatmul.mubr.msk.bf16.vlgmr.msra.gmra.mxu1 %vm828_vm0, %v7438_v59 }
 0x296   : > { %2167 = vmatprep.mubr.bf16.mxu1 %v6540_v2 }
 0x299   : > { %v6063_v28 = vpop.eup %6062  ;;  %v1668_v45 = vpop.f32.mrf.mxu0 }
 0x29a   : > { %v1792_v19 = vmul.f32 0.5, %v6063_v28  ;;  %v7493_v3 = vadd.f32 %v1668_v45, %v7359_v44 }
 0x29b   : > { %v1711_v35 = vpop.f32.mrf.mxu1  ;;  %v1670_v25 = vpop.f32.mrf.mxu0 }
 0x29c   : > { %v6065_v9 = vpop.eup %6064  ;;  %v1824_v14 = vadd.f32 0.5, %v1792_v19  ;;  %v1732_v10 = vmul.f32 0.5, %v7493_v3  ;;  %v7497_v1 = vadd.f32 %v1711_v35, %v7359_v44  ;;  %v7500_v26 = vadd.f32 %v1670_v25, %v7359_v44 }
 0x29d   : > { %v6067_v40 = vpop.eup %6066  ;;  %v1794_v18 = vmul.f32 0.5, %v6065_v9  ;;  %v1713_v17 = vpop.f32.mrf.mxu1 }
 0x29e   : > { %v6069_v8 = vpop.eup %6068  ;;  %v1793_v61 = vmul.f32 0.5, %v6067_v40  ;;  %v1672_v34 = vpop.f32.mrf.mxu0  ;;  %v1734_v49 = vmul.f32 0.5, %v7497_v1  ;;  %v1733_v33 = vmul.f32 0.5, %v7500_v26  ;;  %v7505_v52 = vadd.f32 %v1713_v17, %v7359_v44 }
 0x29f   : > { %v6071_v58 = vpop.eup %6070  ;;  %v1795_v54 = vmul.f32 0.5, %v6069_v8  ;;  %v1715_v23 = vpop.f32.mrf.mxu1  ;;  %v1856_v29 = vmul.f32 %v1824_v14, %v7444_v51  ;;  %v1826_v39 = vadd.f32 0.5, %v1794_v18  ;;  %6078 = vtanh.f32 %v1732_v10 }
 0x2a0   : > { %v6073_v50 = vpop.eup %6072  ;;  %v1825_v41 = vadd.f32 0.5, %v1793_v61  ;;  %v1808_v11 = vmul.f32 0.5, %v6071_v58  ;;  %6080 = vtanh.f32 %v1734_v49  ;;  %v1674_v30 = vpop.f32.mrf.mxu0  ;;  %v1735_v44 = vmul.f32 0.5, %v7505_v52 }
 0x2a1   : > { %v6075_v15 = vpop.eup %6074  ;;  %v1810_v20 = vmul.f32 0.5, %v6073_v50  ;;  %v1827_v7 = vadd.f32 0.5, %v1795_v54  ;;  %6082 = vtanh.f32 %v1733_v33  ;;  %v1673_v31 = vadd.f32 %v1672_v34, %v7371_v48  ;;  %v1717_v38 = vpop.f32.mrf.mxu1 }
 0x2a2   : > { %v6077_v42 = vpop.eup %6076  ;;  %v1840_v43 = vadd.f32 0.5, %v1808_v11  ;;  %v1809_v46 = vmul.f32 0.5, %v6075_v15  ;;  %v1857_v56 = vmul.f32 %v1825_v41, %v7458_v5  ;;  %v1716_v51 = vadd.f32 %v1715_v23, %v7371_v48 }
 0x2a3   : > { %v1842_v60 = vadd.f32 0.5, %v1810_v20  ;;  %v1811_v16 = vmul.f32 0.5, %v6077_v42  ;;  %6084 = vtanh.f32 %v1735_v44  ;;  %v1675_v32 = vadd.f32 %v1674_v30, %v7371_v48 }
 0x2a4   : > { %v1841_v0 = vadd.f32 0.5, %v1809_v46  ;;  %v1872_v4 = vmul.f32 %v1840_v43, %v7461_v13  ;;  %v1748_v37 = vmul.f32 0.5, %v1673_v31  ;;  %v1750_v22 = vmul.f32 0.5, %v1716_v51 }
 0x2a5   : > { %v1843_v6 = vadd.f32 0.5, %v1811_v16  ;;  %v1874_v57 = vmul.f32 %v1842_v60, %v7478_v47  ;;  %v1859_v63 = vmul.f32 %v1827_v7, %v7467_v27  ;;  %v1749_v55 = vmul.f32 0.5, %v1675_v32 }
 0x2a6   : > { %v1873_v5 = vmul.f32 %v1841_v0, %v7473_v36  ;;  %v1718_v62 = vadd.f32 %v1717_v38, %v7371_v48  ;;  %v1858_v28 = vmul.f32 %v1826_v39, %v7455_v53  ;;  %6086 = vtanh.f32 %v1748_v37 }
 0x2a7   : > { %v1875_v24 = vmul.f32 %v1843_v6, %v7483_v12  ;;  %v1891_v19 = vpack.c.bf16 %v1872_v4, %v1856_v29  ;;  %6088 = vtanh.f32 %v1750_v22  ;;  %v7548_v4 = vpop.permute.xlu1 %1909 }
 0x2a8   : > { %v1892_v13 = vpack.c.bf16 %v1873_v5, %v1857_v56  ;;  %v1751_v45 = vmul.f32 0.5, %v1718_v62  ;;  %v1893_v47 = vpack.c.bf16 %v1874_v57, %v1858_v28  ;;  %6090 = vtanh.f32 %v1749_v55 }
 0x2a9   : > { %v1894_v9 = vpack.c.bf16 %v1875_v24, %v1859_v63 }
 0x2aa   : > { %2106 = vmatprep.subr.bf16.mxu0 %v1892_v13  ;;  %6092 = vtanh.f32 %v1751_v45 }
 0x2ab   : > { %2149 = vmatprep.subr.bf16.mxu1 %v1894_v9  ;;  %2107 = vmatpush1.bf16.msra.mxu0 %v1891_v19 }
 0x2ac   : > { %2150 = vmatpush1.bf16.msra.mxu1 %v1893_v47  ;;  %v6079_v27 = vpop.eup %6078 }
 0x2ad   : > { %v6081_v48 = vpop.eup %6080  ;;  %v1796_v35 = vmul.f32 0.5, %v6079_v27 }
 0x2ae   : > { %5745 = vmatmul.mubr.msk.bf16.vlgmr.msra.gmra.mxu0 %vm828_vm0, %v7438_v59  ;;  %v6083_v53 = vpop.eup %6082  ;;  %v1798_v18 = vmul.f32 0.5, %v6081_v48 }
 0x2af   : > { %5746 = vmatmul.mubr.msk.bf16.vlgmr.msra.gmra.mxu1 %vm828_vm0, %v7438_v59  ;;  %2210 = vmatprep.mubr.bf16.mxu0 %v6540_v2  ;;  %v1797_v12 = vmul.f32 0.5, %v6083_v53  ;;  %v1828_v49 = vadd.f32 0.5, %v1796_v35 }
 0x2b0   : > { %2253 = vmatprep.mubr.bf16.mxu1 %v6540_v2  ;;  %v6085_v36 = vpop.eup %6084  ;;  %v1830_v33 = vadd.f32 0.5, %v1798_v18 }
 0x2b1   : > { %v1799_v25 = vmul.f32 0.5, %v6085_v36  ;;  %v1829_v34 = vadd.f32 0.5, %v1797_v12  ;;  %v1860_v7 = vmul.f32 %v1828_v49, %v7493_v3  ;;  %v7536_v3 = vpop.permute.xlu0 %1904 }
 0x2b2   : > { %v1862_v30 = vmul.f32 %v1830_v33, %v7497_v1 }
 0x2b3   : > { %v6087_v14 = vpop.eup %6086  ;;  %v1831_v50 = vadd.f32 0.5, %v1799_v25  ;;  %v1861_v39 = vmul.f32 %v1829_v34, %v7500_v26 }
 0x2b4   : > { %v6089_v40 = vpop.eup %6088  ;;  %v1812_v10 = vmul.f32 0.5, %v6087_v14 }
 0x2b5   : > { %v6091_v8 = vpop.eup %6090  ;;  %v1814_v61 = vmul.f32 0.5, %v6089_v40  ;;  %v1863_v43 = vmul.f32 %v1831_v50, %v7505_v52 }
 0x2b6   : > { %v1844_v58 = vadd.f32 0.5, %v1812_v10  ;;  %v1813_v54 = vmul.f32 0.5, %v6091_v8 }
 0x2b7   : > { %v6093_v17 = vpop.eup %6092  ;;  %v1846_v41 = vadd.f32 0.5, %v1814_v61 }
 0x2b8   : > { %v1815_v11 = vmul.f32 0.5, %v6093_v17  ;;  %v1845_v23 = vadd.f32 0.5, %v1813_v54  ;;  %v1876_v15 = vmul.f32 %v1844_v58, %v1673_v31 }
 0x2b9   : > { %v1878_v20 = vmul.f32 %v1846_v41, %v1716_v51 }
 0x2ba   : > { %v1847_v29 = vadd.f32 0.5, %v1815_v11  ;;  %v1877_v42 = vmul.f32 %v1845_v23, %v1675_v32  ;;  %v1895_v60 = vpack.c.bf16 %v1876_v15, %v1860_v7 }
 0x2bb   : > { %v1897_v44 = vpack.c.bf16 %v1878_v20, %v1862_v30 }
 0x2bc   : > { %v1879_v46 = vmul.f32 %v1847_v29, %v1718_v62  ;;  %v1896_v56 = vpack.c.bf16 %v1877_v42, %v1861_v39 }
 0x2be   : > { %v1898_v16 = vpack.c.bf16 %v1879_v46, %v1863_v43  ;;  %2192 = vmatprep.subr.bf16.mxu0 %v1896_v56 }
 0x2bf   : > { %2193 = vmatpush1.bf16.msra.mxu0 %v1895_v60 }
 0x2c0   : > { %2235 = vmatprep.subr.bf16.mxu1 %v1898_v16 }
 0x2c1   : > { %2236 = vmatpush1.bf16.msra.mxu1 %v1897_v44 }
 0x2c2   : > { %5747 = vmatmul.mubr.msk.bf16.vlgmr.msra.gmra.mxu0 %vm828_vm0, %v7438_v59 }
 0x2c3   : > { %2496 = vmatprep.mubr.bf16.mxu0 %v6540_v2 }
 0x2c4   : > { %5748 = vmatmul.mubr.msk.bf16.vlgmr.msra.gmra.mxu1 %vm828_vm0, %v7438_v59 }
 0x2c5   : > { %2539 = vmatprep.mubr.bf16.mxu1 %v6540_v2 }
 0x347   : > { %v1954_v1 = vpop.f32.mrf.mxu0 }
 0x348   : > { %v7539_v26 = vadd.f32 %v1954_v1, %v7536_v3  ;;  %v1997_v52 = vpop.f32.mrf.mxu1 }
 0x349   : > { %v7542_v0 = vadd.f32 %v1997_v52, %v7536_v3  ;;  %v1956_v31 = vpop.f32.mrf.mxu0 }
 0x34a   : > { %v2264_v51 = vmul.f32 0.5, %v7539_v26  ;;  %v7546_v38 = vadd.f32 %v1956_v31, %v7536_v3  ;;  %v1999_v59 = vpop.f32.mrf.mxu1 }
 0x34b   : > { %v2266_v6 = vmul.f32 0.5, %v7542_v0  ;;  %v7552_v32 = vadd.f32 %v1999_v59, %v7536_v3  ;;  %v1958_v57 = vpop.f32.mrf.mxu0 }
 0x34c   : > { %6094 = vtanh.f32 %v2264_v51  ;;  %v2265_v5 = vmul.f32 0.5, %v7546_v38  ;;  %v7556_v37 = vadd.f32 %v1958_v57, %v7548_v4  ;;  %v2001_v22 = vpop.f32.mrf.mxu1 }
 0x34d   : > { %6096 = vtanh.f32 %v2266_v6  ;;  %v2267_v63 = vmul.f32 0.5, %v7552_v32  ;;  %v7560_v24 = vadd.f32 %v2001_v22, %v7548_v4  ;;  %v1960_v55 = vpop.f32.mrf.mxu0 }
 0x34e   : > { %6098 = vtanh.f32 %v2265_v5  ;;  %v2280_v62 = vmul.f32 0.5, %v7556_v37  ;;  %v7564_v28 = vadd.f32 %v1960_v55, %v7548_v4  ;;  %v2003_v13 = vpop.f32.mrf.mxu1 }
 0x34f   : > { %6100 = vtanh.f32 %v2267_v63  ;;  %v2282_v19 = vmul.f32 0.5, %v7560_v24  ;;  %v7568_v45 = vadd.f32 %v2003_v13, %v7548_v4 }
 0x350   : > { %6102 = vtanh.f32 %v2280_v62  ;;  %v2281_v9 = vmul.f32 0.5, %v7564_v28 }
 0x351   : > { %6104 = vtanh.f32 %v2282_v19  ;;  %v2283_v47 = vmul.f32 0.5, %v7568_v45 }
 0x352   : > { %6106 = vtanh.f32 %v2281_v9  ;;  %v2040_v27 = vpop.f32.mrf.mxu0 }
 0x353   : > { %6108 = vtanh.f32 %v2283_v47  ;;  %v7573_v48 = vadd.f32 %v2040_v27, %v7536_v3 }
 0x354   : > { %v2042_v53 = vpop.f32.mrf.mxu0 }
 0x355   : > { %v2268_v36 = vmul.f32 0.5, %v7573_v48  ;;  %v7577_v12 = vadd.f32 %v2042_v53, %v7536_v3  ;;  %v2083_v14 = vpop.f32.mrf.mxu1 }
 0x356   : > { %v2044_v35 = vpop.f32.mrf.mxu0  ;;  %v7580_v25 = vadd.f32 %v2083_v14, %v7536_v3 }
 0x357   : > { %6110 = vtanh.f32 %v2268_v36  ;;  %v2269_v40 = vmul.f32 0.5, %v7577_v12  ;;  %v7584_v18 = vadd.f32 %v2044_v35, %v7548_v4  ;;  %v2085_v10 = vpop.f32.mrf.mxu1 }
 0x358   : > { %v2046_v8 = vpop.f32.mrf.mxu0  ;;  %v2270_v17 = vmul.f32 0.5, %v7580_v25  ;;  %v7588_v34 = vadd.f32 %v2085_v10, %v7536_v3 }
 0x359   : > { %v6095_v61 = vpop.eup %6094  ;;  %6112 = vtanh.f32 %v2269_v40  ;;  %v2284_v58 = vmul.f32 0.5, %v7584_v18  ;;  %v2087_v49 = vpop.f32.mrf.mxu1  ;;  %v7592_v50 = vadd.f32 %v2046_v8, %v7548_v4 }
 0x35a   : > { %v6097_v54 = vpop.eup %6096  ;;  %6114 = vtanh.f32 %v2270_v17  ;;  %v2271_v11 = vmul.f32 0.5, %v7588_v34  ;;  %v7596_v33 = vadd.f32 %v2087_v49, %v7548_v4  ;;  %v2328_v20 = vmul.f32 0.5, %v6095_v61 }
 0x35b   : > { %v6099_v41 = vpop.eup %6098  ;;  %6116 = vtanh.f32 %v2284_v58  ;;  %v2285_v29 = vmul.f32 0.5, %v7592_v50  ;;  %v2089_v43 = vpop.f32.mrf.mxu1  ;;  %v2330_v30 = vmul.f32 0.5, %v6097_v54 }
 0x35c   : > { %v6101_v23 = vpop.eup %6100  ;;  %v2329_v15 = vmul.f32 0.5, %v6099_v41  ;;  %6118 = vtanh.f32 %v2271_v11  ;;  %v2286_v7 = vmul.f32 0.5, %v7596_v33  ;;  %v7601_v51 = vadd.f32 %v2089_v43, %v7548_v4 }
 0x35d   : > { %v6103_v39 = vpop.eup %6102  ;;  %v2331_v42 = vmul.f32 0.5, %v6101_v23  ;;  %6120 = vtanh.f32 %v2285_v29  ;;  %v2360_v59 = vadd.f32 0.5, %v2328_v20  ;;  %v2362_v22 = vadd.f32 0.5, %v2330_v30 }
 0x35e   : > { %v6105_v46 = vpop.eup %6104  ;;  %v2344_v56 = vmul.f32 0.5, %v6103_v39  ;;  %6122 = vtanh.f32 %v2286_v7  ;;  %v2361_v1 = vadd.f32 0.5, %v2329_v15  ;;  %v2287_v55 = vmul.f32 0.5, %v7601_v51 }
 0x35f   : > { %v6107_v60 = vpop.eup %6106  ;;  %v2346_v16 = vmul.f32 0.5, %v6105_v46  ;;  %v2363_v6 = vadd.f32 0.5, %v2331_v42  ;;  %v2392_v53 = vmul.f32 %v2360_v59, %v7539_v26  ;;  %v2394_v40 = vmul.f32 %v2362_v22, %v7542_v0 }
 0x360   : > { %v6109_v44 = vpop.eup %6108  ;;  %v2376_v52 = vadd.f32 0.5, %v2344_v56  ;;  %v2345_v31 = vmul.f32 0.5, %v6107_v60  ;;  %v2393_v9 = vmul.f32 %v2361_v1, %v7546_v38  ;;  %6124 = vtanh.f32 %v2287_v55 }
 0x361   : > { %v2378_v57 = vadd.f32 0.5, %v2346_v16  ;;  %v2347_v5 = vmul.f32 0.5, %v6109_v44  ;;  %v2395_v36 = vmul.f32 %v2363_v6, %v7552_v32 }
 0x362   : > { %v2377_v63 = vadd.f32 0.5, %v2345_v31  ;;  %v2408_v62 = vmul.f32 %v2376_v52, %v7556_v37 }
 0x363   : > { %v2379_v13 = vadd.f32 0.5, %v2347_v5  ;;  %v2410_v47 = vmul.f32 %v2378_v57, %v7560_v24  ;;  %v7615_v24 = vld [vmem:[%s8539_s1 + $0x20] sm:$0xff]  }
 0x364   : > { %v6111_v19 = vpop.eup %6110  ;;  %v2409_v27 = vmul.f32 %v2377_v63, %v7564_v28  ;;  %v2427_v37 = vpack.c.bf16 %v2408_v62, %v2392_v53 }
 0x365   : > { %v2411_v14 = vmul.f32 %v2379_v13, %v7568_v45  ;;  %v2332_v8 = vmul.f32 0.5, %v6111_v19  ;;  %v2429_v38 = vpack.c.bf16 %v2410_v47, %v2394_v40 }
 0x366   : > { %v6113_v35 = vpop.eup %6112  ;;  %v2428_v10 = vpack.c.bf16 %v2409_v27, %v2393_v9 }
 0x367   : > { %v2430_v61 = vpack.c.bf16 %v2411_v14, %v2395_v36  ;;  %v6115_v17 = vpop.eup %6114  ;;  %v2333_v58 = vmul.f32 0.5, %v6113_v35  ;;  %v2364_v45 = vadd.f32 0.5, %v2332_v8 }
 0x368   : > { %2478 = vmatprep.subr.bf16.mxu0 %v2428_v10  ;;  %v6117_v26 = vpop.eup %6116  ;;  %v2334_v41 = vmul.f32 0.5, %v6115_v17 }
 0x369   : > { %2521 = vmatprep.subr.bf16.mxu1 %v2430_v61  ;;  %2479 = vmatpush1.bf16.msra.mxu0 %v2427_v37  ;;  %v6119_v32 = vpop.eup %6118  ;;  %v2348_v28 = vmul.f32 0.5, %v6117_v26  ;;  %v2365_v11 = vadd.f32 0.5, %v2333_v58  ;;  %v2396_v7 = vmul.f32 %v2364_v45, %v7573_v48 }
 0x36a   : > { %2522 = vmatpush1.bf16.msra.mxu1 %v2429_v38  ;;  %v6121_v0 = vpop.eup %6120  ;;  %v2335_v54 = vmul.f32 0.5, %v6119_v32  ;;  %v2366_v56 = vadd.f32 0.5, %v2334_v41 }
 0x36b   : > { %v6123_v49 = vpop.eup %6122  ;;  %v2380_v23 = vadd.f32 0.5, %v2348_v28  ;;  %v2349_v15 = vmul.f32 0.5, %v6121_v0  ;;  %v2397_v60 = vmul.f32 %v2365_v11, %v7577_v12 }
 0x36c   : > { %5754 = vmatmul.mubr.msk.bf16.vlgmr.msra.gmra.mxu0 %vm828_vm0, %v7615_v24  ;;  %v2367_v29 = vadd.f32 0.5, %v2335_v54  ;;  %v2350_v39 = vmul.f32 0.5, %v6123_v49  ;;  %v2398_v37 = vmul.f32 %v2366_v56, %v7580_v25 }
 0x36d   : > { %5755 = vmatmul.mubr.msk.bf16.vlgmr.msra.gmra.mxu1 %vm828_vm0, %v7615_v24  ;;  %2582 = vmatprep.mubr.bf16.mxu0 %v6540_v2  ;;  %v2381_v20 = vadd.f32 0.5, %v2349_v15  ;;  %v2412_v43 = vmul.f32 %v2380_v23, %v7584_v18  ;;  %v6125_v52 = vpop.eup %6124 }
 0x36e   : > { %v2126_v42 = vpop.f32.mrf.mxu0  ;;  %2625 = vmatprep.mubr.bf16.mxu1 %v6540_v2  ;;  %v2399_v31 = vmul.f32 %v2367_v29, %v7588_v34  ;;  %v2382_v59 = vadd.f32 0.5, %v2350_v39  ;;  %v2351_v57 = vmul.f32 0.5, %v6125_v52 }
 0x36f   : > { %v7626_v46 = vadd.f32 %v2126_v42, %v7536_v3  ;;  %v2169_v30 = vpop.f32.mrf.mxu1  ;;  %v2413_v16 = vmul.f32 %v2381_v20, %v7592_v50  ;;  %v2431_v63 = vpack.c.bf16 %v2412_v43, %v2396_v7 }
 0x370   : > { %v7631_v44 = vadd.f32 %v2169_v30, %v7536_v3  ;;  %v2128_v1 = vpop.f32.mrf.mxu0  ;;  %v2383_v13 = vadd.f32 0.5, %v2351_v57  ;;  %v2414_v27 = vmul.f32 %v2382_v59, %v7596_v33 }
 0x371   : > { %v2272_v48 = vmul.f32 0.5, %v7626_v46  ;;  %v7636_v18 = vadd.f32 %v2128_v1, %v7536_v3  ;;  %v2171_v6 = vpop.f32.mrf.mxu1  ;;  %v2432_v22 = vpack.c.bf16 %v2413_v16, %v2397_v60 }
 0x372   : > { %v2274_v5 = vmul.f32 0.5, %v7631_v44  ;;  %v7640_v12 = vadd.f32 %v2171_v6, %v7536_v3  ;;  %v2130_v50 = vpop.f32.mrf.mxu0  ;;  %v2415_v35 = vmul.f32 %v2383_v13, %v7601_v51  ;;  %v2433_v17 = vpack.c.bf16 %v2414_v27, %v2398_v37 }
 0x373   : > { %6126 = vtanh.f32 %v2272_v48  ;;  %v2273_v55 = vmul.f32 0.5, %v7636_v18  ;;  %v7644_v34 = vadd.f32 %v2130_v50, %v7548_v4  ;;  %v2173_v62 = vpop.f32.mrf.mxu1  ;;  %2564 = vmatprep.subr.bf16.mxu0 %v2432_v22 }
 0x374   : > { %6128 = vtanh.f32 %v2274_v5  ;;  %v2275_v19 = vmul.f32 0.5, %v7640_v12  ;;  %v7648_v9 = vadd.f32 %v2173_v62, %v7548_v4  ;;  %v2132_v47 = vpop.f32.mrf.mxu0  ;;  %2565 = vmatpush1.bf16.msra.mxu0 %v2431_v63  ;;  %v2434_v61 = vpack.c.bf16 %v2415_v35, %v2399_v31 }
 0x375   : > { %6130 = vtanh.f32 %v2273_v55  ;;  %v2288_v53 = vmul.f32 0.5, %v7644_v34  ;;  %v7653_v36 = vadd.f32 %v2132_v47, %v7548_v4  ;;  %v2175_v14 = vpop.f32.mrf.mxu1 }
 0x376   : > { %6132 = vtanh.f32 %v2275_v19  ;;  %v2290_v40 = vmul.f32 0.5, %v7648_v9  ;;  %v7658_v10 = vadd.f32 %v2175_v14, %v7548_v4  ;;  %2607 = vmatprep.subr.bf16.mxu1 %v2434_v61 }
 0x377   : > { %6134 = vtanh.f32 %v2288_v53  ;;  %v2289_v33 = vmul.f32 0.5, %v7653_v36  ;;  %5756 = vmatmul.mubr.msk.bf16.vlgmr.msra.gmra.mxu0 %vm828_vm0, %v7615_v24  ;;  %2608 = vmatpush1.bf16.msra.mxu1 %v2433_v17 }
 0x378   : > { %6136 = vtanh.f32 %v2290_v40  ;;  %v2291_v8 = vmul.f32 0.5, %v7658_v10  ;;  %2668 = vmatprep.mubr.bf16.mxu0 %v6540_v2 }
 0x379   : > { %6138 = vtanh.f32 %v2289_v33 }
 0x37a   : > { %6140 = vtanh.f32 %v2291_v8  ;;  %5757 = vmatmul.mubr.msk.bf16.vlgmr.msra.gmra.mxu1 %vm828_vm0, %v7615_v24 }
 0x37b   : > { %2711 = vmatprep.mubr.bf16.mxu1 %v6540_v2 }
 0x380   : > { %v6127_v25 = vpop.eup %6126 }
 0x381   : > { %v6129_v51 = vpop.eup %6128  ;;  %v2336_v38 = vmul.f32 0.5, %v6127_v25 }
 0x382   : > { %v6131_v58 = vpop.eup %6130  ;;  %v2338_v26 = vmul.f32 0.5, %v6129_v51  ;;  %v2212_v41 = vpop.f32.mrf.mxu0 }
 0x383   : > { %v6133_v32 = vpop.eup %6132  ;;  %v2368_v28 = vadd.f32 0.5, %v2336_v38  ;;  %v2337_v0 = vmul.f32 0.5, %v6131_v58  ;;  %v7670_v29 = vadd.f32 %v2212_v41, %v7536_v3 }
 0x384   : > { %v6135_v45 = vpop.eup %6134  ;;  %v2370_v54 = vadd.f32 0.5, %v2338_v26  ;;  %v2339_v49 = vmul.f32 0.5, %v6133_v32  ;;  %v2255_v39 = vpop.f32.mrf.mxu1 }
 0x385   : > { %v6137_v11 = vpop.eup %6136  ;;  %v2369_v23 = vadd.f32 0.5, %v2337_v0  ;;  %v2352_v15 = vmul.f32 0.5, %v6135_v45  ;;  %v2400_v42 = vmul.f32 %v2368_v28, %v7626_v46  ;;  %v7674_v30 = vadd.f32 %v2255_v39, %v7536_v3  ;;  %v2214_v56 = vpop.f32.mrf.mxu0 }
 0x386   : > { %v6139_v20 = vpop.eup %6138  ;;  %v2371_v7 = vadd.f32 0.5, %v2339_v49  ;;  %v2354_v43 = vmul.f32 0.5, %v6137_v11  ;;  %v2402_v16 = vmul.f32 %v2370_v54, %v7631_v44  ;;  %v2276_v31 = vmul.f32 0.5, %v7670_v29  ;;  %v2257_v59 = vpop.f32.mrf.mxu1 }
 0x387   : > { %v6141_v60 = vpop.eup %6140  ;;  %v2384_v1 = vadd.f32 0.5, %v2352_v15  ;;  %v2353_v52 = vmul.f32 0.5, %v6139_v20  ;;  %v2401_v48 = vmul.f32 %v2369_v23, %v7636_v18  ;;  %v2278_v46 = vmul.f32 0.5, %v7674_v30  ;;  %v2216_v5 = vpop.f32.mrf.mxu0 }
 0x388   : > { %v2386_v6 = vadd.f32 0.5, %v2354_v43  ;;  %v2355_v57 = vmul.f32 0.5, %v6141_v60  ;;  %v2403_v50 = vmul.f32 %v2371_v7, %v7640_v12  ;;  %v7683_v55 = vadd.f32 %v2214_v56, %v7536_v3  ;;  %v2259_v44 = vpop.f32.mrf.mxu1 }
 0x389   : > { %v2416_v22 = vmul.f32 %v2384_v1, %v7644_v34  ;;  %v2385_v63 = vadd.f32 0.5, %v2353_v52  ;;  %6142 = vtanh.f32 %v2276_v31  ;;  %v7687_v18 = vadd.f32 %v2257_v59, %v7536_v3  ;;  %v2218_v19 = vpop.f32.mrf.mxu0 }
 0x38a   : > { %v2418_v62 = vmul.f32 %v2386_v6, %v7648_v9  ;;  %v2387_v13 = vadd.f32 0.5, %v2355_v57  ;;  %6144 = vtanh.f32 %v2278_v46  ;;  %v2277_v12 = vmul.f32 0.5, %v7683_v55  ;;  %v2261_v27 = vpop.f32.mrf.mxu1 }
 0x38b   : > { %v2417_v47 = vmul.f32 %v2385_v63, %v7653_v36  ;;  %v2217_v34 = vadd.f32 %v2216_v5, %v7548_v4  ;;  %v2435_v53 = vpack.c.bf16 %v2416_v22, %v2400_v42  ;;  %v2279_v35 = vmul.f32 0.5, %v7687_v18 }
 0x38c   : > { %v2419_v14 = vmul.f32 %v2387_v13, %v7658_v10  ;;  %v2260_v9 = vadd.f32 %v2259_v44, %v7548_v4  ;;  %6146 = vtanh.f32 %v2277_v12  ;;  %v2219_v3 = vadd.f32 %v2218_v19, %v7548_v4 }
 0x38d   : > { %v2292_v40 = vmul.f32 0.5, %v2217_v34  ;;  %v2262_v37 = vadd.f32 %v2261_v27, %v7548_v4  ;;  %6148 = vtanh.f32 %v2279_v35  ;;  %v2436_v33 = vpack.c.bf16 %v2417_v47, %v2401_v48  ;;  %v7725_v47 = vpop.permute.xlu1 %2453 }
 0x38e   : > { %v2294_v36 = vmul.f32 0.5, %v2260_v9  ;;  %v2438_v8 = vpack.c.bf16 %v2419_v14, %v2403_v50  ;;  %v2437_v61 = vpack.c.bf16 %v2418_v62, %v2402_v16  ;;  %v2293_v17 = vmul.f32 0.5, %v2219_v3 }
 0x38f   : > { %6150 = vtanh.f32 %v2292_v40  ;;  %v2295_v25 = vmul.f32 0.5, %v2262_v37  ;;  %2650 = vmatprep.subr.bf16.mxu0 %v2436_v33 }
 0x390   : > { %6152 = vtanh.f32 %v2294_v36  ;;  %2693 = vmatprep.subr.bf16.mxu1 %v2438_v8  ;;  %2651 = vmatpush1.bf16.msra.mxu0 %v2435_v53 }
 0x391   : > { %6154 = vtanh.f32 %v2293_v17  ;;  %2694 = vmatpush1.bf16.msra.mxu1 %v2437_v61 }
 0x392   : > { %6156 = vtanh.f32 %v2295_v25 }
 0x393   : > { %5758 = vmatmul.mubr.msk.bf16.vlgmr.msra.gmra.mxu0 %vm828_vm0, %v7615_v24 }
 0x394   : > { %5759 = vmatmul.mubr.msk.bf16.vlgmr.msra.gmra.mxu1 %vm828_vm0, %v7615_v24  ;;  %2754 = vmatprep.mubr.bf16.mxu0 %v6540_v2 }
 0x395   : > { %2797 = vmatprep.mubr.bf16.mxu1 %v6540_v2 }
 0x396   : > { %v6143_v4 = vpop.eup %6142 }
 0x397   : > { %v6145_v10 = vpop.eup %6144  ;;  %v2340_v32 = vmul.f32 0.5, %v6143_v4 }
 0x398   : > { %v2342_v45 = vmul.f32 0.5, %v6145_v10 }
 0x399   : > { %v6147_v51 = vpop.eup %6146  ;;  %v2372_v20 = vadd.f32 0.5, %v2340_v32 }
 0x39a   : > { %v6149_v38 = vpop.eup %6148  ;;  %v2341_v58 = vmul.f32 0.5, %v6147_v51  ;;  %v2374_v56 = vadd.f32 0.5, %v2342_v45 }
 0x39b   : > { %v2343_v28 = vmul.f32 0.5, %v6149_v38  ;;  %v2404_v48 = vmul.f32 %v2372_v20, %v7670_v29  ;;  %v7713_v29 = vpop.permute.xlu0 %2448 }
 0x39c   : > { %v6151_v26 = vpop.eup %6150  ;;  %v2373_v23 = vadd.f32 0.5, %v2341_v58  ;;  %v2406_v46 = vmul.f32 %v2374_v56, %v7674_v30 }
 0x39d   : > { %v6153_v0 = vpop.eup %6152  ;;  %v2356_v54 = vmul.f32 0.5, %v6151_v26  ;;  %v2375_v42 = vadd.f32 0.5, %v2343_v28 }
 0x39e   : > { %v6155_v49 = vpop.eup %6154  ;;  %v2358_v41 = vmul.f32 0.5, %v6153_v0  ;;  %v2405_v52 = vmul.f32 %v2373_v23, %v7683_v55 }
 0x39f   : > { %v6157_v11 = vpop.eup %6156  ;;  %v2388_v15 = vadd.f32 0.5, %v2356_v54  ;;  %v2357_v39 = vmul.f32 0.5, %v6155_v49  ;;  %v2407_v6 = vmul.f32 %v2375_v42, %v7687_v18 }
 0x3a0   : > { %v2390_v7 = vadd.f32 0.5, %v2358_v41  ;;  %v2359_v43 = vmul.f32 0.5, %v6157_v11 }
 0x3a1   : > { %v2389_v60 = vadd.f32 0.5, %v2357_v39  ;;  %v2420_v16 = vmul.f32 %v2388_v15, %v2217_v34 }
 0x3a2   : > { %v2391_v1 = vadd.f32 0.5, %v2359_v43  ;;  %v2422_v31 = vmul.f32 %v2390_v7, %v2260_v9 }
 0x3a3   : > { %v2421_v59 = vmul.f32 %v2389_v60, %v2219_v3  ;;  %v2439_v50 = vpack.c.bf16 %v2420_v16, %v2404_v48 }
 0x3a4   : > { %v2423_v57 = vmul.f32 %v2391_v1, %v2262_v37  ;;  %v2441_v63 = vpack.c.bf16 %v2422_v31, %v2406_v46 }
 0x3a5   : > { %v2440_v5 = vpack.c.bf16 %v2421_v59, %v2405_v52 }
 0x3a6   : > { %v2442_v22 = vpack.c.bf16 %v2423_v57, %v2407_v6 }
 0x3a7   : > { %2736 = vmatprep.subr.bf16.mxu0 %v2440_v5 }
 0x3a8   : > { %2779 = vmatprep.subr.bf16.mxu1 %v2442_v22  ;;  %2737 = vmatpush1.bf16.msra.mxu0 %v2439_v50 }
 0x3a9   : > { %2780 = vmatpush1.bf16.msra.mxu1 %v2441_v63 }
 0x3ab   : > { %5760 = vmatmul.mubr.msk.bf16.vlgmr.msra.gmra.mxu0 %vm828_vm0, %v7615_v24 }
 0x3ac   : > { %5761 = vmatmul.mubr.msk.bf16.vlgmr.msra.gmra.mxu1 %vm828_vm0, %v7615_v24  ;;  %3040 = vmatprep.mubr.bf16.mxu0 %v6540_v2 }
 0x3ad   : > { %3083 = vmatprep.mubr.bf16.mxu1 %v6540_v2 }
 0x42c   : > { %v2498_v30 = vpop.f32.mrf.mxu0 }
 0x42d   : > { %v7716_v55 = vadd.f32 %v2498_v30, %v7713_v29  ;;  %v2541_v44 = vpop.f32.mrf.mxu1 }
 0x42e   : > { %v7719_v62 = vadd.f32 %v2541_v44, %v7713_v29  ;;  %v2500_v13 = vpop.f32.mrf.mxu0 }
 0x42f   : > { %v2808_v18 = vmul.f32 0.5, %v7716_v55  ;;  %v7723_v19 = vadd.f32 %v2500_v13, %v7713_v29  ;;  %v2543_v24 = vpop.f32.mrf.mxu1 }
 0x430   : > { %v2810_v12 = vmul.f32 0.5, %v7719_v62  ;;  %v7729_v34 = vadd.f32 %v2543_v24, %v7713_v29  ;;  %v2502_v27 = vpop.f32.mrf.mxu0 }
 0x431   : > { %6158 = vtanh.f32 %v2808_v18  ;;  %v2809_v53 = vmul.f32 0.5, %v7723_v19  ;;  %v7733_v14 = vadd.f32 %v2502_v27, %v7725_v47  ;;  %v2545_v35 = vpop.f32.mrf.mxu1 }
 0x432   : > { %6160 = vtanh.f32 %v2810_v12  ;;  %v2811_v9 = vmul.f32 0.5, %v7729_v34  ;;  %v7737_v40 = vadd.f32 %v2545_v35, %v7725_v47  ;;  %v2504_v3 = vpop.f32.mrf.mxu0 }
 0x433   : > { %6162 = vtanh.f32 %v2809_v53  ;;  %v2824_v37 = vmul.f32 0.5, %v7733_v14  ;;  %v7741_v36 = vadd.f32 %v2504_v3, %v7725_v47  ;;  %v2547_v33 = vpop.f32.mrf.mxu1 }
 0x434   : > { %6164 = vtanh.f32 %v2811_v9  ;;  %v2826_v8 = vmul.f32 0.5, %v7737_v40  ;;  %v7745_v61 = vadd.f32 %v2547_v33, %v7725_v47 }
 0x435   : > { %6166 = vtanh.f32 %v2824_v37  ;;  %v2825_v17 = vmul.f32 0.5, %v7741_v36 }
 0x436   : > { %6168 = vtanh.f32 %v2826_v8  ;;  %v2827_v25 = vmul.f32 0.5, %v7745_v61 }
 0x437   : > { %6170 = vtanh.f32 %v2825_v17  ;;  %v2584_v4 = vpop.f32.mrf.mxu0 }
 0x438   : > { %6172 = vtanh.f32 %v2827_v25  ;;  %v7750_v10 = vadd.f32 %v2584_v4, %v7713_v29 }
 0x439   : > { %v2586_v51 = vpop.f32.mrf.mxu0 }
 0x43a   : > { %v2812_v38 = vmul.f32 0.5, %v7750_v10  ;;  %v7754_v58 = vadd.f32 %v2586_v51, %v7713_v29  ;;  %v2627_v45 = vpop.f32.mrf.mxu1 }
 0x43b   : > { %v2588_v26 = vpop.f32.mrf.mxu0  ;;  %v7761_v41 = vadd.f32 %v2627_v45, %v7713_v29 }
 0x43c   : > { %v2813_v32 = vmul.f32 0.5, %v7754_v58  ;;  %v7758_v28 = vadd.f32 %v2588_v26, %v7725_v47  ;;  %6174 = vtanh.f32 %v2812_v38  ;;  %v2629_v39 = vpop.f32.mrf.mxu1 }
 0x43d   : > { %v2590_v54 = vpop.f32.mrf.mxu0  ;;  %v2814_v43 = vmul.f32 0.5, %v7761_v41  ;;  %v7769_v56 = vadd.f32 %v2629_v39, %v7713_v29 }
 0x43e   : > { %v6159_v0 = vpop.eup %6158  ;;  %6176 = vtanh.f32 %v2813_v32  ;;  %v2828_v11 = vmul.f32 0.5, %v7758_v28  ;;  %v7765_v20 = vadd.f32 %v2590_v54, %v7725_v47  ;;  %v2631_v1 = vpop.f32.mrf.mxu1 }
 0x43f   : > { %v6161_v49 = vpop.eup %6160  ;;  %v2872_v15 = vmul.f32 0.5, %v6159_v0  ;;  %v2815_v5 = vmul.f32 0.5, %v7769_v56  ;;  %v7774_v44 = vadd.f32 %v2631_v1, %v7725_v47 }
 0x440   : > { %v6163_v23 = vpop.eup %6162  ;;  %6178 = vtanh.f32 %v2828_v11  ;;  %v2874_v31 = vmul.f32 0.5, %v6161_v49  ;;  %v2829_v48 = vmul.f32 0.5, %v7765_v20  ;;  %v2633_v13 = vpop.f32.mrf.mxu1 }
 0x441   : > { %v6165_v42 = vpop.eup %6164  ;;  %v2873_v7 = vmul.f32 0.5, %v6163_v23  ;;  %v2904_v57 = vadd.f32 0.5, %v2872_v15  ;;  %6180 = vtanh.f32 %v2814_v43  ;;  %v2830_v35 = vmul.f32 0.5, %v7774_v44 }
 0x442   : > { %v6167_v60 = vpop.eup %6166  ;;  %v2875_v16 = vmul.f32 0.5, %v6165_v42  ;;  %6182 = vtanh.f32 %v2815_v5  ;;  %v2906_v27 = vadd.f32 0.5, %v2874_v31  ;;  %v7779_v37 = vadd.f32 %v2633_v13, %v7725_v47 }
 0x443   : > { %v6169_v52 = vpop.eup %6168  ;;  %v2888_v59 = vmul.f32 0.5, %v6167_v60  ;;  %v2905_v22 = vadd.f32 0.5, %v2873_v7  ;;  %6184 = vtanh.f32 %v2829_v48  ;;  %v2936_v25 = vmul.f32 %v2904_v57, %v7716_v55  ;;  %v7792_v55 = vld [vmem:[%s8539_s1 + $0x28] sm:$0xff]  }
 0x444   : > { %v6171_v6 = vpop.eup %6170  ;;  %v2890_v46 = vmul.f32 0.5, %v6169_v52  ;;  %v2907_v18 = vadd.f32 0.5, %v2875_v16  ;;  %6186 = vtanh.f32 %v2830_v35  ;;  %v2831_v38 = vmul.f32 0.5, %v7779_v37 }
 0x445   : > { %v6173_v50 = vpop.eup %6172  ;;  %v2920_v63 = vadd.f32 0.5, %v2888_v59  ;;  %v2889_v30 = vmul.f32 0.5, %v6171_v6  ;;  %v2937_v33 = vmul.f32 %v2905_v22, %v7723_v19  ;;  %v2938_v26 = vmul.f32 %v2906_v27, %v7719_v62 }
 0x446   : > { %v2922_v24 = vadd.f32 0.5, %v2890_v46  ;;  %v2891_v12 = vmul.f32 0.5, %v6173_v50  ;;  %v2939_v4 = vmul.f32 %v2907_v18, %v7729_v34  ;;  %6188 = vtanh.f32 %v2831_v38 }
 0x447   : > { %v2921_v53 = vadd.f32 0.5, %v2889_v30  ;;  %v2952_v9 = vmul.f32 %v2920_v63, %v7733_v14 }
 0x448   : > { %v2923_v3 = vadd.f32 0.5, %v2891_v12  ;;  %v2954_v8 = vmul.f32 %v2922_v24, %v7737_v40 }
 0x449   : > { %v2953_v17 = vmul.f32 %v2921_v53, %v7741_v36  ;;  %v6175_v14 = vpop.eup %6174  ;;  %v2971_v45 = vpack.c.bf16 %v2952_v9, %v2936_v25 }
 0x44a   : > { %v2955_v51 = vmul.f32 %v2923_v3, %v7745_v61  ;;  %v2973_v40 = vpack.c.bf16 %v2954_v8, %v2938_v26  ;;  %v2876_v34 = vmul.f32 0.5, %v6175_v14 }
 0x44b   : > { %v2972_v32 = vpack.c.bf16 %v2953_v17, %v2937_v33  ;;  %v6177_v0 = vpop.eup %6176 }
 0x44c   : > { %v2974_v19 = vpack.c.bf16 %v2955_v51, %v2939_v4  ;;  %v2877_v36 = vmul.f32 0.5, %v6177_v0  ;;  %v2908_v49 = vadd.f32 0.5, %v2876_v34 }
 0x44d   : > { %3022 = vmatprep.subr.bf16.mxu0 %v2972_v32  ;;  %v6179_v61 = vpop.eup %6178 }
 0x44e   : > { %3065 = vmatprep.subr.bf16.mxu1 %v2974_v19  ;;  %3023 = vmatpush1.bf16.msra.mxu0 %v2971_v45  ;;  %v2892_v54 = vmul.f32 0.5, %v6179_v61  ;;  %v6181_v62 = vpop.eup %6180  ;;  %v2909_v11 = vadd.f32 0.5, %v2877_v36  ;;  %v2940_v59 = vmul.f32 %v2908_v49, %v7750_v10 }
 0x44f   : > { %3066 = vmatpush1.bf16.msra.mxu1 %v2973_v40  ;;  %v6183_v15 = vpop.eup %6182  ;;  %v2878_v42 = vmul.f32 0.5, %v6181_v62 }
 0x450   : > { %v2924_v23 = vadd.f32 0.5, %v2892_v54  ;;  %v6185_v39 = vpop.eup %6184  ;;  %v2879_v7 = vmul.f32 0.5, %v6183_v15  ;;  %v2941_v48 = vmul.f32 %v2909_v11, %v7754_v58 }
 0x451   : > { %5767 = vmatmul.mubr.msk.bf16.vlgmr.msra.gmra.mxu0 %vm828_vm0, %v7792_v55  ;;  %v2893_v16 = vmul.f32 0.5, %v6185_v39  ;;  %v6187_v31 = vpop.eup %6186  ;;  %v2910_v30 = vadd.f32 0.5, %v2878_v42 }
 0x452   : > { %5768 = vmatmul.mubr.msk.bf16.vlgmr.msra.gmra.mxu1 %vm828_vm0, %v7792_v55  ;;  %3126 = vmatprep.mubr.bf16.mxu0 %v6540_v2  ;;  %v2956_v6 = vmul.f32 %v2924_v23, %v7758_v28  ;;  %v2894_v5 = vmul.f32 0.5, %v6187_v31  ;;  %v2911_v13 = vadd.f32 0.5, %v2879_v7 }
 0x453   : > { %3169 = vmatprep.mubr.bf16.mxu1 %v6540_v2  ;;  %v2670_v43 = vpop.f32.mrf.mxu0  ;;  %v2925_v50 = vadd.f32 0.5, %v2893_v16  ;;  %v6189_v12 = vpop.eup %6188  ;;  %v2942_v34 = vmul.f32 %v2910_v30, %v7761_v41 }
 0x454   : > { %v2713_v60 = vpop.f32.mrf.mxu1  ;;  %v7801_v1 = vadd.f32 %v2670_v43, %v7713_v29  ;;  %v2926_v28 = vadd.f32 0.5, %v2894_v5  ;;  %v2895_v35 = vmul.f32 0.5, %v6189_v12  ;;  %v2975_v17 = vpack.c.bf16 %v2956_v6, %v2940_v59 }
 0x455   : > { %v7804_v52 = vadd.f32 %v2713_v60, %v7713_v29  ;;  %v2672_v57 = vpop.f32.mrf.mxu0  ;;  %v2957_v27 = vmul.f32 %v2925_v50, %v7765_v20  ;;  %v2943_v45 = vmul.f32 %v2911_v13, %v7769_v56 }
 0x456   : > { %v2715_v46 = vpop.f32.mrf.mxu1  ;;  %v2816_v22 = vmul.f32 0.5, %v7801_v1  ;;  %v7812_v18 = vadd.f32 %v2672_v57, %v7713_v29  ;;  %v2927_v51 = vadd.f32 0.5, %v2895_v35  ;;  %v2958_v26 = vmul.f32 %v2926_v28, %v7774_v44 }
 0x457   : > { %v2818_v63 = vmul.f32 0.5, %v7804_v52  ;;  %v7815_v24 = vadd.f32 %v2715_v46, %v7713_v29  ;;  %v2674_v10 = vpop.f32.mrf.mxu0  ;;  %v2976_v14 = vpack.c.bf16 %v2957_v27, %v2941_v48 }
 0x458   : > { %v2717_v58 = vpop.f32.mrf.mxu1  ;;  %6190 = vtanh.f32 %v2816_v22  ;;  %v7819_v53 = vadd.f32 %v2674_v10, %v7725_v47  ;;  %v2817_v9 = vmul.f32 0.5, %v7812_v18  ;;  %v2959_v19 = vmul.f32 %v2927_v51, %v7779_v37 }
 0x459   : > { %6192 = vtanh.f32 %v2818_v63  ;;  %v2819_v3 = vmul.f32 0.5, %v7815_v24  ;;  %v2676_v33 = vpop.f32.mrf.mxu0  ;;  %v7825_v4 = vadd.f32 %v2717_v58, %v7725_v47  ;;  %3108 = vmatprep.subr.bf16.mxu0 %v2976_v14  ;;  %v2977_v44 = vpack.c.bf16 %v2958_v26, %v2942_v34 }
 0x45a   : > { %v2719_v8 = vpop.f32.mrf.mxu1  ;;  %v2832_v25 = vmul.f32 0.5, %v7819_v53  ;;  %v7828_v20 = vadd.f32 %v2676_v33, %v7725_v47  ;;  %6194 = vtanh.f32 %v2817_v9  ;;  %3109 = vmatpush1.bf16.msra.mxu0 %v2975_v17  ;;  %v2978_v36 = vpack.c.bf16 %v2959_v19, %v2943_v45 }
 0x45b   : > { %v7831_v38 = vadd.f32 %v2719_v8, %v7725_v47  ;;  %6196 = vtanh.f32 %v2819_v3  ;;  %v2834_v32 = vmul.f32 0.5, %v7825_v4 }
 0x45c   : > { %v2833_v0 = vmul.f32 0.5, %v7828_v20  ;;  %6198 = vtanh.f32 %v2832_v25  ;;  %3151 = vmatprep.subr.bf16.mxu1 %v2978_v36 }
 0x45d   : > { %v2835_v40 = vmul.f32 0.5, %v7831_v38  ;;  %6200 = vtanh.f32 %v2834_v32  ;;  %5769 = vmatmul.mubr.msk.bf16.vlgmr.msra.gmra.mxu0 %vm828_vm0, %v7792_v55  ;;  %3152 = vmatpush1.bf16.msra.mxu1 %v2977_v44 }
 0x45e   : > { %6202 = vtanh.f32 %v2833_v0  ;;  %3212 = vmatprep.mubr.bf16.mxu0 %v6540_v2 }
 0x45f   : > { %6204 = vtanh.f32 %v2835_v40 }
 0x460   : > { %5770 = vmatmul.mubr.msk.bf16.vlgmr.msra.gmra.mxu1 %vm828_vm0, %v7792_v55 }
 0x461   : > { %3255 = vmatprep.mubr.bf16.mxu1 %v6540_v2 }
 0x465   : > { %v6191_v56 = vpop.eup %6190 }
 0x466   : > { %v6193_v37 = vpop.eup %6192  ;;  %v2880_v61 = vmul.f32 0.5, %v6191_v56 }
 0x467   : > { %v2882_v41 = vmul.f32 0.5, %v6193_v37  ;;  %v6195_v54 = vpop.eup %6194 }
 0x468   : > { %v2912_v62 = vadd.f32 0.5, %v2880_v61  ;;  %v6197_v49 = vpop.eup %6196  ;;  %v2881_v23 = vmul.f32 0.5, %v6195_v54 }
 0x469   : > { %v2914_v11 = vadd.f32 0.5, %v2882_v41  ;;  %v6199_v15 = vpop.eup %6198  ;;  %v2883_v39 = vmul.f32 0.5, %v6197_v49 }
 0x46a   : > { %v6201_v7 = vpop.eup %6200  ;;  %v2913_v43 = vadd.f32 0.5, %v2881_v23  ;;  %v2896_v60 = vmul.f32 0.5, %v6199_v15  ;;  %v2944_v48 = vmul.f32 %v2912_v62, %v7801_v1 }
 0x46b   : > { %v2756_v42 = vpop.f32.mrf.mxu0  ;;  %v6203_v59 = vpop.eup %6202  ;;  %v2915_v6 = vadd.f32 0.5, %v2883_v39  ;;  %v2898_v57 = vmul.f32 0.5, %v6201_v7  ;;  %v2946_v22 = vmul.f32 %v2914_v11, %v7804_v52 }
 0x46c   : > { %v7847_v16 = vadd.f32 %v2756_v42, %v7713_v29  ;;  %v2799_v31 = vpop.f32.mrf.mxu1  ;;  %v6205_v50 = vpop.eup %6204  ;;  %v2928_v63 = vadd.f32 0.5, %v2896_v60  ;;  %v2897_v30 = vmul.f32 0.5, %v6203_v59  ;;  %v2945_v58 = vmul.f32 %v2913_v43, %v7812_v18 }
 0x46d   : > { %v7851_v46 = vadd.f32 %v2799_v31, %v7713_v29  ;;  %v2758_v5 = vpop.f32.mrf.mxu0  ;;  %v2930_v12 = vadd.f32 0.5, %v2898_v57  ;;  %v2899_v28 = vmul.f32 0.5, %v6205_v50  ;;  %v2947_v35 = vmul.f32 %v2915_v6, %v7815_v24 }
 0x46e   : > { %v2820_v13 = vmul.f32 0.5, %v7847_v16  ;;  %v2801_v10 = vpop.f32.mrf.mxu1  ;;  %v2960_v9 = vmul.f32 %v2928_v63, %v7819_v53  ;;  %v2929_v3 = vadd.f32 0.5, %v2897_v30  ;;  %v7860_v33 = vadd.f32 %v2758_v5, %v7713_v29 }
 0x46f   : > { %v2822_v1 = vmul.f32 0.5, %v7851_v46  ;;  %v2760_v27 = vpop.f32.mrf.mxu0  ;;  %v2962_v8 = vmul.f32 %v2930_v12, %v7825_v4  ;;  %v2931_v17 = vadd.f32 0.5, %v2899_v28  ;;  %v7864_v18 = vadd.f32 %v2801_v10, %v7713_v29 }
 0x470   : > { %v2803_v52 = vpop.f32.mrf.mxu1  ;;  %6206 = vtanh.f32 %v2820_v13  ;;  %v2961_v51 = vmul.f32 %v2929_v3, %v7828_v20  ;;  %v2821_v24 = vmul.f32 0.5, %v7860_v33  ;;  %v2761_v53 = vadd.f32 %v2760_v27, %v7725_v47 }
 0x471   : > { %v2762_v25 = vpop.f32.mrf.mxu0  ;;  %6208 = vtanh.f32 %v2822_v1  ;;  %v2979_v26 = vpack.c.bf16 %v2960_v9, %v2944_v48  ;;  %v2963_v32 = vmul.f32 %v2931_v17, %v7831_v38  ;;  %v2823_v0 = vmul.f32 0.5, %v7864_v18 }
 0x472   : > { %v2805_v14 = vpop.f32.mrf.mxu1  ;;  %v2804_v4 = vadd.f32 %v2803_v52, %v7725_v47  ;;  %6210 = vtanh.f32 %v2821_v24  ;;  %v2836_v45 = vmul.f32 0.5, %v2761_v53  ;;  %v2763_v29 = vadd.f32 %v2762_v25, %v7725_v47  ;;  %v7897_v24 = vpop.permute.xlu1 %2997 }
 0x473   : > { %v2806_v19 = vadd.f32 %v2805_v14, %v7725_v47  ;;  %6212 = vtanh.f32 %v2823_v0  ;;  %v2980_v40 = vpack.c.bf16 %v2961_v51, %v2945_v58  ;;  %v2982_v34 = vpack.c.bf16 %v2963_v32, %v2947_v35 }
 0x474   : > { %v2838_v20 = vmul.f32 0.5, %v2804_v4  ;;  %v2981_v36 = vpack.c.bf16 %v2962_v8, %v2946_v22  ;;  %6214 = vtanh.f32 %v2836_v45  ;;  %v2837_v44 = vmul.f32 0.5, %v2763_v29 }
 0x475   : > { %v2839_v56 = vmul.f32 0.5, %v2806_v19  ;;  %3194 = vmatprep.subr.bf16.mxu0 %v2980_v40  ;;  %3237 = vmatprep.subr.bf16.mxu1 %v2982_v34 }
 0x476   : > { %6216 = vtanh.f32 %v2838_v20  ;;  %3195 = vmatpush1.bf16.msra.mxu0 %v2979_v26  ;;  %3238 = vmatpush1.bf16.msra.mxu1 %v2981_v36 }
 0x477   : > { %6218 = vtanh.f32 %v2837_v44 }
 0x478   : > { %6220 = vtanh.f32 %v2839_v56 }
 0x479   : > { %5771 = vmatmul.mubr.msk.bf16.vlgmr.msra.gmra.mxu0 %vm828_vm0, %v7792_v55  ;;  %5772 = vmatmul.mubr.msk.bf16.vlgmr.msra.gmra.mxu1 %vm828_vm0, %v7792_v55 }
 0x47a   : > { %3298 = vmatprep.mubr.bf16.mxu0 %v6540_v2  ;;  %3341 = vmatprep.mubr.bf16.mxu1 %v6540_v2 }
 0x47d   : > { %v6207_v47 = vpop.eup %6206 }
 0x47e   : > { %v6209_v38 = vpop.eup %6208  ;;  %v2884_v62 = vmul.f32 0.5, %v6207_v47 }
 0x47f   : > { %v6211_v37 = vpop.eup %6210  ;;  %v2886_v23 = vmul.f32 0.5, %v6209_v38 }
 0x480   : > { %v6213_v61 = vpop.eup %6212  ;;  %v2885_v41 = vmul.f32 0.5, %v6211_v37  ;;  %v2916_v59 = vadd.f32 0.5, %v2884_v62 }
 0x481   : > { %v6215_v54 = vpop.eup %6214  ;;  %v2887_v49 = vmul.f32 0.5, %v6213_v61  ;;  %v2918_v5 = vadd.f32 0.5, %v2886_v23 }
 0x482   : > { %v2900_v15 = vmul.f32 0.5, %v6215_v54  ;;  %v2917_v43 = vadd.f32 0.5, %v2885_v41  ;;  %v2948_v58 = vmul.f32 %v2916_v59, %v7847_v16  ;;  %v7890_v16 = vpop.permute.xlu0 %2992 }
 0x483   : > { %v6217_v11 = vpop.eup %6216  ;;  %v2919_v48 = vadd.f32 0.5, %v2887_v49  ;;  %v2950_v1 = vmul.f32 %v2918_v5, %v7851_v46 }
 0x484   : > { %v6219_v39 = vpop.eup %6218  ;;  %v2902_v42 = vmul.f32 0.5, %v6217_v11  ;;  %v2932_v60 = vadd.f32 0.5, %v2900_v15  ;;  %v2949_v30 = vmul.f32 %v2917_v43, %v7860_v33 }
 0x485   : > { %v6221_v7 = vpop.eup %6220  ;;  %v2901_v31 = vmul.f32 0.5, %v6219_v39  ;;  %v2951_v12 = vmul.f32 %v2919_v48, %v7864_v18 }
 0x486   : > { %v2934_v6 = vadd.f32 0.5, %v2902_v42  ;;  %v2903_v57 = vmul.f32 0.5, %v6221_v7  ;;  %v2964_v22 = vmul.f32 %v2932_v60, %v2761_v53 }
 0x487   : > { %v2933_v50 = vadd.f32 0.5, %v2901_v31 }
 0x488   : > { %v2935_v63 = vadd.f32 0.5, %v2903_v57  ;;  %v2966_v13 = vmul.f32 %v2934_v6, %v2804_v4  ;;  %v2983_v35 = vpack.c.bf16 %v2964_v22, %v2948_v58 }
 0x489   : > { %v2965_v10 = vmul.f32 %v2933_v50, %v2763_v29 }
 0x48a   : > { %v2967_v28 = vmul.f32 %v2935_v63, %v2806_v19  ;;  %v2985_v3 = vpack.c.bf16 %v2966_v13, %v2950_v1 }
 0x48b   : > { %v2984_v27 = vpack.c.bf16 %v2965_v10, %v2949_v30 }
 0x48c   : > { %v2986_v9 = vpack.c.bf16 %v2967_v28, %v2951_v12 }
 0x48d   : > { %3280 = vmatprep.subr.bf16.mxu0 %v2984_v27 }
 0x48e   : > { %3323 = vmatprep.subr.bf16.mxu1 %v2986_v9  ;;  %3281 = vmatpush1.bf16.msra.mxu0 %v2983_v35 }
 0x48f   : > { %3324 = vmatpush1.bf16.msra.mxu1 %v2985_v3 }
 0x491   : > { %5773 = vmatmul.mubr.msk.bf16.vlgmr.msra.gmra.mxu0 %vm828_vm0, %v7792_v55 }
 0x492   : > { %5774 = vmatmul.mubr.msk.bf16.vlgmr.msra.gmra.mxu1 %vm828_vm0, %v7792_v55  ;;  %3584 = vmatprep.mubr.bf16.mxu0 %v6540_v2 }
 0x493   : > { %3627 = vmatprep.mubr.bf16.mxu1 %v6540_v2 }
 0x511   : > { %v3042_v46 = vpop.f32.mrf.mxu0 }
 0x512   : > { %v3043_v33 = vadd.f32 %v3042_v46, %v7890_v16  ;;  %v3085_v52 = vpop.f32.mrf.mxu1 }
 0x513   : > { %v7894_v8 = vadd.f32 %v3085_v52, %v7890_v16  ;;  %v3044_v17 = vpop.f32.mrf.mxu0 }
 0x514   : > { %v3352_v18 = vmul.f32 0.5, %v3043_v33  ;;  %v3045_v25 = vadd.f32 %v3044_v17, %v7890_v16  ;;  %v3087_v51 = vpop.f32.mrf.mxu1 }
 0x515   : > { %v3354_v55 = vmul.f32 0.5, %v7894_v8  ;;  %v7901_v53 = vadd.f32 %v3087_v51, %v7890_v16  ;;  %v3046_v14 = vpop.f32.mrf.mxu0 }
 0x516   : > { %6222 = vtanh.f32 %v3352_v18  ;;  %v3353_v26 = vmul.f32 0.5, %v3045_v25  ;;  %v3047_v32 = vadd.f32 %v3046_v14, %v7897_v24  ;;  %v3089_v0 = vpop.f32.mrf.mxu1 }
 0x517   : > { %6224 = vtanh.f32 %v3354_v55  ;;  %v3355_v4 = vmul.f32 0.5, %v7901_v53  ;;  %v7906_v45 = vadd.f32 %v3089_v0, %v7897_v24  ;;  %v3048_v29 = vpop.f32.mrf.mxu0 }
 0x518   : > { %6226 = vtanh.f32 %v3353_v26  ;;  %v3368_v19 = vmul.f32 0.5, %v3047_v32  ;;  %v3049_v20 = vadd.f32 %v3048_v29, %v7897_v24  ;;  %v3091_v40 = vpop.f32.mrf.mxu1 }
 0x519   : > { %6228 = vtanh.f32 %v3355_v4  ;;  %v3370_v34 = vmul.f32 0.5, %v7906_v45  ;;  %v3092_v36 = vadd.f32 %v3091_v40, %v7897_v24 }
 0x51a   : > { %6230 = vtanh.f32 %v3368_v19  ;;  %v3369_v44 = vmul.f32 0.5, %v3049_v20 }
 0x51b   : > { %6232 = vtanh.f32 %v3370_v34  ;;  %v3371_v56 = vmul.f32 0.5, %v3092_v36 }
 0x51c   : > { %6234 = vtanh.f32 %v3369_v44 }
 0x51d   : > { %6236 = vtanh.f32 %v3371_v56  ;;  %v3128_v47 = vpop.f32.mrf.mxu0 }
 0x51e   : > { %v7912_v37 = vadd.f32 %v3128_v47, %v7890_v16 }
 0x51f   : > { %v3130_v54 = vpop.f32.mrf.mxu0 }
 0x520   : > { %v3356_v11 = vmul.f32 0.5, %v7912_v37  ;;  %v7916_v23 = vadd.f32 %v3130_v54, %v7890_v16  ;;  %v3171_v7 = vpop.f32.mrf.mxu1 }
 0x521   : > { %v3132_v43 = vpop.f32.mrf.mxu0  ;;  %v7919_v59 = vadd.f32 %v3171_v7, %v7890_v16 }
 0x522   : > { %6238 = vtanh.f32 %v3356_v11  ;;  %v3357_v5 = vmul.f32 0.5, %v7916_v23  ;;  %v3173_v50 = vpop.f32.mrf.mxu1  ;;  %v7927_v18 = vadd.f32 %v3132_v43, %v7897_v24 }
 0x523   : > { %v6223_v38 = vpop.eup %6222  ;;  %v3358_v13 = vmul.f32 0.5, %v7919_v59  ;;  %v3134_v35 = vpop.f32.mrf.mxu0  ;;  %v7924_v17 = vadd.f32 %v3173_v50, %v7890_v16 }
 0x524   : > { %v6225_v61 = vpop.eup %6224  ;;  %v3416_v41 = vmul.f32 0.5, %v6223_v38  ;;  %v3175_v27 = vpop.f32.mrf.mxu1  ;;  %6240 = vtanh.f32 %v3357_v5  ;;  %v7933_v14 = vadd.f32 %v3134_v35, %v7897_v24  ;;  %v3372_v29 = vmul.f32 0.5, %v7927_v18 }
 0x525   : > { %v6227_v62 = vpop.eup %6226  ;;  %v3418_v49 = vmul.f32 0.5, %v6225_v61  ;;  %6242 = vtanh.f32 %v3358_v13  ;;  %v3359_v4 = vmul.f32 0.5, %v7924_v17 }
 0x526   : > { %v6229_v15 = vpop.eup %6228  ;;  %v3448_v39 = vadd.f32 0.5, %v3416_v41  ;;  %v3417_v42 = vmul.f32 0.5, %v6227_v62  ;;  %v3373_v34 = vmul.f32 0.5, %v7933_v14 }
 0x527   : > { %v6231_v60 = vpop.eup %6230  ;;  %v3419_v31 = vmul.f32 0.5, %v6229_v15  ;;  %v3450_v63 = vadd.f32 0.5, %v3418_v49  ;;  %6244 = vtanh.f32 %v3359_v4 }
 0x528   : > { %v6233_v48 = vpop.eup %6232  ;;  %v3449_v6 = vadd.f32 0.5, %v3417_v42  ;;  %v3432_v57 = vmul.f32 0.5, %v6231_v60  ;;  %v3480_v58 = vmul.f32 %v3448_v39, %v3043_v33  ;;  %v7930_v33 = vadd.f32 %v3175_v27, %v7897_v24 }
 0x529   : > { %v6235_v22 = vpop.eup %6234  ;;  %v3434_v30 = vmul.f32 0.5, %v6233_v48  ;;  %v3451_v12 = vadd.f32 0.5, %v3419_v31  ;;  %v3482_v44 = vmul.f32 %v3450_v63, %v7894_v8  ;;  %6246 = vtanh.f32 %v3372_v29 }
 0x52a   : > { %v6237_v10 = vpop.eup %6236  ;;  %v3464_v28 = vadd.f32 0.5, %v3432_v57  ;;  %v3433_v1 = vmul.f32 0.5, %v6235_v22  ;;  %v3481_v9 = vmul.f32 %v3449_v6, %v3045_v25  ;;  %v3177_v25 = vpop.f32.mrf.mxu1 }
 0x52b   : > { %v3466_v3 = vadd.f32 0.5, %v3434_v30  ;;  %v3435_v46 = vmul.f32 0.5, %v6237_v10  ;;  %v3483_v19 = vmul.f32 %v3451_v12, %v7901_v53  ;;  %v7943_v56 = vadd.f32 %v3177_v25, %v7897_v24  ;;  %v7949_v53 = vld [vmem:[%s8539_s1 + $0x30] sm:$0xff]  }
 0x52c   : > { %v3465_v52 = vadd.f32 0.5, %v3433_v1  ;;  %v3496_v51 = vmul.f32 %v3464_v28, %v3047_v32  ;;  %v3374_v32 = vmul.f32 0.5, %v7930_v33 }
 0x52d   : > { %v3467_v55 = vadd.f32 0.5, %v3435_v46  ;;  %v3498_v26 = vmul.f32 %v3466_v3, %v7906_v45  ;;  %v3375_v61 = vmul.f32 0.5, %v7943_v56 }
 0x52e   : > { %v3497_v0 = vmul.f32 %v3465_v52, %v3049_v20  ;;  %v3515_v45 = vpack.c.bf16 %v3496_v51, %v3480_v58  ;;  %6248 = vtanh.f32 %v3374_v32 }
 0x52f   : > { %v3499_v40 = vmul.f32 %v3467_v55, %v3092_v36  ;;  %v3517_v38 = vpack.c.bf16 %v3498_v26, %v3482_v44  ;;  %6250 = vtanh.f32 %v3373_v34  ;;  %v6239_v8 = vpop.eup %6238 }
 0x530   : > { %v3516_v47 = vpack.c.bf16 %v3497_v0, %v3481_v9  ;;  %6252 = vtanh.f32 %v3375_v61  ;;  %v3420_v36 = vmul.f32 0.5, %v6239_v8 }
 0x531   : > { %v3518_v20 = vpack.c.bf16 %v3499_v40, %v3483_v19  ;;  %v6241_v41 = vpop.eup %6240 }
 0x532   : > { %3566 = vmatprep.subr.bf16.mxu0 %v3516_v47  ;;  %v6243_v54 = vpop.eup %6242  ;;  %v3452_v62 = vadd.f32 0.5, %v3420_v36  ;;  %v3421_v49 = vmul.f32 0.5, %v6241_v41 }
 0x533   : > { %3609 = vmatprep.subr.bf16.mxu1 %v3518_v20  ;;  %3567 = vmatpush1.bf16.msra.mxu0 %v3515_v45  ;;  %v3422_v39 = vmul.f32 0.5, %v6243_v54 }
 0x534   : > { %3610 = vmatpush1.bf16.msra.mxu1 %v3517_v38  ;;  %v6245_v43 = vpop.eup %6244  ;;  %v3484_v63 = vmul.f32 %v3452_v62, %v7912_v37  ;;  %v3453_v30 = vadd.f32 0.5, %v3421_v49 }
 0x535   : > { %v3423_v6 = vmul.f32 0.5, %v6245_v43  ;;  %v3454_v1 = vadd.f32 0.5, %v3422_v39 }
 0x536   : > { %5780 = vmatmul.mubr.msk.bf16.vlgmr.msra.gmra.mxu0 %vm828_vm0, %v7949_v53  ;;  %v6247_v48 = vpop.eup %6246  ;;  %v3485_v0 = vmul.f32 %v3453_v30, %v7916_v23 }
 0x537   : > { %5781 = vmatmul.mubr.msk.bf16.vlgmr.msra.gmra.mxu1 %vm828_vm0, %v7949_v53  ;;  %3670 = vmatprep.mubr.bf16.mxu0 %v6540_v2  ;;  %v3436_v13 = vmul.f32 0.5, %v6247_v48  ;;  %v3455_v51 = vadd.f32 0.5, %v3423_v6  ;;  %v3486_v8 = vmul.f32 %v3454_v1, %v7919_v59 }
 0x538   : > { %3713 = vmatprep.mubr.bf16.mxu1 %v6540_v2 }
 0x539   : > { %v3214_v11 = vpop.f32.mrf.mxu0  ;;  %v3257_v15 = vpop.f32.mrf.mxu1  ;;  %v3468_v3 = vadd.f32 0.5, %v3436_v13  ;;  %v3487_v20 = vmul.f32 %v3455_v51, %v7924_v17 }
 0x53a   : > { %v7958_v42 = vadd.f32 %v3214_v11, %v7890_v16  ;;  %v7961_v7 = vadd.f32 %v3257_v15, %v7890_v16 }
 0x53b   : > { %v3216_v60 = vpop.f32.mrf.mxu0  ;;  %v3259_v31 = vpop.f32.mrf.mxu1  ;;  %v3500_v19 = vmul.f32 %v3468_v3, %v7927_v18 }
 0x53c   : > { %v3360_v57 = vmul.f32 0.5, %v7958_v42  ;;  %v3362_v5 = vmul.f32 0.5, %v7961_v7  ;;  %v7966_v50 = vadd.f32 %v3216_v60, %v7890_v16  ;;  %v6249_v22 = vpop.eup %6248  ;;  %v7970_v10 = vadd.f32 %v3259_v31, %v7890_v16 }
 0x53d   : > { %v3218_v58 = vpop.f32.mrf.mxu0  ;;  %v3261_v12 = vpop.f32.mrf.mxu1  ;;  %v3438_v27 = vmul.f32 0.5, %v6249_v22 }
 0x53e   : > { %v6251_v28 = vpop.eup %6250  ;;  %6254 = vtanh.f32 %v3360_v57  ;;  %v3361_v35 = vmul.f32 0.5, %v7966_v50  ;;  %v3363_v52 = vmul.f32 0.5, %v7970_v10  ;;  %v7976_v29 = vadd.f32 %v3218_v58, %v7897_v24 }
 0x53f   : > { %v6253_v9 = vpop.eup %6252  ;;  %v3437_v46 = vmul.f32 0.5, %v6251_v28  ;;  %6256 = vtanh.f32 %v3362_v5  ;;  %v3220_v37 = vpop.f32.mrf.mxu0  ;;  %v3470_v55 = vadd.f32 0.5, %v3438_v27  ;;  %v7980_v32 = vadd.f32 %v3261_v12, %v7897_v24 }
 0x540   : > { %v3439_v25 = vmul.f32 0.5, %v6253_v9  ;;  %6258 = vtanh.f32 %v3361_v35  ;;  %v3263_v26 = vpop.f32.mrf.mxu1  ;;  %v7983_v34 = vadd.f32 %v3220_v37, %v7897_v24  ;;  %v3376_v23 = vmul.f32 0.5, %v7976_v29 }
 0x541   : > { %v3469_v4 = vadd.f32 0.5, %v3437_v46  ;;  %6260 = vtanh.f32 %v3363_v52  ;;  %v3502_v44 = vmul.f32 %v3470_v55, %v7930_v33  ;;  %v7989_v45 = vadd.f32 %v3263_v26, %v7897_v24 }
 0x542   : > { %v3471_v40 = vadd.f32 0.5, %v3439_v25  ;;  %v3378_v38 = vmul.f32 0.5, %v7980_v32  ;;  %v3377_v61 = vmul.f32 0.5, %v7983_v34  ;;  %6262 = vtanh.f32 %v3376_v23 }
 0x543   : > { %v3501_v47 = vmul.f32 %v3469_v4, %v7933_v14  ;;  %v3379_v33 = vmul.f32 0.5, %v7989_v45  ;;  %v3519_v14 = vpack.c.bf16 %v3500_v19, %v3484_v63  ;;  %v3521_v54 = vpack.c.bf16 %v3502_v44, %v3486_v8 }
 0x544   : > { %v3503_v18 = vmul.f32 %v3471_v40, %v7943_v56  ;;  %6264 = vtanh.f32 %v3378_v38 }
 0x545   : > { %v3520_v36 = vpack.c.bf16 %v3501_v47, %v3485_v0  ;;  %6266 = vtanh.f32 %v3377_v61 }
 0x546   : > { %v3522_v41 = vpack.c.bf16 %v3503_v18, %v3487_v20  ;;  %6268 = vtanh.f32 %v3379_v33 }
 0x547   : > { %3652 = vmatprep.subr.bf16.mxu0 %v3520_v36 }
 0x548   : > { %3695 = vmatprep.subr.bf16.mxu1 %v3522_v41  ;;  %3653 = vmatpush1.bf16.msra.mxu0 %v3519_v14 }
 0x549   : > { %3696 = vmatpush1.bf16.msra.mxu1 %v3521_v54 }
 0x54b   : > { %v6255_v17 = vpop.eup %6254  ;;  %5782 = vmatmul.mubr.msk.bf16.vlgmr.msra.gmra.mxu0 %vm828_vm0, %v7949_v53 }
 0x54c   : > { %v6257_v56 = vpop.eup %6256  ;;  %v3424_v59 = vmul.f32 0.5, %v6255_v17  ;;  %5783 = vmatmul.mubr.msk.bf16.vlgmr.msra.gmra.mxu1 %vm828_vm0, %v7949_v53  ;;  %3756 = vmatprep.mubr.bf16.mxu0 %v6540_v2 }
 0x54d   : > { %v6259_v62 = vpop.eup %6258  ;;  %3799 = vmatprep.mubr.bf16.mxu1 %v6540_v2  ;;  %v3426_v15 = vmul.f32 0.5, %v6257_v56 }
 0x54e   : > { %v6261_v49 = vpop.eup %6260  ;;  %v3456_v11 = vadd.f32 0.5, %v3424_v59  ;;  %v3425_v39 = vmul.f32 0.5, %v6259_v62 }
 0x54f   : > { %v3427_v43 = vmul.f32 0.5, %v6261_v49  ;;  %v6263_v6 = vpop.eup %6262  ;;  %v3458_v5 = vadd.f32 0.5, %v3426_v15 }
 0x550   : > { %v3488_v57 = vmul.f32 %v3456_v11, %v7958_v42  ;;  %v3457_v13 = vadd.f32 0.5, %v3425_v39  ;;  %v3440_v58 = vmul.f32 0.5, %v6263_v6 }
 0x551   : > { %v3300_v60 = vpop.f32.mrf.mxu0  ;;  %v6265_v30 = vpop.eup %6264  ;;  %v3459_v35 = vadd.f32 0.5, %v3427_v43 }
 0x552   : > { %v8004_v31 = vadd.f32 %v3300_v60, %v7890_v16  ;;  %v3343_v48 = vpop.f32.mrf.mxu1  ;;  %v6267_v27 = vpop.eup %6266  ;;  %v3442_v9 = vmul.f32 0.5, %v6265_v30  ;;  %v3472_v37 = vadd.f32 0.5, %v3440_v58  ;;  %v3489_v40 = vmul.f32 %v3457_v13, %v7966_v50 }
 0x553   : > { %v8008_v22 = vadd.f32 %v3343_v48, %v7890_v16  ;;  %v3302_v63 = vpop.f32.mrf.mxu0  ;;  %v6269_v52 = vpop.eup %6268  ;;  %v3441_v51 = vmul.f32 0.5, %v6267_v27  ;;  %v3491_v50 = vmul.f32 %v3459_v35, %v7970_v10 }
 0x554   : > { %v3364_v12 = vmul.f32 0.5, %v8004_v31  ;;  %v8012_v28 = vadd.f32 %v3302_v63, %v7890_v16  ;;  %v3345_v1 = vpop.f32.mrf.mxu1  ;;  %v3474_v26 = vadd.f32 0.5, %v3442_v9  ;;  %v3443_v0 = vmul.f32 0.5, %v6269_v52 }
 0x555   : > { %v3366_v3 = vmul.f32 0.5, %v8008_v22  ;;  %v8016_v42 = vadd.f32 %v3345_v1, %v7890_v16  ;;  %v3304_v46 = vpop.f32.mrf.mxu0  ;;  %v3473_v44 = vadd.f32 0.5, %v3441_v51  ;;  %v3504_v23 = vmul.f32 %v3472_v37, %v7976_v29 }
 0x556   : > { %6270 = vtanh.f32 %v3364_v12  ;;  %v3365_v55 = vmul.f32 0.5, %v8012_v28  ;;  %v3347_v25 = vpop.f32.mrf.mxu1  ;;  %v3305_v16 = vadd.f32 %v3304_v46, %v7897_v24  ;;  %v3475_v20 = vadd.f32 0.5, %v3443_v0 }
 0x557   : > { %6272 = vtanh.f32 %v3366_v3  ;;  %v3367_v4 = vmul.f32 0.5, %v8016_v42  ;;  %v3306_v19 = vpop.f32.mrf.mxu0  ;;  %v3348_v18 = vadd.f32 %v3347_v25, %v7897_v24  ;;  %v3506_v38 = vmul.f32 %v3474_v26, %v7980_v32 }
 0x558   : > { %6274 = vtanh.f32 %v3365_v55  ;;  %v3349_v47 = vpop.f32.mrf.mxu1  ;;  %v3505_v61 = vmul.f32 %v3473_v44, %v7983_v34  ;;  %v3380_v8 = vmul.f32 0.5, %v3305_v16  ;;  %v3307_v33 = vadd.f32 %v3306_v19, %v7897_v24 }
 0x559   : > { %6276 = vtanh.f32 %v3367_v4  ;;  %v3507_v36 = vmul.f32 %v3475_v20, %v7989_v45  ;;  %v3382_v14 = vmul.f32 0.5, %v3348_v18  ;;  %v3350_v41 = vadd.f32 %v3349_v47, %v7897_v24 }
 0x55a   : > { %v3490_v29 = vmul.f32 %v3458_v5, %v7961_v7  ;;  %6278 = vtanh.f32 %v3380_v8  ;;  %v3381_v54 = vmul.f32 0.5, %v3307_v33  ;;  %v3524_v17 = vpack.c.bf16 %v3505_v61, %v3489_v40 }
 0x55b   : > { %v3523_v56 = vpack.c.bf16 %v3504_v23, %v3488_v57  ;;  %6280 = vtanh.f32 %v3382_v14  ;;  %v3383_v32 = vmul.f32 0.5, %v3350_v41  ;;  %v3526_v59 = vpack.c.bf16 %v3507_v36, %v3491_v50 }
 0x55c   : > { %v3525_v34 = vpack.c.bf16 %v3506_v38, %v3490_v29  ;;  %6282 = vtanh.f32 %v3381_v54  ;;  %3738 = vmatprep.subr.bf16.mxu0 %v3524_v17 }
 0x55d   : > { %6284 = vtanh.f32 %v3383_v32  ;;  %3781 = vmatprep.subr.bf16.mxu1 %v3526_v59  ;;  %3739 = vmatpush1.bf16.msra.mxu0 %v3523_v56 }
 0x55e   : > { %3782 = vmatpush1.bf16.msra.mxu1 %v3525_v34 }
 0x560   : > { %5784 = vmatmul.mubr.msk.bf16.vlgmr.msra.gmra.mxu0 %vm828_vm0, %v7949_v53 }
 0x561   : > { %5785 = vmatmul.mubr.msk.bf16.vlgmr.msra.gmra.mxu1 %vm828_vm0, %v7949_v53  ;;  %3842 = vmatprep.mubr.bf16.mxu0 %v6540_v2 }
 0x562   : > { %3885 = vmatprep.mubr.bf16.mxu1 %v6540_v2 }
 0x563   : > { %v6271_v24 = vpop.eup %6270 }
 0x564   : > { %v6273_v7 = vpop.eup %6272  ;;  %v3428_v11 = vmul.f32 0.5, %v6271_v24 }
 0x565   : > { %v6275_v10 = vpop.eup %6274  ;;  %v3430_v43 = vmul.f32 0.5, %v6273_v7 }
 0x566   : > { %v6277_v45 = vpop.eup %6276  ;;  %v3429_v62 = vmul.f32 0.5, %v6275_v10  ;;  %v3460_v13 = vadd.f32 0.5, %v3428_v11 }
 0x567   : > { %v6279_v49 = vpop.eup %6278  ;;  %v3431_v15 = vmul.f32 0.5, %v6277_v45  ;;  %v3462_v27 = vadd.f32 0.5, %v3430_v43 }
 0x568   : > { %v6281_v39 = vpop.eup %6280  ;;  %v3444_v60 = vmul.f32 0.5, %v6279_v49  ;;  %v3461_v5 = vadd.f32 0.5, %v3429_v62  ;;  %v3492_v51 = vmul.f32 %v3460_v13, %v8004_v31  ;;  %v8047_v31 = vpop.permute.xlu0 %3536 }
 0x569   : > { %v6283_v48 = vpop.eup %6282  ;;  %v3446_v6 = vmul.f32 0.5, %v6281_v39  ;;  %v3463_v58 = vadd.f32 0.5, %v3431_v15  ;;  %v3494_v26 = vmul.f32 %v3462_v27, %v8008_v22 }
 0x56a   : > { %v6285_v57 = vpop.eup %6284  ;;  %v3476_v63 = vadd.f32 0.5, %v3444_v60  ;;  %v3445_v30 = vmul.f32 0.5, %v6283_v48  ;;  %v3493_v46 = vmul.f32 %v3461_v5, %v8012_v28 }
 0x56b   : > { %v3478_v12 = vadd.f32 0.5, %v3446_v6  ;;  %v3447_v1 = vmul.f32 0.5, %v6285_v57  ;;  %v3495_v55 = vmul.f32 %v3463_v58, %v8016_v42 }
 0x56c   : > { %v3477_v35 = vadd.f32 0.5, %v3445_v30  ;;  %v3508_v9 = vmul.f32 %v3476_v63, %v3305_v16 }
 0x56d   : > { %v3479_v3 = vadd.f32 0.5, %v3447_v1  ;;  %v3510_v52 = vmul.f32 %v3478_v12, %v3348_v18  ;;  %v8052_v18 = vpop.permute.xlu1 %3541 }
 0x56e   : > { %v3509_v37 = vmul.f32 %v3477_v35, %v3307_v33  ;;  %v3527_v4 = vpack.c.bf16 %v3508_v9, %v3492_v51 }
 0x56f   : > { %v3511_v25 = vmul.f32 %v3479_v3, %v3350_v41  ;;  %v3529_v40 = vpack.c.bf16 %v3510_v52, %v3494_v26 }
 0x570   : > { %v3528_v0 = vpack.c.bf16 %v3509_v37, %v3493_v46 }
 0x571   : > { %v3530_v19 = vpack.c.bf16 %v3511_v25, %v3495_v55 }
 0x572   : > { %3824 = vmatprep.subr.bf16.mxu0 %v3528_v0 }
 0x573   : > { %3867 = vmatprep.subr.bf16.mxu1 %v3530_v19  ;;  %3825 = vmatpush1.bf16.msra.mxu0 %v3527_v4 }
 0x574   : > { %3868 = vmatpush1.bf16.msra.mxu1 %v3529_v40 }
 0x576   : > { %5786 = vmatmul.mubr.msk.bf16.vlgmr.msra.gmra.mxu0 %vm828_vm0, %v7949_v53 }
 0x577   : > { %5787 = vmatmul.mubr.msk.bf16.vlgmr.msra.gmra.mxu1 %vm828_vm0, %v7949_v53  ;;  %4128 = vmatprep.mubr.bf16.mxu0 %v6540_v2 }
 0x578   : > { %4171 = vmatprep.mubr.bf16.mxu1 %v6540_v2 }
 0x5f6   : > { %v3586_v22 = vpop.f32.mrf.mxu0 }
 0x5f7   : > { %v3587_v28 = vadd.f32 %v3586_v22, %v8047_v31  ;;  %v3629_v42 = vpop.f32.mrf.mxu1 }
 0x5f8   : > { %v3630_v44 = vadd.f32 %v3629_v42, %v8047_v31  ;;  %v3588_v16 = vpop.f32.mrf.mxu0 }
 0x5f9   : > { %v3896_v47 = vmul.f32 0.5, %v3587_v28  ;;  %v3589_v23 = vadd.f32 %v3588_v16, %v8047_v31  ;;  %v3631_v20 = vpop.f32.mrf.mxu1 }
 0x5fa   : > { %v3898_v53 = vmul.f32 0.5, %v3630_v44  ;;  %v3632_v38 = vadd.f32 %v3631_v20, %v8047_v31  ;;  %v3590_v61 = vpop.f32.mrf.mxu0 }
 0x5fb   : > { %6286 = vtanh.f32 %v3896_v47  ;;  %v3897_v8 = vmul.f32 0.5, %v3589_v23  ;;  %v3591_v33 = vadd.f32 %v3590_v61, %v8052_v18  ;;  %v3633_v50 = vpop.f32.mrf.mxu1 }
 0x5fc   : > { %6288 = vtanh.f32 %v3898_v53  ;;  %v3899_v36 = vmul.f32 0.5, %v3632_v38  ;;  %v3634_v14 = vadd.f32 %v3633_v50, %v8052_v18  ;;  %v3592_v41 = vpop.f32.mrf.mxu0 }
 0x5fd   : > { %6290 = vtanh.f32 %v3897_v8  ;;  %v3912_v29 = vmul.f32 0.5, %v3591_v33  ;;  %v3593_v54 = vadd.f32 %v3592_v41, %v8052_v18  ;;  %v3635_v17 = vpop.f32.mrf.mxu1 }
 0x5fe   : > { %6292 = vtanh.f32 %v3899_v36  ;;  %v3914_v56 = vmul.f32 0.5, %v3634_v14  ;;  %v3636_v32 = vadd.f32 %v3635_v17, %v8052_v18 }
 0x5ff   : > { %6294 = vtanh.f32 %v3912_v29  ;;  %v3913_v59 = vmul.f32 0.5, %v3593_v54 }
 0x600   : > { %6296 = vtanh.f32 %v3914_v56  ;;  %v3915_v34 = vmul.f32 0.5, %v3636_v32 }
 0x601   : > { %6298 = vtanh.f32 %v3913_v59 }
 0x602   : > { %6300 = vtanh.f32 %v3915_v34 }
 0x608   : > { %v6287_v24 = vpop.eup %6286 }
 0x609   : > { %v6289_v7 = vpop.eup %6288  ;;  %v3960_v10 = vmul.f32 0.5, %v6287_v24  ;;  %v8094_v24 = vld [vmem:[%s8539_s1 + $0x38] sm:$0xff]  }
 0x60a   : > { %v6291_v45 = vpop.eup %6290  ;;  %v3962_v62 = vmul.f32 0.5, %v6289_v7 }
 0x60b   : > { %v6293_v49 = vpop.eup %6292  ;;  %v3992_v11 = vadd.f32 0.5, %v3960_v10  ;;  %v3961_v15 = vmul.f32 0.5, %v6291_v45  ;;  %v3672_v5 = vpop.f32.mrf.mxu0 }
 0x60c   : > { %v6295_v39 = vpop.eup %6294  ;;  %v3994_v43 = vadd.f32 0.5, %v3962_v62  ;;  %v3963_v60 = vmul.f32 0.5, %v6293_v49  ;;  %v8060_v12 = vadd.f32 %v3672_v5, %v8047_v31  ;;  %v3715_v1 = vpop.f32.mrf.mxu1 }
 0x60d   : > { %v6297_v48 = vpop.eup %6296  ;;  %v3993_v6 = vadd.f32 0.5, %v3961_v15  ;;  %v3976_v57 = vmul.f32 0.5, %v6295_v39  ;;  %v4024_v30 = vmul.f32 %v3992_v11, %v3587_v28  ;;  %v8063_v46 = vadd.f32 %v3715_v1, %v8047_v31  ;;  %v3674_v52 = vpop.f32.mrf.mxu0 }
 0x60e   : > { %v6299_v63 = vpop.eup %6298  ;;  %v3995_v13 = vadd.f32 0.5, %v3963_v60  ;;  %v3978_v58 = vmul.f32 0.5, %v6297_v48  ;;  %v4026_v35 = vmul.f32 %v3994_v43, %v3630_v44  ;;  %v3900_v25 = vmul.f32 0.5, %v8060_v12  ;;  %v3717_v26 = vpop.f32.mrf.mxu1 }
 0x60f   : > { %v6301_v27 = vpop.eup %6300  ;;  %v4008_v9 = vadd.f32 0.5, %v3976_v57  ;;  %v3977_v3 = vmul.f32 0.5, %v6299_v63  ;;  %v4025_v37 = vmul.f32 %v3993_v6, %v3589_v23  ;;  %v3902_v19 = vmul.f32 0.5, %v8063_v46  ;;  %v3676_v22 = vpop.f32.mrf.mxu0 }
 0x610   : > { %v4010_v51 = vadd.f32 0.5, %v3978_v58  ;;  %v3979_v55 = vmul.f32 0.5, %v6301_v27  ;;  %v8068_v40 = vadd.f32 %v3674_v52, %v8047_v31  ;;  %v4027_v28 = vmul.f32 %v3995_v13, %v3632_v38  ;;  %v3719_v16 = vpop.f32.mrf.mxu1 }
 0x611   : > { %v4040_v0 = vmul.f32 %v4008_v9, %v3591_v33  ;;  %v4009_v4 = vadd.f32 0.5, %v3977_v3  ;;  %6302 = vtanh.f32 %v3900_v25  ;;  %v8071_v44 = vadd.f32 %v3717_v26, %v8047_v31  ;;  %v3678_v53 = vpop.f32.mrf.mxu0 }
 0x612   : > { %v4011_v42 = vadd.f32 0.5, %v3979_v55  ;;  %v4042_v47 = vmul.f32 %v4010_v51, %v3634_v14  ;;  %6304 = vtanh.f32 %v3902_v19  ;;  %v3901_v20 = vmul.f32 0.5, %v8068_v40  ;;  %v3721_v38 = vpop.f32.mrf.mxu1 }
 0x613   : > { %v4041_v23 = vmul.f32 %v4009_v4, %v3593_v54  ;;  %v4059_v61 = vpack.c.bf16 %v4040_v0, %v4024_v30  ;;  %v3903_v33 = vmul.f32 0.5, %v8071_v44  ;;  %v8076_v50 = vadd.f32 %v3676_v22, %v8052_v18 }
 0x614   : > { %v4043_v8 = vmul.f32 %v4011_v42, %v3636_v32  ;;  %6306 = vtanh.f32 %v3901_v20  ;;  %v8079_v36 = vadd.f32 %v3719_v16, %v8052_v18  ;;  %v8082_v41 = vadd.f32 %v3678_v53, %v8052_v18 }
 0x615   : > { %v8085_v14 = vadd.f32 %v3721_v38, %v8052_v18  ;;  %6308 = vtanh.f32 %v3903_v33  ;;  %v3916_v29 = vmul.f32 0.5, %v8076_v50  ;;  %v4060_v54 = vpack.c.bf16 %v4041_v23, %v4025_v37 }
 0x616   : > { %v4062_v17 = vpack.c.bf16 %v4043_v8, %v4027_v28  ;;  %v4061_v56 = vpack.c.bf16 %v4042_v47, %v4026_v35  ;;  %v3918_v32 = vmul.f32 0.5, %v8079_v36  ;;  %v3917_v59 = vmul.f32 0.5, %v8082_v41 }
 0x617   : > { %v3919_v34 = vmul.f32 0.5, %v8085_v14  ;;  %6310 = vtanh.f32 %v3916_v29  ;;  %4110 = vmatprep.subr.bf16.mxu0 %v4060_v54 }
 0x618   : > { %4153 = vmatprep.subr.bf16.mxu1 %v4062_v17  ;;  %6312 = vtanh.f32 %v3918_v32  ;;  %4111 = vmatpush1.bf16.msra.mxu0 %v4059_v61 }
 0x619   : > { %4154 = vmatpush1.bf16.msra.mxu1 %v4061_v56  ;;  %6314 = vtanh.f32 %v3917_v59 }
 0x61a   : > { %6316 = vtanh.f32 %v3919_v34 }
 0x61b   : > { %5793 = vmatmul.mubr.msk.bf16.vlgmr.msra.gmra.mxu0 %vm828_vm0, %v8094_v24 }
 0x61c   : > { %5794 = vmatmul.mubr.msk.bf16.vlgmr.msra.gmra.mxu1 %vm828_vm0, %v8094_v24  ;;  %4214 = vmatprep.mubr.bf16.mxu0 %v6540_v2 }
 0x61d   : > { %4257 = vmatprep.mubr.bf16.mxu1 %v6540_v2 }
 0x61e   : > { %v6303_v7 = vpop.eup %6302 }
 0x61f   : > { %v6305_v10 = vpop.eup %6304  ;;  %v3964_v45 = vmul.f32 0.5, %v6303_v7 }
 0x620   : > { %v3966_v62 = vmul.f32 0.5, %v6305_v10  ;;  %v3758_v43 = vpop.f32.mrf.mxu0 }
 0x621   : > { %v6307_v49 = vpop.eup %6306  ;;  %v3996_v15 = vadd.f32 0.5, %v3964_v45  ;;  %v8103_v48 = vadd.f32 %v3758_v43, %v8047_v31  ;;  %v3801_v6 = vpop.f32.mrf.mxu1 }
 0x622   : > { %v6309_v11 = vpop.eup %6308  ;;  %v3965_v39 = vmul.f32 0.5, %v6307_v49  ;;  %v3998_v5 = vadd.f32 0.5, %v3966_v62  ;;  %v8106_v63 = vadd.f32 %v3801_v6, %v8047_v31  ;;  %v3760_v30 = vpop.f32.mrf.mxu0 }
 0x623   : > { %v3967_v60 = vmul.f32 0.5, %v6309_v11  ;;  %v3904_v27 = vmul.f32 0.5, %v8103_v48  ;;  %v8110_v35 = vadd.f32 %v3760_v30, %v8047_v31  ;;  %v3803_v9 = vpop.f32.mrf.mxu1  ;;  %v4028_v52 = vmul.f32 %v3996_v15, %v8060_v12 }
 0x624   : > { %v6311_v57 = vpop.eup %6310  ;;  %v3997_v58 = vadd.f32 0.5, %v3965_v39  ;;  %v3906_v51 = vmul.f32 0.5, %v8106_v63  ;;  %v8115_v55 = vadd.f32 %v3803_v9, %v8047_v31  ;;  %v3762_v25 = vpop.f32.mrf.mxu0  ;;  %v4030_v59 = vmul.f32 %v3998_v5, %v8063_v46 }
 0x625   : > { %v6313_v13 = vpop.eup %6312  ;;  %v3980_v1 = vmul.f32 0.5, %v6311_v57  ;;  %v3999_v0 = vadd.f32 0.5, %v3967_v60  ;;  %6318 = vtanh.f32 %v3904_v27  ;;  %v3805_v22 = vpop.f32.mrf.mxu1  ;;  %v3905_v16 = vmul.f32 0.5, %v8110_v35 }
 0x626   : > { %v6315_v3 = vpop.eup %6314  ;;  %v3982_v37 = vmul.f32 0.5, %v6313_v13  ;;  %6320 = vtanh.f32 %v3906_v51  ;;  %v4029_v12 = vmul.f32 %v3997_v58, %v8068_v40  ;;  %v3907_v23 = vmul.f32 0.5, %v8115_v55  ;;  %v3764_v53 = vpop.f32.mrf.mxu0 }
 0x627   : > { %v6317_v26 = vpop.eup %6316  ;;  %v4012_v4 = vadd.f32 0.5, %v3980_v1  ;;  %v3981_v19 = vmul.f32 0.5, %v6315_v3  ;;  %v8121_v20 = vadd.f32 %v3762_v25, %v8052_v18  ;;  %6322 = vtanh.f32 %v3905_v16  ;;  %v3807_v38 = vpop.f32.mrf.mxu1 }
 0x628   : > { %v4014_v28 = vadd.f32 0.5, %v3982_v37  ;;  %v3983_v42 = vmul.f32 0.5, %v6317_v26  ;;  %v8125_v33 = vadd.f32 %v3805_v22, %v8052_v18  ;;  %6324 = vtanh.f32 %v3907_v23 }
 0x629   : > { %v4013_v47 = vadd.f32 0.5, %v3981_v19  ;;  %v4044_v61 = vmul.f32 %v4012_v4, %v8076_v50  ;;  %v3920_v40 = vmul.f32 0.5, %v8121_v20  ;;  %v4031_v17 = vmul.f32 %v3999_v0, %v8071_v44 }
 0x62a   : > { %v4015_v8 = vadd.f32 0.5, %v3983_v42  ;;  %v4046_v29 = vmul.f32 %v4014_v28, %v8079_v36  ;;  %v3922_v32 = vmul.f32 0.5, %v8125_v33  ;;  %v8134_v50 = vadd.f32 %v3764_v53, %v8052_v18 }
 0x62b   : > { %v4045_v54 = vmul.f32 %v4013_v47, %v8082_v41  ;;  %6326 = vtanh.f32 %v3920_v40  ;;  %v8138_v34 = vadd.f32 %v3807_v38, %v8052_v18  ;;  %v4063_v41 = vpack.c.bf16 %v4044_v61, %v4028_v52 }
 0x62c   : > { %v4047_v56 = vmul.f32 %v4015_v8, %v8085_v14  ;;  %6328 = vtanh.f32 %v3922_v32  ;;  %v3921_v7 = vmul.f32 0.5, %v8134_v50  ;;  %v4065_v44 = vpack.c.bf16 %v4046_v29, %v4030_v59 }
 0x62d   : > { %v4064_v36 = vpack.c.bf16 %v4045_v54, %v4029_v12  ;;  %v3923_v14 = vmul.f32 0.5, %v8138_v34 }
 0x62e   : > { %v4066_v10 = vpack.c.bf16 %v4047_v56, %v4031_v17  ;;  %6330 = vtanh.f32 %v3921_v7 }
 0x62f   : > { %4196 = vmatprep.subr.bf16.mxu0 %v4064_v36  ;;  %6332 = vtanh.f32 %v3923_v14 }
 0x630   : > { %4239 = vmatprep.subr.bf16.mxu1 %v4066_v10  ;;  %4197 = vmatpush1.bf16.msra.mxu0 %v4063_v41 }
 0x631   : > { %4240 = vmatpush1.bf16.msra.mxu1 %v4065_v44 }
 0x632   : > { %v6319_v46 = vpop.eup %6318 }
 0x633   : > { %5795 = vmatmul.mubr.msk.bf16.vlgmr.msra.gmra.mxu0 %vm828_vm0, %v8094_v24  ;;  %v6321_v45 = vpop.eup %6320  ;;  %v3968_v62 = vmul.f32 0.5, %v6319_v46 }
 0x634   : > { %5796 = vmatmul.mubr.msk.bf16.vlgmr.msra.gmra.mxu1 %vm828_vm0, %v8094_v24  ;;  %4300 = vmatprep.mubr.bf16.mxu0 %v6540_v2  ;;  %v3970_v49 = vmul.f32 0.5, %v6321_v45  ;;  %v6323_v11 = vpop.eup %6322 }
 0x635   : > { %4343 = vmatprep.mubr.bf16.mxu1 %v6540_v2  ;;  %v6325_v15 = vpop.eup %6324  ;;  %v3969_v39 = vmul.f32 0.5, %v6323_v11  ;;  %v4000_v60 = vadd.f32 0.5, %v3968_v62 }
 0x636   : > { %v3844_v43 = vpop.f32.mrf.mxu0  ;;  %v4002_v30 = vadd.f32 0.5, %v3970_v49  ;;  %v3971_v27 = vmul.f32 0.5, %v6325_v15 }
 0x637   : > { %v8149_v6 = vadd.f32 %v3844_v43, %v8047_v31  ;;  %v3887_v57 = vpop.f32.mrf.mxu1  ;;  %v4001_v51 = vadd.f32 0.5, %v3969_v39  ;;  %v4032_v22 = vmul.f32 %v4000_v60, %v8103_v48 }
 0x638   : > { %v6327_v5 = vpop.eup %6326  ;;  %v8152_v13 = vadd.f32 %v3887_v57, %v8047_v31  ;;  %v3846_v58 = vpop.f32.mrf.mxu0  ;;  %v4003_v8 = vadd.f32 0.5, %v3971_v27  ;;  %v4034_v46 = vmul.f32 %v4002_v30, %v8106_v63 }
 0x639   : > { %v6329_v1 = vpop.eup %6328  ;;  %v3984_v9 = vmul.f32 0.5, %v6327_v5  ;;  %v3908_v3 = vmul.f32 0.5, %v8149_v6  ;;  %v8156_v52 = vadd.f32 %v3846_v58, %v8047_v31  ;;  %v3889_v37 = vpop.f32.mrf.mxu1  ;;  %v4033_v48 = vmul.f32 %v4001_v51, %v8110_v35 }
 0x63a   : > { %v3986_v25 = vmul.f32 0.5, %v6329_v1  ;;  %v3910_v26 = vmul.f32 0.5, %v8152_v13  ;;  %v8160_v0 = vadd.f32 %v3889_v37, %v8047_v31  ;;  %v3848_v4 = vpop.f32.mrf.mxu0  ;;  %v4035_v44 = vmul.f32 %v4003_v8, %v8115_v55 }
 0x63b   : > { %v6331_v19 = vpop.eup %6330  ;;  %v4016_v28 = vadd.f32 0.5, %v3984_v9  ;;  %6334 = vtanh.f32 %v3908_v3  ;;  %v3909_v42 = vmul.f32 0.5, %v8156_v52  ;;  %v3891_v16 = vpop.f32.mrf.mxu1  ;;  %v3849_v31 = vadd.f32 %v3848_v4, %v8052_v18 }
 0x63c   : > { %v6333_v12 = vpop.eup %6332  ;;  %v4018_v47 = vadd.f32 0.5, %v3986_v25  ;;  %v3985_v23 = vmul.f32 0.5, %v6331_v19  ;;  %6336 = vtanh.f32 %v3910_v26  ;;  %v3911_v53 = vmul.f32 0.5, %v8160_v0  ;;  %v3850_v61 = vpop.f32.mrf.mxu0 }
 0x63d   : > { %v3987_v38 = vmul.f32 0.5, %v6333_v12  ;;  %6338 = vtanh.f32 %v3909_v42  ;;  %v3893_v29 = vpop.f32.mrf.mxu1  ;;  %v3892_v40 = vadd.f32 %v3891_v16, %v8052_v18  ;;  %v4048_v17 = vmul.f32 %v4016_v28, %v8121_v20 }
 0x63e   : > { %v4017_v54 = vadd.f32 0.5, %v3985_v23  ;;  %6340 = vtanh.f32 %v3911_v53  ;;  %v3924_v32 = vmul.f32 0.5, %v3849_v31  ;;  %v3851_v59 = vadd.f32 %v3850_v61, %v8052_v18 }
 0x63f   : > { %v4019_v56 = vadd.f32 0.5, %v3987_v38  ;;  %v4050_v36 = vmul.f32 %v4018_v47, %v8125_v33  ;;  %v3926_v7 = vmul.f32 0.5, %v3892_v40  ;;  %v3894_v10 = vadd.f32 %v3893_v29, %v8052_v18 }
 0x640   : > { %v4049_v41 = vmul.f32 %v4017_v54, %v8134_v50  ;;  %6342 = vtanh.f32 %v3924_v32  ;;  %v3925_v14 = vmul.f32 0.5, %v3851_v59  ;;  %v4067_v62 = vpack.c.bf16 %v4048_v17, %v4032_v22 }
 0x641   : > { %v4051_v35 = vmul.f32 %v4019_v56, %v8138_v34  ;;  %6344 = vtanh.f32 %v3926_v7  ;;  %v3927_v20 = vmul.f32 0.5, %v3894_v10  ;;  %v4069_v33 = vpack.c.bf16 %v4050_v36, %v4034_v46 }
 0x642   : > { %v4068_v45 = vpack.c.bf16 %v4049_v41, %v4033_v48  ;;  %6346 = vtanh.f32 %v3925_v14 }
 0x643   : > { %v4070_v49 = vpack.c.bf16 %v4051_v35, %v4035_v44  ;;  %6348 = vtanh.f32 %v3927_v20 }
 0x644   : > { %4282 = vmatprep.subr.bf16.mxu0 %v4068_v45 }
 0x645   : > { %4325 = vmatprep.subr.bf16.mxu1 %v4070_v49  ;;  %4283 = vmatpush1.bf16.msra.mxu0 %v4067_v62 }
 0x646   : > { %4326 = vmatpush1.bf16.msra.mxu1 %v4069_v33 }
 0x648   : > { %v6335_v18 = vpop.eup %6334  ;;  %5797 = vmatmul.mubr.msk.bf16.vlgmr.msra.gmra.mxu0 %vm828_vm0, %v8094_v24 }
 0x649   : > { %v6337_v55 = vpop.eup %6336  ;;  %5798 = vmatmul.mubr.msk.bf16.vlgmr.msra.gmra.mxu1 %vm828_vm0, %v8094_v24  ;;  %4386 = vmatprep.mubr.bf16.mxu0 %v6540_v2  ;;  %v3972_v15 = vmul.f32 0.5, %v6335_v18 }
 0x64a   : > { %v6339_v63 = vpop.eup %6338  ;;  %4429 = vmatprep.mubr.bf16.mxu1 %v6540_v2  ;;  %v3974_v60 = vmul.f32 0.5, %v6337_v55 }
 0x64b   : > { %v6341_v50 = vpop.eup %6340  ;;  %v3973_v34 = vmul.f32 0.5, %v6339_v63  ;;  %v4004_v3 = vadd.f32 0.5, %v3972_v15 }
 0x64c   : > { %v3975_v39 = vmul.f32 0.5, %v6341_v50  ;;  %v4006_v26 = vadd.f32 0.5, %v3974_v60 }
 0x64d   : > { %v6343_v11 = vpop.eup %6342  ;;  %v4005_v1 = vadd.f32 0.5, %v3973_v34  ;;  %v4036_v12 = vmul.f32 %v4004_v3, %v8149_v6  ;;  %v8192_v6 = vpop.permute.xlu0 %4080 }
 0x64e   : > { %v6345_v43 = vpop.eup %6344  ;;  %v3988_v57 = vmul.f32 0.5, %v6343_v11  ;;  %v4007_v37 = vadd.f32 0.5, %v3975_v39  ;;  %v4038_v53 = vmul.f32 %v4006_v26, %v8152_v13 }
 0x64f   : > { %v6347_v5 = vpop.eup %6346  ;;  %v3990_v30 = vmul.f32 0.5, %v6345_v43  ;;  %v4037_v28 = vmul.f32 %v4005_v1, %v8156_v52 }
 0x650   : > { %v6349_v58 = vpop.eup %6348  ;;  %v4020_v27 = vadd.f32 0.5, %v3988_v57  ;;  %v3989_v9 = vmul.f32 0.5, %v6347_v5  ;;  %v4039_v47 = vmul.f32 %v4007_v37, %v8160_v0 }
 0x651   : > { %v4022_v51 = vadd.f32 0.5, %v3990_v30  ;;  %v3991_v25 = vmul.f32 0.5, %v6349_v58 }
 0x652   : > { %v4021_v4 = vadd.f32 0.5, %v3989_v9  ;;  %v4052_v19 = vmul.f32 %v4020_v27, %v3849_v31 }
 0x653   : > { %v4023_v22 = vadd.f32 0.5, %v3991_v25  ;;  %v4054_v42 = vmul.f32 %v4022_v51, %v3892_v40  ;;  %v8196_v40 = vpop.permute.xlu1 %4085 }
 0x654   : > { %v4053_v16 = vmul.f32 %v4021_v4, %v3851_v59  ;;  %v4071_v8 = vpack.c.bf16 %v4052_v19, %v4036_v12 }
 0x655   : > { %v4055_v23 = vmul.f32 %v4023_v22, %v3894_v10  ;;  %v4073_v29 = vpack.c.bf16 %v4054_v42, %v4038_v53 }
 0x656   : > { %v4072_v61 = vpack.c.bf16 %v4053_v16, %v4037_v28 }
 0x657   : > { %v4074_v38 = vpack.c.bf16 %v4055_v23, %v4039_v47 }
 0x658   : > { %4368 = vmatprep.subr.bf16.mxu0 %v4072_v61 }
 0x659   : > { %4411 = vmatprep.subr.bf16.mxu1 %v4074_v38  ;;  %4369 = vmatpush1.bf16.msra.mxu0 %v4071_v8 }
 0x65a   : > { %4412 = vmatpush1.bf16.msra.mxu1 %v4073_v29 }
 0x65c   : > { %5799 = vmatmul.mubr.msk.bf16.vlgmr.msra.gmra.mxu0 %vm828_vm0, %v8094_v24 }
 0x65d   : > { %5800 = vmatmul.mubr.msk.bf16.vlgmr.msra.gmra.mxu1 %vm828_vm0, %v8094_v24  ;;  %4672 = vmatprep.mubr.bf16.mxu0 %v6540_v2 }
 0x65e   : > { %4715 = vmatprep.mubr.bf16.mxu1 %v6540_v2 }
 0x6db   : > { %v4130_v13 = vpop.f32.mrf.mxu0 }
 0x6dc   : > { %v4173_v52 = vpop.f32.mrf.mxu1  ;;  %v4131_v0 = vadd.f32 %v4130_v13, %v8192_v6 }
 0x6dd   : > { %v4174_v31 = vadd.f32 %v4173_v52, %v8192_v6  ;;  %v4132_v48 = vpop.f32.mrf.mxu0 }
 0x6de   : > { %v4175_v54 = vpop.f32.mrf.mxu1  ;;  %v4440_v17 = vmul.f32 0.5, %v4131_v0  ;;  %v4133_v24 = vadd.f32 %v4132_v48, %v8192_v6 }
 0x6df   : > { %v4442_v56 = vmul.f32 0.5, %v4174_v31  ;;  %v4176_v32 = vadd.f32 %v4175_v54, %v8192_v6  ;;  %v4134_v59 = vpop.f32.mrf.mxu0 }
 0x6e0   : > { %v4177_v36 = vpop.f32.mrf.mxu1  ;;  %6350 = vtanh.f32 %v4440_v17  ;;  %v4441_v41 = vmul.f32 0.5, %v4133_v24  ;;  %v4135_v10 = vadd.f32 %v4134_v59, %v8196_v40 }
 0x6e1   : > { %v4443_v7 = vmul.f32 0.5, %v4176_v32  ;;  %6352 = vtanh.f32 %v4442_v56  ;;  %v4178_v44 = vadd.f32 %v4177_v36, %v8196_v40  ;;  %v4136_v35 = vpop.f32.mrf.mxu0 }
 0x6e2   : > { %v4179_v14 = vpop.f32.mrf.mxu1  ;;  %6354 = vtanh.f32 %v4441_v41  ;;  %v4456_v46 = vmul.f32 0.5, %v4135_v10  ;;  %v4137_v20 = vadd.f32 %v4136_v35, %v8196_v40 }
 0x6e3   : > { %v4180_v45 = vadd.f32 %v4179_v14, %v8196_v40  ;;  %6356 = vtanh.f32 %v4443_v7  ;;  %v4458_v62 = vmul.f32 0.5, %v4178_v44 }
 0x6e4   : > { %6358 = vtanh.f32 %v4456_v46  ;;  %v4457_v49 = vmul.f32 0.5, %v4137_v20 }
 0x6e5   : > { %v4459_v33 = vmul.f32 0.5, %v4180_v45  ;;  %6360 = vtanh.f32 %v4458_v62 }
 0x6e6   : > { %6362 = vtanh.f32 %v4457_v49 }
 0x6e7   : > { %6364 = vtanh.f32 %v4459_v33 }
 0x6ed   : > { %v6351_v18 = vpop.eup %6350 }
 0x6ee   : > { %v6353_v55 = vpop.eup %6352  ;;  %v4504_v63 = vmul.f32 0.5, %v6351_v18  ;;  %v8239_v18 = vld [vmem:[%s8539_s1 + $0x40] sm:$0xff]  }
 0x6ef   : > { %v6355_v50 = vpop.eup %6354  ;;  %v4506_v34 = vmul.f32 0.5, %v6353_v55 }
 0x6f0   : > { %v6357_v11 = vpop.eup %6356  ;;  %v4536_v15 = vadd.f32 0.5, %v4504_v63  ;;  %v4505_v39 = vmul.f32 0.5, %v6355_v50 }
 0x6f1   : > { %v6359_v43 = vpop.eup %6358  ;;  %v4538_v60 = vadd.f32 0.5, %v4506_v34  ;;  %v4507_v57 = vmul.f32 0.5, %v6357_v11 }
 0x6f2   : > { %v6361_v5 = vpop.eup %6360  ;;  %v4537_v30 = vadd.f32 0.5, %v4505_v39  ;;  %v4520_v58 = vmul.f32 0.5, %v6359_v43  ;;  %v4568_v27 = vmul.f32 %v4536_v15, %v4131_v0 }
 0x6f3   : > { %v6363_v1 = vpop.eup %6362  ;;  %v4539_v9 = vadd.f32 0.5, %v4507_v57  ;;  %v4522_v3 = vmul.f32 0.5, %v6361_v5  ;;  %v4216_v37 = vpop.f32.mrf.mxu0  ;;  %v4570_v25 = vmul.f32 %v4538_v60, %v4174_v31 }
 0x6f4   : > { %v6365_v51 = vpop.eup %6364  ;;  %v4552_v26 = vadd.f32 0.5, %v4520_v58  ;;  %v4521_v4 = vmul.f32 0.5, %v6363_v1  ;;  %v8205_v19 = vadd.f32 %v4216_v37, %v8192_v6  ;;  %v4259_v22 = vpop.f32.mrf.mxu1  ;;  %v4569_v28 = vmul.f32 %v4537_v30, %v4133_v24 }
 0x6f5   : > { %v4554_v42 = vadd.f32 0.5, %v4522_v3  ;;  %v4523_v16 = vmul.f32 0.5, %v6365_v51  ;;  %v8208_v12 = vadd.f32 %v4259_v22, %v8192_v6  ;;  %v4218_v47 = vpop.f32.mrf.mxu0  ;;  %v4571_v29 = vmul.f32 %v4539_v9, %v4176_v32 }
 0x6f6   : > { %v4584_v23 = vmul.f32 %v4552_v26, %v4135_v10  ;;  %v4553_v53 = vadd.f32 0.5, %v4521_v4  ;;  %v4444_v61 = vmul.f32 0.5, %v8205_v19  ;;  %v8212_v8 = vadd.f32 %v4218_v47, %v8192_v6  ;;  %v4261_v38 = vpop.f32.mrf.mxu1 }
 0x6f7   : > { %v4555_v13 = vadd.f32 0.5, %v4523_v16  ;;  %v4446_v52 = vmul.f32 0.5, %v8208_v12  ;;  %v8216_v0 = vadd.f32 %v4261_v38, %v8192_v6  ;;  %v4220_v31 = vpop.f32.mrf.mxu0  ;;  %v4586_v48 = vmul.f32 %v4554_v42, %v4178_v44 }
 0x6f8   : > { %v4585_v54 = vmul.f32 %v4553_v53, %v4137_v20  ;;  %6366 = vtanh.f32 %v4444_v61  ;;  %v4445_v17 = vmul.f32 0.5, %v8212_v8  ;;  %v4263_v56 = vpop.f32.mrf.mxu1  ;;  %v4603_v24 = vpack.c.bf16 %v4584_v23, %v4568_v27 }
 0x6f9   : > { %v4587_v59 = vmul.f32 %v4555_v13, %v4180_v45  ;;  %6368 = vtanh.f32 %v4446_v52  ;;  %v4447_v36 = vmul.f32 0.5, %v8216_v0  ;;  %v4222_v41 = vpop.f32.mrf.mxu0  ;;  %v8221_v32 = vadd.f32 %v4220_v31, %v8196_v40 }
 0x6fa   : > { %6370 = vtanh.f32 %v4445_v17  ;;  %v8224_v7 = vadd.f32 %v4263_v56, %v8196_v40  ;;  %v8227_v10 = vadd.f32 %v4222_v41, %v8196_v40  ;;  %v4265_v44 = vpop.f32.mrf.mxu1  ;;  %v4604_v14 = vpack.c.bf16 %v4585_v54, %v4569_v28 }
 0x6fb   : > { %6372 = vtanh.f32 %v4447_v36  ;;  %v8230_v35 = vadd.f32 %v4265_v44, %v8196_v40  ;;  %v4606_v46 = vpack.c.bf16 %v4587_v59, %v4571_v29  ;;  %v4605_v20 = vpack.c.bf16 %v4586_v48, %v4570_v25 }
 0x6fc   : > { %v4460_v45 = vmul.f32 0.5, %v8221_v32  ;;  %v4462_v62 = vmul.f32 0.5, %v8224_v7  ;;  %v4461_v49 = vmul.f32 0.5, %v8227_v10  ;;  %4654 = vmatprep.subr.bf16.mxu0 %v4604_v14 }
 0x6fd   : > { %v4463_v33 = vmul.f32 0.5, %v8230_v35  ;;  %4697 = vmatprep.subr.bf16.mxu1 %v4606_v46  ;;  %4655 = vmatpush1.bf16.msra.mxu0 %v4603_v24 }
 0x6fe   : > { %6374 = vtanh.f32 %v4460_v45  ;;  %4698 = vmatpush1.bf16.msra.mxu1 %v4605_v20 }
 0x6ff   : > { %6376 = vtanh.f32 %v4462_v62 }
 0x700   : > { %6378 = vtanh.f32 %v4461_v49  ;;  %5806 = vmatmul.mubr.msk.bf16.vlgmr.msra.gmra.mxu0 %vm828_vm0, %v8239_v18 }
 0x701   : > { %6380 = vtanh.f32 %v4463_v33  ;;  %5807 = vmatmul.mubr.msk.bf16.vlgmr.msra.gmra.mxu1 %vm828_vm0, %v8239_v18  ;;  %4758 = vmatprep.mubr.bf16.mxu0 %v6540_v2 }
 0x702   : > { %4801 = vmatprep.mubr.bf16.mxu1 %v6540_v2 }
 0x705   : > { %v6367_v55 = vpop.eup %6366 }
 0x706   : > { %v6369_v63 = vpop.eup %6368  ;;  %v4508_v50 = vmul.f32 0.5, %v6367_v55 }
 0x707   : > { %v6371_v34 = vpop.eup %6370  ;;  %v4510_v11 = vmul.f32 0.5, %v6369_v63 }
 0x708   : > { %v6373_v15 = vpop.eup %6372  ;;  %v4540_v39 = vadd.f32 0.5, %v4508_v50  ;;  %v4509_v43 = vmul.f32 0.5, %v6371_v34  ;;  %v4302_v57 = vpop.f32.mrf.mxu0 }
 0x709   : > { %v4511_v60 = vmul.f32 0.5, %v6373_v15  ;;  %v4542_v30 = vadd.f32 0.5, %v4510_v11  ;;  %v8248_v58 = vadd.f32 %v4302_v57, %v8192_v6  ;;  %v4345_v1 = vpop.f32.mrf.mxu1 }
 0x70a   : > { %v4572_v9 = vmul.f32 %v4540_v39, %v8205_v19  ;;  %v4541_v3 = vadd.f32 0.5, %v4509_v43  ;;  %v8252_v51 = vadd.f32 %v4345_v1, %v8192_v6  ;;  %v4304_v25 = vpop.f32.mrf.mxu0 }
 0x70b   : > { %v6375_v5 = vpop.eup %6374  ;;  %v4543_v4 = vadd.f32 0.5, %v4511_v60  ;;  %v4448_v28 = vmul.f32 0.5, %v8248_v58  ;;  %v8256_v42 = vadd.f32 %v4304_v25, %v8192_v6  ;;  %v4347_v16 = vpop.f32.mrf.mxu1  ;;  %v4574_v62 = vmul.f32 %v4542_v30, %v8208_v12 }
 0x70c   : > { %v6377_v27 = vpop.eup %6376  ;;  %v4524_v37 = vmul.f32 0.5, %v6375_v5  ;;  %v4450_v19 = vmul.f32 0.5, %v8252_v51  ;;  %v8260_v61 = vadd.f32 %v4347_v16, %v8192_v6  ;;  %v4306_v38 = vpop.f32.mrf.mxu0  ;;  %v4573_v48 = vmul.f32 %v4541_v3, %v8212_v8 }
 0x70d   : > { %v6379_v26 = vpop.eup %6378  ;;  %v4526_v22 = vmul.f32 0.5, %v6377_v27  ;;  %6382 = vtanh.f32 %v4448_v28  ;;  %v4449_v52 = vmul.f32 0.5, %v8256_v42  ;;  %v4349_v31 = vpop.f32.mrf.mxu1  ;;  %v8267_v36 = vadd.f32 %v4306_v38, %v8196_v40 }
 0x70e   : > { %v6381_v47 = vpop.eup %6380  ;;  %v4556_v23 = vadd.f32 0.5, %v4524_v37  ;;  %v4525_v53 = vmul.f32 0.5, %v6379_v26  ;;  %6384 = vtanh.f32 %v4450_v19  ;;  %v4451_v17 = vmul.f32 0.5, %v8260_v61  ;;  %v4308_v56 = vpop.f32.mrf.mxu0 }
 0x70f   : > { %v4558_v29 = vadd.f32 0.5, %v4526_v22  ;;  %v4527_v13 = vmul.f32 0.5, %v6381_v47  ;;  %6386 = vtanh.f32 %v4449_v52  ;;  %v4351_v41 = vpop.f32.mrf.mxu1  ;;  %v8272_v8 = vadd.f32 %v4349_v31, %v8196_v40 }
 0x710   : > { %v4557_v54 = vadd.f32 0.5, %v4525_v53  ;;  %v4588_v24 = vmul.f32 %v4556_v23, %v8221_v32  ;;  %6388 = vtanh.f32 %v4451_v17  ;;  %v4575_v46 = vmul.f32 %v4543_v4, %v8216_v0 }
 0x711   : > { %v4559_v59 = vadd.f32 0.5, %v4527_v13  ;;  %v4590_v44 = vmul.f32 %v4558_v29, %v8224_v7  ;;  %v4464_v32 = vmul.f32 0.5, %v8267_v36  ;;  %v8278_v45 = vadd.f32 %v4308_v56, %v8196_v40 }
 0x712   : > { %v4589_v14 = vmul.f32 %v4557_v54, %v8227_v10  ;;  %v4466_v49 = vmul.f32 0.5, %v8272_v8  ;;  %v8283_v7 = vadd.f32 %v4351_v41, %v8196_v40  ;;  %v4607_v33 = vpack.c.bf16 %v4588_v24, %v4572_v9 }
 0x713   : > { %v4591_v20 = vmul.f32 %v4559_v59, %v8230_v35  ;;  %6390 = vtanh.f32 %v4464_v32  ;;  %v4465_v55 = vmul.f32 0.5, %v8278_v45  ;;  %v4609_v63 = vpack.c.bf16 %v4590_v44, %v4574_v62 }
 0x714   : > { %v4608_v10 = vpack.c.bf16 %v4589_v14, %v4573_v48  ;;  %6392 = vtanh.f32 %v4466_v49  ;;  %v4467_v35 = vmul.f32 0.5, %v8283_v7 }
 0x715   : > { %v4610_v0 = vpack.c.bf16 %v4591_v20, %v4575_v46  ;;  %6394 = vtanh.f32 %v4465_v55 }
 0x716   : > { %4740 = vmatprep.subr.bf16.mxu0 %v4608_v10  ;;  %6396 = vtanh.f32 %v4467_v35 }
 0x717   : > { %4783 = vmatprep.subr.bf16.mxu1 %v4610_v0  ;;  %4741 = vmatpush1.bf16.msra.mxu0 %v4607_v33 }
 0x718   : > { %4784 = vmatpush1.bf16.msra.mxu1 %v4609_v63 }
 0x71a   : > { %5808 = vmatmul.mubr.msk.bf16.vlgmr.msra.gmra.mxu0 %vm828_vm0, %v8239_v18  ;;  %v6383_v12 = vpop.eup %6382 }
 0x71b   : > { %5809 = vmatmul.mubr.msk.bf16.vlgmr.msra.gmra.mxu1 %vm828_vm0, %v8239_v18  ;;  %4844 = vmatprep.mubr.bf16.mxu0 %v6540_v2  ;;  %v6385_v50 = vpop.eup %6384  ;;  %v4512_v34 = vmul.f32 0.5, %v6383_v12 }
 0x71c   : > { %4887 = vmatprep.mubr.bf16.mxu1 %v6540_v2  ;;  %v6387_v11 = vpop.eup %6386  ;;  %v4514_v15 = vmul.f32 0.5, %v6385_v50  ;;  %v4388_v57 = vpop.f32.mrf.mxu0 }
 0x71d   : > { %v6389_v39 = vpop.eup %6388  ;;  %v4544_v43 = vadd.f32 0.5, %v4512_v34  ;;  %v4513_v60 = vmul.f32 0.5, %v6387_v11  ;;  %v8294_v30 = vadd.f32 %v4388_v57, %v8192_v6  ;;  %v4431_v1 = vpop.f32.mrf.mxu1 }
 0x71e   : > { %v4515_v5 = vmul.f32 0.5, %v6389_v39  ;;  %v8297_v27 = vadd.f32 %v4431_v1, %v8192_v6  ;;  %v4390_v9 = vpop.f32.mrf.mxu0  ;;  %v4546_v25 = vadd.f32 0.5, %v4514_v15 }
 0x71f   : > { %v4576_v37 = vmul.f32 %v4544_v43, %v8248_v58  ;;  %v4452_v26 = vmul.f32 0.5, %v8294_v30  ;;  %v8302_v4 = vadd.f32 %v4390_v9, %v8192_v6  ;;  %v4433_v22 = vpop.f32.mrf.mxu1  ;;  %v4545_v16 = vadd.f32 0.5, %v4513_v60 }
 0x720   : > { %v6391_v3 = vpop.eup %6390  ;;  %v4454_v23 = vmul.f32 0.5, %v8297_v27  ;;  %v8306_v53 = vadd.f32 %v4433_v22, %v8192_v6  ;;  %v4392_v19 = vpop.f32.mrf.mxu0  ;;  %v4547_v29 = vadd.f32 0.5, %v4515_v5  ;;  %v4578_v12 = vmul.f32 %v4546_v25, %v8252_v51 }
 0x721   : > { %v6393_v28 = vpop.eup %6392  ;;  %v4528_v47 = vmul.f32 0.5, %v6391_v3  ;;  %6398 = vtanh.f32 %v4452_v26  ;;  %v4453_v58 = vmul.f32 0.5, %v8302_v4  ;;  %v4435_v52 = vpop.f32.mrf.mxu1  ;;  %v4393_v6 = vadd.f32 %v4392_v19, %v8196_v40 }
 0x722   : > { %v6395_v38 = vpop.eup %6394  ;;  %v4530_v13 = vmul.f32 0.5, %v6393_v28  ;;  %6400 = vtanh.f32 %v4454_v23  ;;  %v4455_v17 = vmul.f32 0.5, %v8306_v53  ;;  %v4394_v56 = vpop.f32.mrf.mxu0  ;;  %v4577_v44 = vmul.f32 %v4545_v16, %v8256_v42 }
 0x723   : > { %v6397_v31 = vpop.eup %6396  ;;  %v4560_v48 = vadd.f32 0.5, %v4528_v47  ;;  %v4529_v54 = vmul.f32 0.5, %v6395_v38  ;;  %6402 = vtanh.f32 %v4453_v58  ;;  %v4437_v41 = vpop.f32.mrf.mxu1  ;;  %v4436_v46 = vadd.f32 %v4435_v52, %v8196_v40 }
 0x724   : > { %v4562_v24 = vadd.f32 0.5, %v4530_v13  ;;  %v4531_v59 = vmul.f32 0.5, %v6397_v31  ;;  %6404 = vtanh.f32 %v4455_v17  ;;  %v4468_v62 = vmul.f32 0.5, %v4393_v6 }
 0x725   : > { %v4561_v14 = vadd.f32 0.5, %v4529_v54  ;;  %v4592_v20 = vmul.f32 %v4560_v48, %v8267_v36  ;;  %v4395_v49 = vadd.f32 %v4394_v56, %v8196_v40  ;;  %v4470_v55 = vmul.f32 0.5, %v4436_v46 }
 0x726   : > { %v4563_v32 = vadd.f32 0.5, %v4531_v59  ;;  %v4594_v10 = vmul.f32 %v4562_v24, %v8272_v8  ;;  %v4438_v0 = vadd.f32 %v4437_v41, %v8196_v40  ;;  %v4579_v63 = vmul.f32 %v4547_v29, %v8260_v61 }
 0x727   : > { %v4593_v33 = vmul.f32 %v4561_v14, %v8278_v45  ;;  %6406 = vtanh.f32 %v4468_v62  ;;  %v4469_v35 = vmul.f32 0.5, %v4395_v49  ;;  %v4611_v34 = vpack.c.bf16 %v4592_v20, %v4576_v37 }
 0x728   : > { %v4595_v42 = vmul.f32 %v4563_v32, %v8283_v7  ;;  %6408 = vtanh.f32 %v4470_v55  ;;  %v4471_v36 = vmul.f32 0.5, %v4438_v0  ;;  %v4613_v8 = vpack.c.bf16 %v4594_v10, %v4578_v12 }
 0x729   : > { %v4612_v50 = vpack.c.bf16 %v4593_v33, %v4577_v44  ;;  %6410 = vtanh.f32 %v4469_v35 }
 0x72a   : > { %v4614_v11 = vpack.c.bf16 %v4595_v42, %v4579_v63  ;;  %6412 = vtanh.f32 %v4471_v36 }
 0x72b   : > { %4826 = vmatprep.subr.bf16.mxu0 %v4612_v50 }
 0x72c   : > { %4869 = vmatprep.subr.bf16.mxu1 %v4614_v11  ;;  %4827 = vmatpush1.bf16.msra.mxu0 %v4611_v34 }
 0x72d   : > { %4870 = vmatpush1.bf16.msra.mxu1 %v4613_v8 }
 0x72e   : > { %v6399_v40 = vpop.eup %6398 }
 0x72f   : > { %5810 = vmatmul.mubr.msk.bf16.vlgmr.msra.gmra.mxu0 %vm828_vm0, %v8239_v18  ;;  %v6401_v61 = vpop.eup %6400  ;;  %v4516_v39 = vmul.f32 0.5, %v6399_v40 }
 0x730   : > { %5811 = vmatmul.mubr.msk.bf16.vlgmr.msra.gmra.mxu1 %vm828_vm0, %v8239_v18  ;;  %4930 = vmatprep.mubr.bf16.mxu0 %v6540_v2  ;;  %v6403_v51 = vpop.eup %6402  ;;  %v4518_v57 = vmul.f32 0.5, %v6401_v61 }
 0x731   : > { %4973 = vmatprep.mubr.bf16.mxu1 %v6540_v2  ;;  %v6405_v45 = vpop.eup %6404  ;;  %v4517_v7 = vmul.f32 0.5, %v6403_v51  ;;  %v4548_v22 = vadd.f32 0.5, %v4516_v39 }
 0x732   : > { %v4519_v43 = vmul.f32 0.5, %v6405_v45  ;;  %v4550_v23 = vadd.f32 0.5, %v4518_v57 }
 0x733   : > { %v4549_v37 = vadd.f32 0.5, %v4517_v7  ;;  %v4580_v31 = vmul.f32 %v4548_v22, %v8294_v30  ;;  %v8337_v30 = vpop.permute.xlu0 %4624 }
 0x734   : > { %v6407_v15 = vpop.eup %6406  ;;  %v4551_v28 = vadd.f32 0.5, %v4519_v43  ;;  %v4582_v17 = vmul.f32 %v4550_v23, %v8297_v27 }
 0x735   : > { %v6409_v60 = vpop.eup %6408  ;;  %v4532_v5 = vmul.f32 0.5, %v6407_v15  ;;  %v4581_v13 = vmul.f32 %v4549_v37, %v8302_v4 }
 0x736   : > { %v6411_v1 = vpop.eup %6410  ;;  %v4534_v9 = vmul.f32 0.5, %v6409_v60  ;;  %v4583_v48 = vmul.f32 %v4551_v28, %v8306_v53 }
 0x737   : > { %v6413_v3 = vpop.eup %6412  ;;  %v4564_v25 = vadd.f32 0.5, %v4532_v5  ;;  %v4533_v26 = vmul.f32 0.5, %v6411_v1 }
 0x738   : > { %v4566_v16 = vadd.f32 0.5, %v4534_v9  ;;  %v4535_v47 = vmul.f32 0.5, %v6413_v3 }
 0x739   : > { %v4565_v19 = vadd.f32 0.5, %v4533_v26  ;;  %v4596_v38 = vmul.f32 %v4564_v25, %v4393_v6 }
 0x73a   : > { %v4567_v29 = vadd.f32 0.5, %v4535_v47  ;;  %v4598_v58 = vmul.f32 %v4566_v16, %v4436_v46  ;;  %v8341_v46 = vpop.permute.xlu1 %4629 }
 0x73b   : > { %v4597_v52 = vmul.f32 %v4565_v19, %v4395_v49  ;;  %v4615_v24 = vpack.c.bf16 %v4596_v38, %v4580_v31 }
 0x73c   : > { %v4599_v54 = vmul.f32 %v4567_v29, %v4438_v0  ;;  %v4617_v41 = vpack.c.bf16 %v4598_v58, %v4582_v17 }
 0x73d   : > { %v4616_v56 = vpack.c.bf16 %v4597_v52, %v4581_v13 }
 0x73e   : > { %v4618_v59 = vpack.c.bf16 %v4599_v54, %v4583_v48 }
 0x73f   : > { %4912 = vmatprep.subr.bf16.mxu0 %v4616_v56 }
 0x740   : > { %4955 = vmatprep.subr.bf16.mxu1 %v4618_v59  ;;  %4913 = vmatpush1.bf16.msra.mxu0 %v4615_v24 }
 0x741   : > { %4956 = vmatpush1.bf16.msra.mxu1 %v4617_v41 }
 0x743   : > { %5812 = vmatmul.mubr.msk.bf16.vlgmr.msra.gmra.mxu0 %vm828_vm0, %v8239_v18 }
 0x744   : > { %5813 = vmatmul.mubr.msk.bf16.vlgmr.msra.gmra.mxu1 %vm828_vm0, %v8239_v18  ;;  %5215 = vmatprep.mubr.bf16.mxu0 %v6540_v2 }
 0x745   : > { %5256 = vmatprep.mubr.bf16.mxu1 %v6540_v2 }
 0x7c0   : > { %v4674_v27 = vpop.f32.mrf.mxu0 }
 0x7c1   : > { %v4717_v4 = vpop.f32.mrf.mxu1  ;;  %v4675_v53 = vadd.f32 %v4674_v27, %v8337_v30 }
 0x7c2   : > { %v4718_v6 = vadd.f32 %v4717_v4, %v8337_v30  ;;  %v4676_v44 = vpop.f32.mrf.mxu0 }
 0x7c3   : > { %v4719_v14 = vpop.f32.mrf.mxu1  ;;  %v4984_v20 = vmul.f32 0.5, %v4675_v53  ;;  %v4677_v18 = vadd.f32 %v4676_v44, %v8337_v30 }
 0x7c4   : > { %v4986_v32 = vmul.f32 0.5, %v4718_v6  ;;  %v4720_v62 = vadd.f32 %v4719_v14, %v8337_v30  ;;  %v4678_v49 = vpop.f32.mrf.mxu0 }
 0x7c5   : > { %v4721_v10 = vpop.f32.mrf.mxu1  ;;  %6414 = vtanh.f32 %v4984_v20  ;;  %v4985_v33 = vmul.f32 0.5, %v4677_v18  ;;  %v4679_v0 = vadd.f32 %v4678_v49, %v8341_v46 }
 0x7c6   : > { %v4987_v55 = vmul.f32 0.5, %v4720_v62  ;;  %6416 = vtanh.f32 %v4986_v32  ;;  %v4722_v63 = vadd.f32 %v4721_v10, %v8341_v46  ;;  %v4680_v42 = vpop.f32.mrf.mxu0 }
 0x7c7   : > { %v4723_v35 = vpop.f32.mrf.mxu1  ;;  %6418 = vtanh.f32 %v4985_v33  ;;  %v5000_v12 = vmul.f32 0.5, %v4679_v0  ;;  %v4681_v36 = vadd.f32 %v4680_v42, %v8341_v46 }
 0x7c8   : > { %v4724_v50 = vadd.f32 %v4723_v35, %v8341_v46  ;;  %6420 = vtanh.f32 %v4987_v55  ;;  %v5002_v34 = vmul.f32 0.5, %v4722_v63 }
 0x7c9   : > { %6422 = vtanh.f32 %v5000_v12  ;;  %v5001_v11 = vmul.f32 0.5, %v4681_v36 }
 0x7ca   : > { %v5003_v8 = vmul.f32 0.5, %v4724_v50  ;;  %6424 = vtanh.f32 %v5002_v34 }
 0x7cb   : > { %6426 = vtanh.f32 %v5001_v11 }
 0x7cc   : > { %6428 = vtanh.f32 %v5003_v8  ;;  %v8383_v8 = vld [vmem:[%s8539_s1 + $0x48] sm:$0xff]  }
 0x7d2   : > { %v6415_v40 = vpop.eup %6414 }
 0x7d3   : > { %v6417_v61 = vpop.eup %6416  ;;  %v5048_v51 = vmul.f32 0.5, %v6415_v40 }
 0x7d4   : > { %v6419_v45 = vpop.eup %6418  ;;  %v5050_v7 = vmul.f32 0.5, %v6417_v61 }
 0x7d5   : > { %v6421_v15 = vpop.eup %6420  ;;  %v5080_v39 = vadd.f32 0.5, %v5048_v51  ;;  %v5049_v43 = vmul.f32 0.5, %v6419_v45 }
 0x7d6   : > { %v6423_v60 = vpop.eup %6422  ;;  %v5082_v57 = vadd.f32 0.5, %v5050_v7  ;;  %v5051_v5 = vmul.f32 0.5, %v6421_v15 }
 0x7d7   : > { %v6425_v1 = vpop.eup %6424  ;;  %v5081_v9 = vadd.f32 0.5, %v5049_v43  ;;  %v5064_v3 = vmul.f32 0.5, %v6423_v60  ;;  %v5112_v28 = vmul.f32 %v5080_v39, %v4675_v53 }
 0x7d8   : > { %v6427_v37 = vpop.eup %6426  ;;  %v5083_v25 = vadd.f32 0.5, %v5051_v5  ;;  %v5066_v26 = vmul.f32 0.5, %v6425_v1  ;;  %v5114_v16 = vmul.f32 %v5082_v57, %v4718_v6 }
 0x7d9   : > { %v6429_v22 = vpop.eup %6428  ;;  %v5096_v47 = vadd.f32 0.5, %v5064_v3  ;;  %v5065_v23 = vmul.f32 0.5, %v6427_v37  ;;  %v5113_v38 = vmul.f32 %v5081_v9, %v4677_v18 }
 0x7da   : > { %v4760_v19 = vpop.f32.mrf.mxu0  ;;  %v5098_v29 = vadd.f32 0.5, %v5066_v26  ;;  %v5067_v13 = vmul.f32 0.5, %v6429_v22  ;;  %v5115_v31 = vmul.f32 %v5083_v25, %v4720_v62 }
 0x7db   : > { %v8350_v58 = vadd.f32 %v4760_v19, %v8337_v30  ;;  %v4803_v52 = vpop.f32.mrf.mxu1  ;;  %v5128_v48 = vmul.f32 %v5096_v47, %v4679_v0  ;;  %v5097_v54 = vadd.f32 0.5, %v5065_v23 }
 0x7dc   : > { %v8353_v17 = vadd.f32 %v4803_v52, %v8337_v30  ;;  %v4762_v56 = vpop.f32.mrf.mxu0  ;;  %v5130_v24 = vmul.f32 %v5098_v29, %v4722_v63  ;;  %v5099_v59 = vadd.f32 0.5, %v5067_v13 }
 0x7dd   : > { %v4988_v41 = vmul.f32 0.5, %v8350_v58  ;;  %v8357_v27 = vadd.f32 %v4762_v56, %v8337_v30  ;;  %v4805_v4 = vpop.f32.mrf.mxu1  ;;  %v5147_v53 = vpack.c.bf16 %v5128_v48, %v5112_v28  ;;  %v5129_v6 = vmul.f32 %v5097_v54, %v4681_v36 }
 0x7de   : > { %v4990_v44 = vmul.f32 0.5, %v8353_v17  ;;  %v8361_v14 = vadd.f32 %v4805_v4, %v8337_v30  ;;  %v4764_v20 = vpop.f32.mrf.mxu0  ;;  %v5149_v32 = vpack.c.bf16 %v5130_v24, %v5114_v16  ;;  %v5131_v18 = vmul.f32 %v5099_v59, %v4724_v50 }
 0x7df   : > { %6430 = vtanh.f32 %v4988_v41  ;;  %v4989_v62 = vmul.f32 0.5, %v8357_v27  ;;  %v4807_v49 = vpop.f32.mrf.mxu1  ;;  %v8366_v33 = vadd.f32 %v4764_v20, %v8341_v46  ;;  %v5148_v35 = vpack.c.bf16 %v5129_v6, %v5113_v38 }
 0x7e0   : > { %6432 = vtanh.f32 %v4990_v44  ;;  %v4991_v10 = vmul.f32 0.5, %v8361_v14  ;;  %v8369_v55 = vadd.f32 %v4807_v49, %v8341_v46  ;;  %v4766_v0 = vpop.f32.mrf.mxu0  ;;  %v5150_v12 = vpack.c.bf16 %v5131_v18, %v5115_v31 }
 0x7e1   : > { %6434 = vtanh.f32 %v4989_v62  ;;  %v8372_v63 = vadd.f32 %v4766_v0, %v8341_v46  ;;  %v4809_v42 = vpop.f32.mrf.mxu1  ;;  %v5004_v36 = vmul.f32 0.5, %v8366_v33  ;;  %5197 = vmatprep.subr.bf16.mxu0 %v5148_v35 }
 0x7e2   : > { %6436 = vtanh.f32 %v4991_v10  ;;  %v5006_v50 = vmul.f32 0.5, %v8369_v55  ;;  %v8377_v34 = vadd.f32 %v4809_v42, %v8341_v46  ;;  %5238 = vmatprep.subr.bf16.mxu1 %v5150_v12  ;;  %5198 = vmatpush1.bf16.msra.mxu0 %v5147_v53 }
 0x7e3   : > { %v5005_v11 = vmul.f32 0.5, %v8372_v63  ;;  %6438 = vtanh.f32 %v5004_v36  ;;  %5239 = vmatpush1.bf16.msra.mxu1 %v5149_v32 }
 0x7e4   : > { %v5007_v40 = vmul.f32 0.5, %v8377_v34  ;;  %6440 = vtanh.f32 %v5006_v50 }
 0x7e5   : > { %6442 = vtanh.f32 %v5005_v11  ;;  %5819 = vmatmul.mubr.msk.bf16.vlgmr.msra.gmra.mxu0 %vm828_vm0, %v8383_v8 }
 0x7e6   : > { %6444 = vtanh.f32 %v5007_v40  ;;  %5820 = vmatmul.mubr.msk.bf16.vlgmr.msra.gmra.mxu1 %vm828_vm0, %v8383_v8  ;;  %5297 = vmatprep.mubr.bf16.mxu0 %v6540_v2 }
 0x7e7   : > { %5338 = vmatprep.mubr.bf16.mxu1 %v6540_v2 }
 0x7ec   : > { %v6431_v61 = vpop.eup %6430 }
 0x7ed   : > { %v6433_v51 = vpop.eup %6432  ;;  %v5052_v45 = vmul.f32 0.5, %v6431_v61 }
 0x7ee   : > { %v6435_v7 = vpop.eup %6434  ;;  %v5054_v15 = vmul.f32 0.5, %v6433_v51 }
 0x7ef   : > { %v6437_v39 = vpop.eup %6436  ;;  %v5084_v43 = vadd.f32 0.5, %v5052_v45  ;;  %v5053_v60 = vmul.f32 0.5, %v6435_v7  ;;  %v4846_v9 = vpop.f32.mrf.mxu0 }
 0x7f0   : > { %v5086_v57 = vadd.f32 0.5, %v5054_v15  ;;  %v5055_v5 = vmul.f32 0.5, %v6437_v39  ;;  %v6439_v1 = vpop.eup %6438  ;;  %v8393_v26 = vadd.f32 %v4846_v9, %v8337_v30  ;;  %v4889_v22 = vpop.f32.mrf.mxu1 }
 0x7f1   : > { %v6441_v3 = vpop.eup %6440  ;;  %v5085_v37 = vadd.f32 0.5, %v5053_v60  ;;  %v5068_v25 = vmul.f32 0.5, %v6439_v1  ;;  %v5116_v16 = vmul.f32 %v5084_v43, %v8350_v58  ;;  %v8398_v19 = vadd.f32 %v4889_v22, %v8337_v30  ;;  %v4848_v38 = vpop.f32.mrf.mxu0 }
 0x7f2   : > { %v6443_v28 = vpop.eup %6442  ;;  %v5118_v47 = vmul.f32 %v5086_v57, %v8353_v17  ;;  %v5070_v23 = vmul.f32 0.5, %v6441_v3  ;;  %v5087_v13 = vadd.f32 0.5, %v5055_v5  ;;  %v4992_v48 = vmul.f32 0.5, %v8393_v26  ;;  %v4891_v54 = vpop.f32.mrf.mxu1 }
 0x7f3   : > { %v6445_v29 = vpop.eup %6444  ;;  %v5100_v52 = vadd.f32 0.5, %v5068_v25  ;;  %v5069_v31 = vmul.f32 0.5, %v6443_v28  ;;  %v4994_v59 = vmul.f32 0.5, %v8398_v19  ;;  %v8403_v58 = vadd.f32 %v4848_v38, %v8337_v30  ;;  %v4850_v17 = vpop.f32.mrf.mxu0 }
 0x7f4   : > { %v5102_v56 = vadd.f32 0.5, %v5070_v23  ;;  %v5071_v24 = vmul.f32 0.5, %v6445_v29  ;;  %v5117_v41 = vmul.f32 %v5085_v37, %v8357_v27  ;;  %6446 = vtanh.f32 %v4992_v48  ;;  %v4893_v6 = vpop.f32.mrf.mxu1 }
 0x7f5   : > { %v5101_v4 = vadd.f32 0.5, %v5069_v31  ;;  %v8407_v53 = vadd.f32 %v4891_v54, %v8337_v30  ;;  %v5132_v44 = vmul.f32 %v5100_v52, %v8366_v33  ;;  %6448 = vtanh.f32 %v4994_v59  ;;  %v4852_v18 = vpop.f32.mrf.mxu0 }
 0x7f6   : > { %v5103_v20 = vadd.f32 0.5, %v5071_v24  ;;  %v4993_v32 = vmul.f32 0.5, %v8403_v58  ;;  %v5134_v62 = vmul.f32 %v5102_v56, %v8369_v55  ;;  %v8415_v27 = vadd.f32 %v4850_v17, %v8341_v46  ;;  %v4895_v0 = vpop.f32.mrf.mxu1 }
 0x7f7   : > { %v5133_v49 = vmul.f32 %v5101_v4, %v8372_v63  ;;  %v4995_v10 = vmul.f32 0.5, %v8407_v53  ;;  %v5119_v42 = vmul.f32 %v5087_v13, %v8361_v14  ;;  %v8420_v33 = vadd.f32 %v4893_v6, %v8341_v46 }
 0x7f8   : > { %v5135_v35 = vmul.f32 %v5103_v20, %v8377_v34  ;;  %6450 = vtanh.f32 %v4993_v32  ;;  %v5008_v12 = vmul.f32 0.5, %v8415_v27  ;;  %v8424_v55 = vadd.f32 %v4852_v18, %v8341_v46 }
 0x7f9   : > { %6452 = vtanh.f32 %v4995_v10  ;;  %v8427_v63 = vadd.f32 %v4895_v0, %v8341_v46  ;;  %v5151_v36 = vpack.c.bf16 %v5132_v44, %v5116_v16  ;;  %v5010_v50 = vmul.f32 0.5, %v8420_v33 }
 0x7fa   : > { %v5152_v11 = vpack.c.bf16 %v5133_v49, %v5117_v41  ;;  %v5154_v14 = vpack.c.bf16 %v5135_v35, %v5119_v42  ;;  %v5153_v40 = vpack.c.bf16 %v5134_v62, %v5118_v47  ;;  %6454 = vtanh.f32 %v5008_v12 }
 0x7fb   : > { %v5009_v34 = vmul.f32 0.5, %v8424_v55  ;;  %v5011_v61 = vmul.f32 0.5, %v8427_v63  ;;  %6456 = vtanh.f32 %v5010_v50 }
 0x7fc   : > { %5279 = vmatprep.subr.bf16.mxu0 %v5152_v11  ;;  %5320 = vmatprep.subr.bf16.mxu1 %v5154_v14 }
 0x7fd   : > { %6458 = vtanh.f32 %v5009_v34  ;;  %5280 = vmatpush1.bf16.msra.mxu0 %v5151_v36  ;;  %5321 = vmatpush1.bf16.msra.mxu1 %v5153_v40 }
 0x7fe   : > { %6460 = vtanh.f32 %v5011_v61 }
 0x800   : > { %5821 = vmatmul.mubr.msk.bf16.vlgmr.msra.gmra.mxu0 %vm828_vm0, %v8383_v8  ;;  %5822 = vmatmul.mubr.msk.bf16.vlgmr.msra.gmra.mxu1 %vm828_vm0, %v8383_v8 }
 0x801   : > { %5379 = vmatprep.mubr.bf16.mxu0 %v6540_v2  ;;  %5420 = vmatprep.mubr.bf16.mxu1 %v6540_v2  ;;  %v6447_v51 = vpop.eup %6446 }
 0x802   : > { %v6449_v45 = vpop.eup %6448  ;;  %v5056_v7 = vmul.f32 0.5, %v6447_v51 }
 0x803   : > { %v5058_v39 = vmul.f32 0.5, %v6449_v45  ;;  %v4932_v43 = vpop.f32.mrf.mxu0 }
 0x804   : > { %v5088_v57 = vadd.f32 0.5, %v5056_v7  ;;  %v8439_v1 = vadd.f32 %v4932_v43, %v8337_v30  ;;  %v4975_v9 = vpop.f32.mrf.mxu1 }
 0x805   : > { %v6451_v15 = vpop.eup %6450  ;;  %v8442_v37 = vadd.f32 %v4975_v9, %v8337_v30  ;;  %v4934_v25 = vpop.f32.mrf.mxu0  ;;  %v5090_v29 = vadd.f32 0.5, %v5058_v39 }
 0x806   : > { %v6453_v60 = vpop.eup %6452  ;;  %v5057_v5 = vmul.f32 0.5, %v6451_v15  ;;  %v4996_v16 = vmul.f32 0.5, %v8439_v1  ;;  %v8446_v47 = vadd.f32 %v4934_v25, %v8337_v30  ;;  %v4977_v23 = vpop.f32.mrf.mxu1  ;;  %v5120_v56 = vmul.f32 %v5088_v57, %v8393_v26 }
 0x807   : > { %v5059_v3 = vmul.f32 0.5, %v6453_v60  ;;  %v6455_v22 = vpop.eup %6454  ;;  %v4998_v52 = vmul.f32 0.5, %v8442_v37  ;;  %v8450_v31 = vadd.f32 %v4977_v23, %v8337_v30  ;;  %v4936_v48 = vpop.f32.mrf.mxu0  ;;  %v5122_v51 = vmul.f32 %v5090_v29, %v8398_v19 }
 0x808   : > { %v5089_v28 = vadd.f32 0.5, %v5057_v5  ;;  %v6457_v38 = vpop.eup %6456  ;;  %v5072_v13 = vmul.f32 0.5, %v6455_v22  ;;  %v4997_v17 = vmul.f32 0.5, %v8446_v47  ;;  %v4979_v41 = vpop.f32.mrf.mxu1  ;;  %6462 = vtanh.f32 %v4996_v16 }
 0x809   : > { %v5091_v24 = vadd.f32 0.5, %v5059_v3  ;;  %v5074_v59 = vmul.f32 0.5, %v6457_v38  ;;  %v4938_v32 = vpop.f32.mrf.mxu0  ;;  %6464 = vtanh.f32 %v4998_v52  ;;  %v4999_v30 = vmul.f32 0.5, %v8450_v31 }
 0x80a   : > { %v6459_v54 = vpop.eup %6458  ;;  %v5121_v6 = vmul.f32 %v5089_v28, %v8403_v58  ;;  %v5104_v44 = vadd.f32 0.5, %v5072_v13  ;;  %6466 = vtanh.f32 %v4997_v17  ;;  %v4937_v26 = vadd.f32 %v4936_v48, %v8341_v46  ;;  %v4981_v0 = vpop.f32.mrf.mxu1 }
 0x80b   : > { %v6461_v4 = vpop.eup %6460  ;;  %v5073_v20 = vmul.f32 0.5, %v6459_v54  ;;  %v5106_v18 = vadd.f32 0.5, %v5074_v59  ;;  %v4980_v10 = vadd.f32 %v4979_v41, %v8341_v46  ;;  %6468 = vtanh.f32 %v4999_v30 }
 0x80c   : > { %v5075_v62 = vmul.f32 0.5, %v6461_v4  ;;  %v5136_v42 = vmul.f32 %v5104_v44, %v8415_v27  ;;  %v4939_v58 = vadd.f32 %v4938_v32, %v8341_v46  ;;  %v5012_v50 = vmul.f32 0.5, %v4937_v26 }
 0x80d   : > { %v5105_v49 = vadd.f32 0.5, %v5073_v20  ;;  %v5138_v12 = vmul.f32 %v5106_v18, %v8420_v33  ;;  %v5014_v11 = vmul.f32 0.5, %v4980_v10  ;;  %v5123_v14 = vmul.f32 %v5091_v24, %v8407_v53 }
 0x80e   : > { %v5107_v35 = vadd.f32 0.5, %v5075_v62  ;;  %v5013_v34 = vmul.f32 0.5, %v4939_v58  ;;  %v4982_v61 = vadd.f32 %v4981_v0, %v8341_v46  ;;  %6470 = vtanh.f32 %v5012_v50 }
 0x80f   : > { %v5137_v36 = vmul.f32 %v5105_v49, %v8424_v55  ;;  %v5155_v45 = vpack.c.bf16 %v5136_v42, %v5120_v56  ;;  %6472 = vtanh.f32 %v5014_v11  ;;  %v5157_v33 = vpack.c.bf16 %v5138_v12, %v5122_v51 }
 0x810   : > { %v5139_v40 = vmul.f32 %v5107_v35, %v8427_v63  ;;  %v5015_v7 = vmul.f32 0.5, %v4982_v61  ;;  %6474 = vtanh.f32 %v5013_v34  ;;  %v6542_v0 = vmov 1966171168   ;;  %v5169_v35 = vpop.permute.xlu0 %5168 }
 0x811   : > { %v5156_v27 = vpack.c.bf16 %v5137_v36, %v5121_v6  ;;  %v5532_v42 = vunpack.c.l.s4 %v6542_v0 }
 0x812   : > { %v5158_v15 = vpack.c.bf16 %v5139_v40, %v5123_v14  ;;  %6476 = vtanh.f32 %v5015_v7 }
 0x813   : > { %5361 = vmatprep.subr.bf16.mxu0 %v5156_v27  ;;  %v5533_v12 = vunpack.c.0.s8 %v5532_v42 }
 0x814   : > { %5402 = vmatprep.subr.bf16.mxu1 %v5158_v15  ;;  %5362 = vmatpush1.bf16.msra.mxu0 %v5155_v45 }
 0x815   : > { %5403 = vmatpush1.bf16.msra.mxu1 %v5157_v33  ;;  %v6463_v53 = vpop.eup %6462  ;;  %v8481_v40 = vsub.s32 %v5533_v12, %v6663_v21 }
 0x816   : > { %v6465_v46 = vpop.eup %6464  ;;  %v5060_v43 = vmul.f32 0.5, %v6463_v53 }
 0x817   : > { %5823 = vmatmul.mubr.msk.bf16.vlgmr.msra.gmra.mxu0 %vm828_vm0, %v8383_v8  ;;  %v6467_v19 = vpop.eup %6466  ;;  %v5062_v5 = vmul.f32 0.5, %v6465_v46 }
 0x818   : > { %5824 = vmatmul.mubr.msk.bf16.vlgmr.msra.gmra.mxu1 %vm828_vm0, %v8383_v8  ;;  %5461 = vmatprep.mubr.bf16.mxu0 %v6540_v2  ;;  %v6469_v55 = vpop.eup %6468  ;;  %v5061_v63 = vmul.f32 0.5, %v6467_v19  ;;  %v5092_v38 = vadd.f32 0.5, %v5060_v43 }
 0x819   : > { %5502 = vmatprep.mubr.bf16.mxu1 %v6540_v2  ;;  %v5063_v60 = vmul.f32 0.5, %v6469_v55  ;;  %v5094_v2 = vadd.f32 0.5, %v5062_v5 }
 0x81a   : > { %v5093_v28 = vadd.f32 0.5, %v5061_v63  ;;  %v5124_v41 = vmul.f32 %v5092_v38, %v8439_v1 }
 0x81b   : > { %v6471_v39 = vpop.eup %6470  ;;  %v5095_v29 = vadd.f32 0.5, %v5063_v60  ;;  %v5126_v44 = vmul.f32 %v5094_v2, %v8442_v37 }
 0x81c   : > { %v6473_v57 = vpop.eup %6472  ;;  %v5076_v9 = vmul.f32 0.5, %v6471_v39  ;;  %v5125_v24 = vmul.f32 %v5093_v28, %v8446_v47 }
 0x81d   : > { %v6475_v3 = vpop.eup %6474  ;;  %v5078_v25 = vmul.f32 0.5, %v6473_v57  ;;  %v5127_v4 = vmul.f32 %v5095_v29, %v8450_v31 }
 0x81e   : > { %v5108_v16 = vadd.f32 0.5, %v5076_v9  ;;  %v5077_v23 = vmul.f32 0.5, %v6475_v3 }
 0x81f   : > { %v6477_v22 = vpop.eup %6476  ;;  %v5110_v13 = vadd.f32 0.5, %v5078_v25 }
 0x820   : > { %v5079_v52 = vmul.f32 0.5, %v6477_v22  ;;  %v5109_v48 = vadd.f32 0.5, %v5077_v23  ;;  %v5140_v54 = vmul.f32 %v5108_v16, %v4937_v26 }
 0x821   : > { %v5142_v59 = vmul.f32 %v5110_v13, %v4980_v10 }
 0x822   : > { %v5111_v56 = vadd.f32 0.5, %v5079_v52  ;;  %v5141_v17 = vmul.f32 %v5109_v48, %v4939_v58  ;;  %v5159_v32 = vpack.c.bf16 %v5140_v54, %v5124_v41 }
 0x823   : > { %v5161_v62 = vpack.c.bf16 %v5142_v59, %v5126_v44 }
 0x824   : > { %v5143_v6 = vmul.f32 %v5111_v56, %v4982_v61  ;;  %v5160_v20 = vpack.c.bf16 %v5141_v17, %v5125_v24 }
 0x826   : > { %v5162_v18 = vpack.c.bf16 %v5143_v6, %v5127_v4  ;;  %5443 = vmatprep.subr.bf16.mxu0 %v5160_v20 }
 0x827   : > { %5444 = vmatpush1.bf16.msra.mxu0 %v5159_v32 }
 0x828   : > { %5484 = vmatprep.subr.bf16.mxu1 %v5162_v18 }
 0x829   : > { %5485 = vmatpush1.bf16.msra.mxu1 %v5161_v62 }
 0x82a   : > { %5825 = vmatmul.mubr.msk.bf16.vlgmr.msra.gmra.mxu0 %vm828_vm0, %v8383_v8 }
 0x82c   : > { %5826 = vmatmul.mubr.msk.bf16.vlgmr.msra.gmra.mxu1 %vm828_vm0, %v8383_v8 }
 0x8a5   : > { %v5217_v1 = vpop.f32.mrf.mxu0 }
 0x8a6   : > { %v5258_v47 = vpop.f32.mrf.mxu1  ;;  %v5218_v50 = vadd.f32 %v5217_v1, %v5169_v35 }
 0x8a7   : > { %v5219_v31 = vpop.f32.mrf.mxu0  ;;  %v5259_v11 = vadd.f32 %v5258_v47, %v5169_v35 }
 0x8a8   : > { %v5260_v30 = vpop.f32.mrf.mxu1  ;;  %v5220_v58 = vadd.f32 %v5219_v31, %v5169_v35 }
 0x8a9   : > { %v5221_v49 = vpop.f32.mrf.mxu0  ;;  %v5261_v36 = vadd.f32 %v5260_v30, %v5169_v35 }
 0x8aa   : > { %v5262_v37 = vpop.f32.mrf.mxu1  ;;  %v5527_v14 = vcombine.low %v5218_v50, %v5220_v58 }
 0x8ab   : > { %v5222_v26 = vpop.f32.mrf.mxu0  ;;  %v5528_v8 = vcombine.low %v5259_v11, %v5261_v36 }
 0x8ac   : > { %v5263_v10 = vpop.f32.mrf.mxu1  ;;  %v5537_v51 = vrot.slane %v5527_v14, %v8481_v40 }
 0x8ad   : > { %v5544_v27 = vrot.slane %v5528_v8, %v8481_v40 }
 0x8af   : > { %v5559_v60 = vcombine.low %v5537_v51, %v5544_v27 }
 0x8b1   : > { %v5567_v3 = vrot.slane %v5559_v60, %v8481_v40 }
 0x8c0   : > { %v5299_v34 = vpop.f32.mrf.mxu0  ;;  %v5340_v61 = vpop.f32.mrf.mxu1 }
 0x8c1   : > { %v5300_v15 = vadd.f32 %v5299_v34, %v5169_v35  ;;  %v5341_v33 = vadd.f32 %v5340_v61, %v5169_v35 }
 0x8c2   : > { %v5301_v45 = vpop.f32.mrf.mxu0  ;;  %v5342_v7 = vpop.f32.mrf.mxu1 }
 0x8c3   : > { %v5302_v53 = vadd.f32 %v5301_v45, %v5169_v35  ;;  %v5343_v46 = vadd.f32 %v5342_v7, %v5169_v35 }
 0x8c4   : > { %v5303_v19 = vpop.f32.mrf.mxu0  ;;  %v5344_v55 = vpop.f32.mrf.mxu1 }
 0x8c5   : > { %v5529_v63 = vcombine.low %v5300_v15, %v5302_v53  ;;  %v5530_v21 = vcombine.low %v5341_v33, %v5343_v46 }
 0x8c6   : > { %v5304_v39 = vpop.f32.mrf.mxu0  ;;  %v5345_v43 = vpop.f32.mrf.mxu1 }
 0x8c7   : > { %v5551_v57 = vrot.slane %v5529_v63, %v8481_v40  ;;  %v5558_v5 = vrot.slane %v5530_v21, %v8481_v40 }
 0x8c9   : > { %v5560_v9 = vcombine.low %v5551_v57, %v5558_v5 }
 0x8cb   : > { %v5574_v25 = vrot.slane %v5560_v9, %v8481_v40 }
 0x8cd   : > { %v5575_v22 = vcombine.low %v5567_v3, %v5574_v25 }
 0x8cf   : > { %5627 = vst [vmem:[%s8492_s8] sm:$0xff] %v5575_v22 }
 0x8d7   : > { %v5381_v28 = vpop.f32.mrf.mxu0 }
 0x8d8   : > { %v5422_v16 = vpop.f32.mrf.mxu1  ;;  %v5382_v56 = vadd.f32 %v5381_v28, %v5169_v35 }
 0x8d9   : > { %v5383_v23 = vpop.f32.mrf.mxu0  ;;  %v5423_v24 = vadd.f32 %v5422_v16, %v5169_v35 }
 0x8da   : > { %v5424_v38 = vpop.f32.mrf.mxu1  ;;  %v5384_v48 = vadd.f32 %v5383_v23, %v5169_v35 }
 0x8db   : > { %v5385_v29 = vpop.f32.mrf.mxu0  ;;  %v5425_v54 = vadd.f32 %v5424_v38, %v5169_v35 }
 0x8dc   : > { %v5426_v13 = vpop.f32.mrf.mxu1  ;;  %v5576_v59 = vcombine.low %v5382_v56, %v5384_v48 }
 0x8dd   : > { %v5386_v52 = vpop.f32.mrf.mxu0  ;;  %v5577_v17 = vcombine.low %v5423_v24, %v5425_v54 }
 0x8de   : > { %v5427_v2 = vpop.f32.mrf.mxu1  ;;  %v5586_v18 = vrot.slane %v5576_v59, %v8481_v40 }
 0x8df   : > { %v5593_v62 = vrot.slane %v5577_v17, %v8481_v40 }
 0x8e1   : > { %v5608_v42 = vcombine.low %v5586_v18, %v5593_v62 }
 0x8e3   : > { %v5616_v36 = vrot.slane %v5608_v42, %v8481_v40 }
 0x8ea   : > { %v5463_v41 = vpop.f32.mrf.mxu0 }
 0x8eb   : > { %v5464_v44 = vadd.f32 %v5463_v41, %v5169_v35 }
 0x8ec   : > { %v5504_v4 = vpop.f32.mrf.mxu1  ;;  %v5465_v6 = vpop.f32.mrf.mxu0 }
 0x8ed   : > { %v5466_v20 = vadd.f32 %v5465_v6, %v5169_v35  ;;  %v5505_v1 = vadd.f32 %v5504_v4, %v5169_v35 }
 0x8ee   : > { %v5506_v32 = vpop.f32.mrf.mxu1  ;;  %v5467_v31 = vpop.f32.mrf.mxu0 }
 0x8ef   : > { %v5507_v47 = vadd.f32 %v5506_v32, %v5169_v35  ;;  %v5578_v30 = vcombine.low %v5464_v44, %v5466_v20 }
 0x8f0   : > { %v5508_v49 = vpop.f32.mrf.mxu1  ;;  %v5468_v26 = vpop.f32.mrf.mxu0 }
 0x8f1   : > { %v5579_v37 = vcombine.low %v5505_v1, %v5507_v47  ;;  %v5600_v10 = vrot.slane %v5578_v30, %v8481_v40 }
 0x8f2   : > { %v5509_v0 = vpop.f32.mrf.mxu1 }
 0x8f3   : > { %v5607_v58 = vrot.slane %v5579_v37, %v8481_v40 }
 0x8f5   : > { %v5609_v12 = vcombine.low %v5600_v10, %v5607_v58 }
 0x8f7   : > { %v5623_v35 = vrot.slane %v5609_v12, %v8481_v40 }
 0x8f9   : > { %v5624_v50 = vcombine.low %v5616_v36, %v5623_v35 }
 0x8fb   : > { %5628 = vst [vmem:[%s8492_s8 + $0x8] sm:$0xff] %v5624_v50 }
 0x8fc   : > { %6491 = shalt.err (!%p6488_p3)
}
 0x8fd   : > { %s6492_s27 = scalar_lea.hbm %s5642_s19, 256  ;;  %s6496_s30 = scalar_lea.hbm %s8541_s3, 512 }
 0x8fe   : > { %p6493_p4 = scmp.ne.s32.totalorder %s5642_s19, %s6492_s27  ;;  %p6497_p9 = scmp.lt.s32.totalorder %s5642_s19, %s8541_s3 }
 0x8ff   : > { %p6498_p10 = scmp.lt.s32.totalorder %s6496_s30, %s6492_s27 }
 0x900   : > { %p6494_p7 = pnand %p6493_p4, %p6602_p5 }
 0x901   : > { %p6499_p11 = por %p6498_p10, %p6497_p9 }
 0x902   : > { %p6495_p8 = pneg %p6494_p7 }
 0x904   : > { %p6500_p12 = pnand %p6499_p11, %p6495_p8 }
 0x906   : > { %6503 = shalt.err (!%p6500_p12)
}
 0x907   : > { %5837 = dma.vmem_to_hbm [thread:$0]  (%p6602_p5), %s5645_s10, 256, %s5642_s19, %s5630_s20  }
 0x908 PF: > { %p5843_p13 = scmp.ge.s32.totalorder %s6538_s15, 2  ;;  %s5656_s6 = sand.u32 1, %s6526_s12  }
 0x909   : > { %s5657_s7 = scalar_lea.sflag [#allocation3], %s5656_s6 }
 0x90a   : > { %p5840_p0 = pnand %p5843_p13, %p6606_p6 }
 0x90c   : > { %p5841_p1 = pneg %p5840_p0 }
 0x90e   : > { %6521 = dma.done.wait (%p5841_p1), %s5657_s7, 256  }
 0x90f   : > { %6523 = vsyncadd (%p5841_p1), %s5657_s7, 4294967040  ;;  %p13_p2 = scmp.ge.s32.totalorder %s6589_s18, 4   ;;  %s8544_s12 = smov %s6530_s13 }
 0x910   : > { %s8545_s13 = smov %s6534_s14  ;;  %s8546_s14 = smov %s6600_s21 }
 0x911   : > { %s8547_s15 = smov %s6589_s18  ;;  %15 = sbr.rel (!%p13_p2) target bundleno = 3 (0x3), region = 85 }
 0x916   :  { %5662 = vsyncpa [#allocation3], 1 }
 0x917   :  { %5664 = vsyncpa [#allocation3 + $0x1], 1 }

</bundles_post_ra>
